<compile_context>
chip_gen: v6e
topology: v6e:2x2x1
jax: 0.10.0
libtpu: 0.0.40
codegen_flags: <defaults>
</compile_context>

<pallas_src>
import functools
import math

import jax
import jax.numpy as jnp
from jax.experimental import pallas as pl
from jax.experimental.pallas import tpu as pltpu


_INV_SQRT2 = 0.7071067811865476
_SQRT_2_OVER_PI = 0.7978845608028654

# Static unroll cap for the per-batch token-mix loop.
# TODO(synk): switch the token-mix loop to lax.fori_loop(..., unroll=True) for batch_block > this.
_MAX_UNROLL = 16


def _gelu_exact(x):
    # Matches torch.nn.functional.gelu default (erf-based, non-approximate).
    return 0.5 * x * (1.0 + jax.lax.erf(x * _INV_SQRT2))


def _gelu_tanh(x):
    # EUP-friendly approximation; enable with approx_gelu=True if the kernel is VALU-bound.
    return 0.5 * x * (1.0 + jnp.tanh(_SQRT_2_OVER_PI * (x + 0.044715 * x * x * x)))


def _layernorm(x, gamma, beta, eps):
    # Centered two-pass variance: exact nn.LayerNorm semantics, no E[x^2]-E[x]^2 cancellation.
    m = jnp.mean(x, axis=-1, keepdims=True)
    xc = x - m
    var = jnp.mean(xc * xc, axis=-1, keepdims=True)
    return xc * jax.lax.rsqrt(var + eps) * gamma + beta


def _mixer_kernel(
    x_ref,                 # [Bt, S, D]
    g1_ref, b1_ref,        # LayerNorm1 gamma/beta                [1, D]   f32
    wt1_ref, bt1_ref,      # token-mix fc1 (pre-T, pre-sliced)    [Ht, S]  cdt, [Ht, 1] f32
    wt2_ref, bt2_ref,      # token-mix fc2 (pre-T, pre-sliced)    [S, Ht]  cdt, [S, 1]  f32
    g2_ref, b2_ref,        # LayerNorm2 gamma/beta                [1, D]   f32
    wc1_ref, bc1_ref,      # channel-mix fc1                      [D, Hc]  cdt, [1, Hc] f32
    wc2_ref, bc2_ref,      # channel-mix fc2                      [Hc, D]  cdt, [1, D]  f32
    o_ref,                 # [Bt, S, D]
    xtok_ref,              # [Bt*S, D] f32 VMEM scratch (post-token-mix residual stream)
    *, eps: float, approx_gelu: bool,
):
    Bt, S, D = x_ref.shape
    Ht = wt1_ref.shape[0]
    cdt = wt1_ref.dtype                         # MXU operand dtype (bf16 or f32)
    gelu = _gelu_tanh if approx_gelu else _gelu_exact
    mxu_precision = jax.lax.Precision.HIGHEST if cdt == jnp.float32 else None

    wt1 = wt1_ref[...]
    wt2 = wt2_ref[...]
    # Hoisted bias broadcasts: JAX does not CSE broadcast_in_dim, so broadcast once, not per b.
    bt1 = jnp.broadcast_to(bt1_ref[...], (Ht, D))
    bt2 = jnp.broadcast_to(bt2_ref[...], (S, D))

    # ---- LayerNorm 1 over the whole flattened block (one traversal, one broadcast) ----
    x = x_ref[...].astype(jnp.float32).reshape(Bt * S, D)         # free leading-dim reshape
    xn1 = _layernorm(x, g1_ref[...], b1_ref[...], eps)

    # ---- token mixing (per batch element; dim stays on the lane axis) ----
    # Small [Ht,S]x[S,D] / [S,Ht]x[Ht,D] dots; results stored straight into the scratch so the
    # static unroll does not grow vreg/VMEM live ranges.
    for b in range(Bt):
        lo = b * S
        xb = xn1[lo:lo + S, :]                                    # [S, D] (static slice)
        h = jnp.dot(wt1, xb.astype(cdt),
                    preferred_element_type=jnp.float32, precision=mxu_precision)   # [Ht, D]
        h = gelu(h + bt1)
        y = jnp.dot(wt2, h.astype(cdt),
                    preferred_element_type=jnp.float32, precision=mxu_precision)   # [S, D]
        xtok_ref[lo:lo + S, :] = y + bt2 + x[lo:lo + S, :]        # token-mix residual

    x_tok = xtok_ref[...]                                         # [Bt*S, D]

    # ---- LayerNorm 2 + channel mixing as one big matmul pair (wc1/wc2 stationary in MXU) ----
    xn2 = _layernorm(x_tok, g2_ref[...], b2_ref[...], eps)
    hc = jnp.dot(xn2.astype(cdt), wc1_ref[...],
                 preferred_element_type=jnp.float32, precision=mxu_precision)       # [Bt*S, Hc]
    hc = gelu(hc + bc1_ref[...])
    yc = jnp.dot(hc.astype(cdt), wc2_ref[...],
                 preferred_element_type=jnp.float32, precision=mxu_precision)       # [Bt*S, D]
    out = yc + bc2_ref[...] + x_tok
    o_ref[...] = out.reshape(Bt, S, D).astype(o_ref.dtype)


def _largest_divisor_leq(n, cap):
    cap = int(max(1, min(cap, n)))
    for d in range(cap, 0, -1):
        if n % d == 0:
            return d
    return 1


def _auto_batch_block(B, max_elems):
    """Largest divisor of B within the VMEM/unroll budget, preferring an even grid >= 2."""
    cap = int(max(1, min(max_elems, B, _MAX_UNROLL)))
    divs = [d for d in range(1, cap + 1) if B % d == 0]
    pref_even = [d for d in divs if (B // d) >= 2 and (B // d) % 2 == 0]   # v7x: 2 TCs
    pref_multi = [d for d in divs if (B // d) >= 2]
    if pref_even:
        return pref_even[-1]
    if pref_multi:
        return pref_multi[-1]
    return divs[-1]


def mixer_layer_pallas(x, params, *, max_seq_len, eps=1e-6,
                       compute_dtype=jnp.bfloat16, batch_block=None,
                       approx_gelu=False):
    """Fused MixerLayer forward.  x: [B, S, D] (f32 or bf16).

    compute_dtype: dtype of the MXU operands (accumulation is always f32).  f32 gives the
    exact PyTorch-parity path; bf16 (default) gives peak matmul throughput and halved weight DMA.
    batch_block=None auto-picks the largest divisor of B that fits the VMEM budget while keeping
    the grid length even (>= 2) for v7x's two TensorCores.
    eps default 1e-6 matches MixerLayer's layer_norm_eps default (note: nn.LayerNorm default 1e-5).
    """
    B, S, D = x.shape
    if S > max_seq_len:
        # TODO(synk): the PyTorch forward is ill-defined for S > max_seq_len (it adds a
        # [*, max_seq, D] mixed result to a [*, S, D] residual and raises); only the
        # well-defined S <= max_seq_len path is implemented.
        raise ValueError(f"current seq len {S} > max_seq_len {max_seq_len} unsupported")

    (g1, b1, wt1, bt1, wt2, bt2, g2, b2, wc1, bc1, wc2, bc2) = params
    ht = wt1.shape[1]
    hc = wc1.shape[1]
    cbytes = jnp.dtype(compute_dtype).itemsize

    # Static weight slicing replaces the PyTorch zero-pad + crop (padded activation columns only
    # multiply rows wt1[S:]; the crop only keeps wt2[:, :S] / bt2[:, :S]); token-mix weights are
    # pre-transposed once here so there are no in-kernel XLU transposes.
    wt1_k = jnp.transpose(wt1[:S, :]).astype(compute_dtype)       # [Ht, S]
    wt2_k = jnp.transpose(wt2[:, :S]).astype(compute_dtype)       # [S, Ht]
    bt1_k = jnp.reshape(bt1, (ht, 1)).astype(jnp.float32)         # [Ht, 1]
    bt2_k = jnp.reshape(bt2[:, :S], (S, 1)).astype(jnp.float32)   # [S, 1]
    wc1_k = wc1.astype(compute_dtype)                             # [D, Hc]
    wc2_k = wc2.astype(compute_dtype)                             # [Hc, D]

    # ---- VMEM budget and batch_block selection ----
    try:
        info = pltpu.get_tpu_info()
        phys_vmem = int(getattr(info, "vmem_capacity_bytes", 0)) or (64 << 20)
    except Exception:
        phys_vmem = 64 << 20                      # v7x floor; safe on every generation
    vmem_cap = int(phys_vmem * 0.9)

    weight_bytes = (ht * S + S * ht + D * hc + hc * D) * cbytes \
                   + (4 * D + ht + S + hc + D) * 4                # + LN params / biases (f32)
    # Per batch element: x block (x2 double-buffered) + out block (x2) + x_tok scratch,
    # plus headroom for xn/hc/out temporaries.
    per_elem = (2 + 2 + 1) * S * D * 4 + (3 * S * D + S * hc) * 4
    act_budget = max(per_elem, vmem_cap - weight_bytes - (8 << 20))

    if batch_block is None:
        bb = _auto_batch_block(B, act_budget // per_elem)
    else:
        bb = _largest_divisor_leq(B, min(int(batch_block), max(1, act_budget // per_elem)))

    est = weight_bytes + bb * per_elem
    vmem_limit = int(min(vmem_cap, max(2 * est, 32 << 20)))

    kernel = functools.partial(_mixer_kernel, eps=eps, approx_gelu=approx_gelu)

    def const_spec(a):
        # Grid-invariant block (weights / LN params): constant index map, single-buffered
        # (never re-fetched, so the second pipeline buffer would be pure VMEM waste).
        return pl.BlockSpec(a.shape, lambda i, _nd=a.ndim: (0,) * _nd,
                            pipeline_mode=pl.Buffered(1))

    in_specs = [
        pl.BlockSpec((bb, S, D), lambda i: (i, 0, 0)),            # x (double-buffered)
        const_spec(g1), const_spec(b1),
        const_spec(wt1_k), const_spec(bt1_k),
        const_spec(wt2_k), const_spec(bt2_k),
        const_spec(g2), const_spec(b2),
        const_spec(wc1_k), const_spec(bc1),
        const_spec(wc2_k), const_spec(bc2),
    ]
    out_spec = pl.BlockSpec((bb, S, D), lambda i: (i, 0, 0))

    # TODO(synk): for very large S*D on v7x (64 MiB VMEM), split into two pallas_calls
    # (token-mix stage tiled over D, channel-mix stage tiled over S) instead of one fused slab.
    return pl.pallas_call(
        kernel,
        grid=(B // bb,),
        in_specs=in_specs,
        out_specs=out_spec,
        out_shape=jax.ShapeDtypeStruct((B, S, D), x.dtype),
        scratch_shapes=[pltpu.VMEM((bb * S, D), jnp.float32)],
        compiler_params=pltpu.CompilerParams(
            dimension_semantics=("parallel",),
            vmem_limit_bytes=vmem_limit),
    )(x, g1, b1, wt1_k, bt1_k, wt2_k, bt2_k, g2, b2, wc1_k, bc1, wc2_k, bc2)


def mixer_layer_ref(x, params, *, max_seq_len, eps=1e-6):
    """Pure-JAX f32 reference mirroring the PyTorch forward (dropout=0)."""
    (g1, b1, wt1, bt1, wt2, bt2, g2, b2, wc1, bc1, wc2, bc2) = params
    B, S, D = x.shape

    def ln(v, g, bta):
        m = jnp.mean(v, -1, keepdims=True)
        var = jnp.mean((v - m) ** 2, -1, keepdims=True)
        return (v - m) / jnp.sqrt(var + eps) * g[0] + bta[0]

    res1 = x
    xn = ln(x, g1, b1)
    xt = jnp.transpose(xn, (0, 2, 1))                       # [B, D, S]
    if S < max_seq_len:
        xt = jnp.pad(xt, ((0, 0), (0, 0), (0, max_seq_len - S)))
    elif S > max_seq_len:
        xt = xt[:, :, :max_seq_len]
    h = _gelu_exact(xt @ wt1 + bt1[0])
    y = h @ wt2 + bt2[0]
    if S < max_seq_len:
        y = y[:, :, :S]
    x1 = jnp.transpose(y, (0, 2, 1)) + res1
    xn2 = ln(x1, g2, b2)
    h2 = _gelu_exact(xn2 @ wc1 + bc1[0])
    return h2 @ wc2 + bc2[0] + x1


def init_params(key, dim, max_seq_len, token_mixing_hidden_dim, channel_mixing_hidden_dim):
    ht = min(token_mixing_hidden_dim, max_seq_len * 2)      # mirrors MixerLayer.__init__
    hc = channel_mixing_hidden_dim
    ks = jax.random.split(key, 4)

    def lin(k, fan_in, fan_out):
        # Stored as [in, out] (transposed vs torch's [out, in]) for x @ W.
        bound = 1.0 / math.sqrt(fan_in)
        kw, kb = jax.random.split(k)
        w = jax.random.uniform(kw, (fan_in, fan_out), jnp.float32, -bound, bound)
        b = jax.random.uniform(kb, (1, fan_out), jnp.float32, -bound, bound)
        return w, b

    g1 = jnp.ones((1, dim), jnp.float32)
    b1 = jnp.zeros((1, dim), jnp.float32)
    g2 = jnp.ones((1, dim), jnp.float32)
    b2 = jnp.zeros((1, dim), jnp.float32)
    wt1, bt1 = lin(ks[0], max_seq_len, ht)
    wt2, bt2 = lin(ks[1], ht, max_seq_len)
    wc1, bc1 = lin(ks[2], dim, hc)
    wc2, bc2 = lin(ks[3], hc, dim)
    return (g1, b1, wt1, bt1, wt2, bt2, g2, b2, wc1, bc1, wc2, bc2)


if __name__ == "__main__":
    # Small but lane-dense demo shapes: dim / channel-hidden are multiples of 128.
    B, D = 4, 128
    max_seq_len = 16
    token_mixing_hidden_dim = 32        # ht = min(32, 2*16) = 32
    channel_mixing_hidden_dim = 256

    key = jax.random.PRNGKey(0)
    kx, kp = jax.random.split(key)
    params = init_params(kp, D, max_seq_len, token_mixing_hidden_dim,
                         channel_mixing_hidden_dim)

    x_full = jax.random.normal(kx, (B, max_seq_len, D), jnp.float32)

    # Case 1: S == max_seq_len, f32 MXU operands, auto batch_block (even grid -> both v7x TCs).
    with jax.default_matmul_precision("highest"):
        ref_full = mixer_layer_ref(x_full, params, max_seq_len=max_seq_len)
    out_f32 = jax.block_until_ready(
        mixer_layer_pallas(x_full, params, max_seq_len=max_seq_len,
                           compute_dtype=jnp.float32))
    assert out_f32.shape == (B, max_seq_len, D)
    assert jnp.allclose(out_f32, ref_full, atol=1e-3, rtol=1e-3), \
        "f32 kernel mismatch vs JAX reference"

    # Case 2: S < max_seq_len (static weight slicing replaces the PyTorch pad/crop), bf16 MXU
    # operands, explicit batch_block=4 (whole batch flattened to one [Bt*S, D] block).
    S = 8
    x_short = x_full[:, :S, :]
    with jax.default_matmul_precision("highest"):
        ref_short = mixer_layer_ref(x_short, params, max_seq_len=max_seq_len)
    out_bf16 = jax.block_until_ready(
        mixer_layer_pallas(x_short, params, max_seq_len=max_seq_len,
                           compute_dtype=jnp.bfloat16, batch_block=4))
    assert out_bf16.shape == (B, S, D)
    # bf16 MXU operands (f32 accumulate) vs a pure-f32 reference: tolerance intentionally loose.
    assert jnp.allclose(out_bf16, ref_short, atol=5e-2, rtol=5e-2), \
        "bf16 kernel mismatch vs JAX reference"

    print("KERNEL_OK")
</pallas_src>

<mosaic_0001>
module attributes {stable_mosaic.version = 11 : i64} {
  func.func @_mixer_kernel(%arg0: i32, %arg1: memref<2x16x128xf32, #tpu.memory_space<vmem>>, %arg2: memref<1x128xf32, #tpu.memory_space<vmem>>, %arg3: memref<1x128xf32, #tpu.memory_space<vmem>>, %arg4: memref<32x16xf32, #tpu.memory_space<vmem>>, %arg5: memref<32x1xf32, #tpu.memory_space<vmem>>, %arg6: memref<16x32xf32, #tpu.memory_space<vmem>>, %arg7: memref<16x1xf32, #tpu.memory_space<vmem>>, %arg8: memref<1x128xf32, #tpu.memory_space<vmem>>, %arg9: memref<1x128xf32, #tpu.memory_space<vmem>>, %arg10: memref<128x256xf32, #tpu.memory_space<vmem>>, %arg11: memref<1x256xf32, #tpu.memory_space<vmem>>, %arg12: memref<256x128xf32, #tpu.memory_space<vmem>>, %arg13: memref<1x128xf32, #tpu.memory_space<vmem>>, %arg14: memref<2x16x128xf32, #tpu.memory_space<vmem>>, %arg15: memref<32x128xf32, #tpu.memory_space<vmem>>) attributes {dimension_semantics = [#tpu.dimension_semantics<parallel>], iteration_bounds = array<i64: 2>, scalar_prefetch = 0 : i64, scratch_operands = 1 : i64, tpu.core_type = #tpu.core_type<tc>, window_params = [{transform_indices = @transform_0, window_bounds = array<i64: 2, 16, 128>}, {pipeline_mode = #tpu.pipeline_mode<synchronous>, transform_indices = @transform_1, window_bounds = array<i64: 1, 128>}, {pipeline_mode = #tpu.pipeline_mode<synchronous>, transform_indices = @transform_2, window_bounds = array<i64: 1, 128>}, {pipeline_mode = #tpu.pipeline_mode<synchronous>, transform_indices = @transform_3, window_bounds = array<i64: 32, 16>}, {pipeline_mode = #tpu.pipeline_mode<synchronous>, transform_indices = @transform_4, window_bounds = array<i64: 32, 1>}, {pipeline_mode = #tpu.pipeline_mode<synchronous>, transform_indices = @transform_5, window_bounds = array<i64: 16, 32>}, {pipeline_mode = #tpu.pipeline_mode<synchronous>, transform_indices = @transform_6, window_bounds = array<i64: 16, 1>}, {pipeline_mode = #tpu.pipeline_mode<synchronous>, transform_indices = @transform_7, window_bounds = array<i64: 1, 128>}, {pipeline_mode = #tpu.pipeline_mode<synchronous>, transform_indices = @transform_8, window_bounds = array<i64: 1, 128>}, {pipeline_mode = #tpu.pipeline_mode<synchronous>, transform_indices = @transform_9, window_bounds = array<i64: 128, 256>}, {pipeline_mode = #tpu.pipeline_mode<synchronous>, transform_indices = @transform_10, window_bounds = array<i64: 1, 256>}, {pipeline_mode = #tpu.pipeline_mode<synchronous>, transform_indices = @transform_11, window_bounds = array<i64: 256, 128>}, {pipeline_mode = #tpu.pipeline_mode<synchronous>, transform_indices = @transform_12, window_bounds = array<i64: 1, 128>}, {transform_indices = @transform_13, window_bounds = array<i64: 2, 16, 128>}]} {
    %c0 = arith.constant 0 : index
    %c0_0 = arith.constant 0 : index
    %0 = vector.load %arg4[%c0, %c0_0] : memref<32x16xf32, #tpu.memory_space<vmem>>, vector<32x16xf32>
    %c0_1 = arith.constant 0 : index
    %c0_2 = arith.constant 0 : index
    %1 = vector.load %arg6[%c0_1, %c0_2] : memref<16x32xf32, #tpu.memory_space<vmem>>, vector<16x32xf32>
    %c0_3 = arith.constant 0 : index
    %c0_4 = arith.constant 0 : index
    %2 = vector.load %arg5[%c0_3, %c0_4] : memref<32x1xf32, #tpu.memory_space<vmem>>, vector<32x1xf32>
    %3 = vector.shape_cast %2 : vector<32x1xf32> to vector<32x1xf32>
    %4 = vector.broadcast %3 : vector<32x1xf32> to vector<32x128xf32>
    %c0_5 = arith.constant 0 : index
    %c0_6 = arith.constant 0 : index
    %5 = vector.load %arg7[%c0_5, %c0_6] : memref<16x1xf32, #tpu.memory_space<vmem>>, vector<16x1xf32>
    %6 = vector.shape_cast %5 : vector<16x1xf32> to vector<16x1xf32>
    %7 = vector.broadcast %6 : vector<16x1xf32> to vector<16x128xf32>
    %c0_7 = arith.constant 0 : index
    %c0_8 = arith.constant 0 : index
    %c0_9 = arith.constant 0 : index
    %8 = vector.load %arg1[%c0_7, %c0_8, %c0_9] : memref<2x16x128xf32, #tpu.memory_space<vmem>>, vector<2x16x128xf32>
    %9 = vector.shape_cast %8 : vector<2x16x128xf32> to vector<32x128xf32>
    %c0_10 = arith.constant 0 : index
    %c0_11 = arith.constant 0 : index
    %10 = vector.load %arg2[%c0_10, %c0_11] : memref<1x128xf32, #tpu.memory_space<vmem>>, vector<1x128xf32>
    %c0_12 = arith.constant 0 : index
    %c0_13 = arith.constant 0 : index
    %11 = vector.load %arg3[%c0_12, %c0_13] : memref<1x128xf32, #tpu.memory_space<vmem>>, vector<1x128xf32>
    %cst = arith.constant dense<0.000000e+00> : vector<32xf32>
    %12 = vector.multi_reduction <add>, %9, %cst [1] : vector<32x128xf32> to vector<32xf32>
    %13 = vector.shape_cast %12 : vector<32xf32> to vector<32x1xf32>
    %cst_14 = arith.constant 1.280000e+02 : f32
    %14 = vector.broadcast %cst_14 : f32 to vector<32x1xf32>
    %15 = arith.divf %13, %14 : vector<32x1xf32>
    %16 = vector.broadcast %15 : vector<32x1xf32> to vector<32x128xf32>
    %17 = arith.subf %9, %16 : vector<32x128xf32>
    %18 = arith.mulf %17, %17 : vector<32x128xf32>
    %cst_15 = arith.constant dense<0.000000e+00> : vector<32xf32>
    %19 = vector.multi_reduction <add>, %18, %cst_15 [1] : vector<32x128xf32> to vector<32xf32>
    %20 = vector.shape_cast %19 : vector<32xf32> to vector<32x1xf32>
    %cst_16 = arith.constant 1.280000e+02 : f32
    %21 = vector.broadcast %cst_16 : f32 to vector<32x1xf32>
    %22 = arith.divf %20, %21 : vector<32x1xf32>
    %cst_17 = arith.constant 9.99999997E-7 : f32
    %23 = vector.broadcast %cst_17 : f32 to vector<32x1xf32>
    %24 = arith.addf %22, %23 : vector<32x1xf32>
    %25 = math.rsqrt %24 : vector<32x1xf32>
    %26 = vector.broadcast %25 : vector<32x1xf32> to vector<32x128xf32>
    %27 = arith.mulf %17, %26 : vector<32x128xf32>
    %28 = vector.broadcast %10 : vector<1x128xf32> to vector<32x128xf32>
    %29 = arith.mulf %27, %28 : vector<32x128xf32>
    %30 = vector.broadcast %11 : vector<1x128xf32> to vector<32x128xf32>
    %31 = arith.addf %29, %30 : vector<32x128xf32>
    %32 = vector.extract_strided_slice %31 {offsets = [0, 0], sizes = [16, 128], strides = [1, 1]} : vector<32x128xf32> to vector<16x128xf32>
    %cst_18 = arith.constant dense<0.000000e+00> : vector<32x128xf32>
    %33 = tpu.matmul %0, %32, %cst_18 {dimension_numbers = #tpu.dot_dimension_numbers<[1], [0], [0], [1], [0, 0, 1, 1], [], []>, precision = #tpu.contract_precision<fp32>} : vector<32x16xf32>, vector<16x128xf32>, vector<32x128xf32> -> vector<32x128xf32>
    %34 = arith.addf %33, %4 : vector<32x128xf32>
    %cst_19 = arith.constant 5.000000e-01 : f32
    %35 = vector.broadcast %cst_19 : f32 to vector<32x128xf32>
    %36 = arith.mulf %35, %34 : vector<32x128xf32>
    %cst_20 = arith.constant 0.707106769 : f32
    %37 = vector.broadcast %cst_20 : f32 to vector<32x128xf32>
    %38 = arith.mulf %34, %37 : vector<32x128xf32>
    %39 = math.erf %38 : vector<32x128xf32>
    %cst_21 = arith.constant 1.000000e+00 : f32
    %40 = vector.broadcast %cst_21 : f32 to vector<32x128xf32>
    %41 = arith.addf %40, %39 : vector<32x128xf32>
    %42 = arith.mulf %36, %41 : vector<32x128xf32>
    %cst_22 = arith.constant dense<0.000000e+00> : vector<16x128xf32>
    %43 = tpu.matmul %1, %42, %cst_22 {dimension_numbers = #tpu.dot_dimension_numbers<[1], [0], [0], [1], [0, 0, 1, 1], [], []>, precision = #tpu.contract_precision<fp32>} : vector<16x32xf32>, vector<32x128xf32>, vector<16x128xf32> -> vector<16x128xf32>
    %44 = arith.addf %43, %7 : vector<16x128xf32>
    %45 = vector.extract_strided_slice %9 {offsets = [0, 0], sizes = [16, 128], strides = [1, 1]} : vector<32x128xf32> to vector<16x128xf32>
    %46 = arith.addf %44, %45 : vector<16x128xf32>
    %c0_23 = arith.constant 0 : index
    %c0_24 = arith.constant 0 : index
    %47 = vector.load %arg15[%c0_23, %c0_24] : memref<32x128xf32, #tpu.memory_space<vmem>>, vector<16x128xf32>
    tpu.vector_store %arg15[%c0_23, %c0_24], %46 {strides = array<i32>} : memref<32x128xf32, #tpu.memory_space<vmem>>, vector<16x128xf32>,
    %48 = vector.extract_strided_slice %31 {offsets = [16, 0], sizes = [16, 128], strides = [1, 1]} : vector<32x128xf32> to vector<16x128xf32>
    %cst_25 = arith.constant dense<0.000000e+00> : vector<32x128xf32>
    %49 = tpu.matmul %0, %48, %cst_25 {dimension_numbers = #tpu.dot_dimension_numbers<[1], [0], [0], [1], [0, 0, 1, 1], [], []>, precision = #tpu.contract_precision<fp32>} : vector<32x16xf32>, vector<16x128xf32>, vector<32x128xf32> -> vector<32x128xf32>
    %50 = arith.addf %49, %4 : vector<32x128xf32>
    %cst_26 = arith.constant 5.000000e-01 : f32
    %51 = vector.broadcast %cst_26 : f32 to vector<32x128xf32>
    %52 = arith.mulf %51, %50 : vector<32x128xf32>
    %cst_27 = arith.constant 0.707106769 : f32
    %53 = vector.broadcast %cst_27 : f32 to vector<32x128xf32>
    %54 = arith.mulf %50, %53 : vector<32x128xf32>
    %55 = math.erf %54 : vector<32x128xf32>
    %cst_28 = arith.constant 1.000000e+00 : f32
    %56 = vector.broadcast %cst_28 : f32 to vector<32x128xf32>
    %57 = arith.addf %56, %55 : vector<32x128xf32>
    %58 = arith.mulf %52, %57 : vector<32x128xf32>
    %cst_29 = arith.constant dense<0.000000e+00> : vector<16x128xf32>
    %59 = tpu.matmul %1, %58, %cst_29 {dimension_numbers = #tpu.dot_dimension_numbers<[1], [0], [0], [1], [0, 0, 1, 1], [], []>, precision = #tpu.contract_precision<fp32>} : vector<16x32xf32>, vector<32x128xf32>, vector<16x128xf32> -> vector<16x128xf32>
    %60 = arith.addf %59, %7 : vector<16x128xf32>
    %61 = vector.extract_strided_slice %9 {offsets = [16, 0], sizes = [16, 128], strides = [1, 1]} : vector<32x128xf32> to vector<16x128xf32>
    %62 = arith.addf %60, %61 : vector<16x128xf32>
    %c16 = arith.constant 16 : index
    %c0_30 = arith.constant 0 : index
    %63 = vector.load %arg15[%c16, %c0_30] : memref<32x128xf32, #tpu.memory_space<vmem>>, vector<16x128xf32>
    tpu.vector_store %arg15[%c16, %c0_30], %62 {strides = array<i32>} : memref<32x128xf32, #tpu.memory_space<vmem>>, vector<16x128xf32>,
    %c0_31 = arith.constant 0 : index
    %c0_32 = arith.constant 0 : index
    %64 = vector.load %arg15[%c0_31, %c0_32] : memref<32x128xf32, #tpu.memory_space<vmem>>, vector<32x128xf32>
    %c0_33 = arith.constant 0 : index
    %c0_34 = arith.constant 0 : index
    %65 = vector.load %arg8[%c0_33, %c0_34] : memref<1x128xf32, #tpu.memory_space<vmem>>, vector<1x128xf32>
    %c0_35 = arith.constant 0 : index
    %c0_36 = arith.constant 0 : index
    %66 = vector.load %arg9[%c0_35, %c0_36] : memref<1x128xf32, #tpu.memory_space<vmem>>, vector<1x128xf32>
    %cst_37 = arith.constant dense<0.000000e+00> : vector<32xf32>
    %67 = vector.multi_reduction <add>, %64, %cst_37 [1] : vector<32x128xf32> to vector<32xf32>
    %68 = vector.shape_cast %67 : vector<32xf32> to vector<32x1xf32>
    %cst_38 = arith.constant 1.280000e+02 : f32
    %69 = vector.broadcast %cst_38 : f32 to vector<32x1xf32>
    %70 = arith.divf %68, %69 : vector<32x1xf32>
    %71 = vector.broadcast %70 : vector<32x1xf32> to vector<32x128xf32>
    %72 = arith.subf %64, %71 : vector<32x128xf32>
    %73 = arith.mulf %72, %72 : vector<32x128xf32>
    %cst_39 = arith.constant dense<0.000000e+00> : vector<32xf32>
    %74 = vector.multi_reduction <add>, %73, %cst_39 [1] : vector<32x128xf32> to vector<32xf32>
    %75 = vector.shape_cast %74 : vector<32xf32> to vector<32x1xf32>
    %cst_40 = arith.constant 1.280000e+02 : f32
    %76 = vector.broadcast %cst_40 : f32 to vector<32x1xf32>
    %77 = arith.divf %75, %76 : vector<32x1xf32>
    %cst_41 = arith.constant 9.99999997E-7 : f32
    %78 = vector.broadcast %cst_41 : f32 to vector<32x1xf32>
    %79 = arith.addf %77, %78 : vector<32x1xf32>
    %80 = math.rsqrt %79 : vector<32x1xf32>
    %81 = vector.broadcast %80 : vector<32x1xf32> to vector<32x128xf32>
    %82 = arith.mulf %72, %81 : vector<32x128xf32>
    %83 = vector.broadcast %65 : vector<1x128xf32> to vector<32x128xf32>
    %84 = arith.mulf %82, %83 : vector<32x128xf32>
    %85 = vector.broadcast %66 : vector<1x128xf32> to vector<32x128xf32>
    %86 = arith.addf %84, %85 : vector<32x128xf32>
    %c0_42 = arith.constant 0 : index
    %c0_43 = arith.constant 0 : index
    %87 = vector.load %arg10[%c0_42, %c0_43] : memref<128x256xf32, #tpu.memory_space<vmem>>, vector<128x256xf32>
    %cst_44 = arith.constant dense<0.000000e+00> : vector<32x256xf32>
    %88 = tpu.matmul %86, %87, %cst_44 {dimension_numbers = #tpu.dot_dimension_numbers<[1], [0], [0], [1], [0, 0, 1, 1], [], []>, precision = #tpu.contract_precision<fp32>} : vector<32x128xf32>, vector<128x256xf32>, vector<32x256xf32> -> vector<32x256xf32>
    %c0_45 = arith.constant 0 : index
    %c0_46 = arith.constant 0 : index
    %89 = vector.load %arg11[%c0_45, %c0_46] : memref<1x256xf32, #tpu.memory_space<vmem>>, vector<1x256xf32>
    %90 = vector.broadcast %89 : vector<1x256xf32> to vector<32x256xf32>
    %91 = arith.addf %88, %90 : vector<32x256xf32>
    %cst_47 = arith.constant 5.000000e-01 : f32
    %92 = vector.broadcast %cst_47 : f32 to vector<32x256xf32>
    %93 = arith.mulf %92, %91 : vector<32x256xf32>
    %cst_48 = arith.constant 0.707106769 : f32
    %94 = vector.broadcast %cst_48 : f32 to vector<32x256xf32>
    %95 = arith.mulf %91, %94 : vector<32x256xf32>
    %96 = math.erf %95 : vector<32x256xf32>
    %cst_49 = arith.constant 1.000000e+00 : f32
    %97 = vector.broadcast %cst_49 : f32 to vector<32x256xf32>
    %98 = arith.addf %97, %96 : vector<32x256xf32>
    %99 = arith.mulf %93, %98 : vector<32x256xf32>
    %c0_50 = arith.constant 0 : index
    %c0_51 = arith.constant 0 : index
    %100 = vector.load %arg12[%c0_50, %c0_51] : memref<256x128xf32, #tpu.memory_space<vmem>>, vector<256x128xf32>
    %cst_52 = arith.constant dense<0.000000e+00> : vector<32x128xf32>
    %101 = tpu.matmul %99, %100, %cst_52 {dimension_numbers = #tpu.dot_dimension_numbers<[1], [0], [0], [1], [0, 0, 1, 1], [], []>, precision = #tpu.contract_precision<fp32>} : vector<32x256xf32>, vector<256x128xf32>, vector<32x128xf32> -> vector<32x128xf32>
    %c0_53 = arith.constant 0 : index
    %c0_54 = arith.constant 0 : index
    %102 = vector.load %arg13[%c0_53, %c0_54] : memref<1x128xf32, #tpu.memory_space<vmem>>, vector<1x128xf32>
    %103 = vector.broadcast %102 : vector<1x128xf32> to vector<32x128xf32>
    %104 = arith.addf %101, %103 : vector<32x128xf32>
    %105 = arith.addf %104, %64 : vector<32x128xf32>
    %106 = vector.shape_cast %105 : vector<32x128xf32> to vector<2x16x128xf32>
    %c0_55 = arith.constant 0 : index
    %c0_56 = arith.constant 0 : index
    %c0_57 = arith.constant 0 : index
    %107 = vector.load %arg14[%c0_55, %c0_56, %c0_57] : memref<2x16x128xf32, #tpu.memory_space<vmem>>, vector<2x16x128xf32>
    tpu.vector_store %arg14[%c0_55, %c0_56, %c0_57], %106 {strides = array<i32>} : memref<2x16x128xf32, #tpu.memory_space<vmem>>, vector<2x16x128xf32>,
    return
  }
  func.func @transform_0(%arg0: i32) -> (i32, i32, i32) {
    %c0_i32 = arith.constant 0 : i32
    %c0_i32_0 = arith.constant 0 : i32
    %c0_i32_1 = arith.constant 0 : i32
    return %arg0, %c0_i32, %c0_i32_0 : i32, i32, i32
  }
  func.func @transform_1(%arg0: i32) -> (i32, i32) {
    %c0_i32 = arith.constant 0 : i32
    %c0_i32_0 = arith.constant 0 : i32
    %c0_i32_1 = arith.constant 0 : i32
    return %c0_i32, %c0_i32_0 : i32, i32
  }
  func.func @transform_2(%arg0: i32) -> (i32, i32) {
    %c0_i32 = arith.constant 0 : i32
    %c0_i32_0 = arith.constant 0 : i32
    %c0_i32_1 = arith.constant 0 : i32
    return %c0_i32, %c0_i32_0 : i32, i32
  }
  func.func @transform_3(%arg0: i32) -> (i32, i32) {
    %c0_i32 = arith.constant 0 : i32
    %c0_i32_0 = arith.constant 0 : i32
    %c0_i32_1 = arith.constant 0 : i32
    return %c0_i32, %c0_i32_0 : i32, i32
  }
  func.func @transform_4(%arg0: i32) -> (i32, i32) {
    %c0_i32 = arith.constant 0 : i32
    %c0_i32_0 = arith.constant 0 : i32
    %c0_i32_1 = arith.constant 0 : i32
    return %c0_i32, %c0_i32_0 : i32, i32
  }
  func.func @transform_5(%arg0: i32) -> (i32, i32) {
    %c0_i32 = arith.constant 0 : i32
    %c0_i32_0 = arith.constant 0 : i32
    %c0_i32_1 = arith.constant 0 : i32
    return %c0_i32, %c0_i32_0 : i32, i32
  }
  func.func @transform_6(%arg0: i32) -> (i32, i32) {
    %c0_i32 = arith.constant 0 : i32
    %c0_i32_0 = arith.constant 0 : i32
    %c0_i32_1 = arith.constant 0 : i32
    return %c0_i32, %c0_i32_0 : i32, i32
  }
  func.func @transform_7(%arg0: i32) -> (i32, i32) {
    %c0_i32 = arith.constant 0 : i32
    %c0_i32_0 = arith.constant 0 : i32
    %c0_i32_1 = arith.constant 0 : i32
    return %c0_i32, %c0_i32_0 : i32, i32
  }
  func.func @transform_8(%arg0: i32) -> (i32, i32) {
    %c0_i32 = arith.constant 0 : i32
    %c0_i32_0 = arith.constant 0 : i32
    %c0_i32_1 = arith.constant 0 : i32
    return %c0_i32, %c0_i32_0 : i32, i32
  }
  func.func @transform_9(%arg0: i32) -> (i32, i32) {
    %c0_i32 = arith.constant 0 : i32
    %c0_i32_0 = arith.constant 0 : i32
    %c0_i32_1 = arith.constant 0 : i32
    return %c0_i32, %c0_i32_0 : i32, i32
  }
  func.func @transform_10(%arg0: i32) -> (i32, i32) {
    %c0_i32 = arith.constant 0 : i32
    %c0_i32_0 = arith.constant 0 : i32
    %c0_i32_1 = arith.constant 0 : i32
    return %c0_i32, %c0_i32_0 : i32, i32
  }
  func.func @transform_11(%arg0: i32) -> (i32, i32) {
    %c0_i32 = arith.constant 0 : i32
    %c0_i32_0 = arith.constant 0 : i32
    %c0_i32_1 = arith.constant 0 : i32
    return %c0_i32, %c0_i32_0 : i32, i32
  }
  func.func @transform_12(%arg0: i32) -> (i32, i32) {
    %c0_i32 = arith.constant 0 : i32
    %c0_i32_0 = arith.constant 0 : i32
    %c0_i32_1 = arith.constant 0 : i32
    return %c0_i32, %c0_i32_0 : i32, i32
  }
  func.func @transform_13(%arg0: i32) -> (i32, i32, i32) {
    %c0_i32 = arith.constant 0 : i32
    %c0_i32_0 = arith.constant 0 : i32
    %c0_i32_1 = arith.constant 0 : i32
    return %arg0, %c0_i32, %c0_i32_0 : i32, i32, i32
  }
}

</mosaic_0001>

<bundles_post_ra>
// kernel: tpu_custom_call.1
= control target key start
LH: loop header
LB: loop body
LE: loop exit
PB: predicated region body
PF: predicated region fallthrough
CT: control target
= control target key end

     0   :  { %18 = vsyncpa [#allocation4], 0  ;;  %s7948_s0 = inlined_call_operand.vmem [shape: f32[4,16,128], index: 0, kind: input, shape index: {}]   ;;  %s7949_s1 = inlined_call_operand.vmem [shape: f32[1,128], index: 1, kind: input, shape index: {}]   ;;  %s7950_s2 = inlined_call_operand.vmem [shape: f32[1,128], index: 2, kind: input, shape index: {}]   ;;  %s7951_s3 = inlined_call_operand.vmem [shape: f32[32,16], index: 3, kind: input, shape index: {}]   ;;  %s7952_s4 = inlined_call_operand.vmem [shape: f32[32,1], index: 4, kind: input, shape index: {}]   ;;  %s7953_s5 = inlined_call_operand.vmem [shape: f32[16,32], index: 5, kind: input, shape index: {}]   ;;  %s7954_s6 = inlined_call_operand.vmem [shape: f32[16,1], index: 6, kind: input, shape index: {}]   ;;  %s7955_s7 = inlined_call_operand.vmem [shape: f32[1,128], index: 7, kind: input, shape index: {}]   ;;  %s7956_s8 = inlined_call_operand.vmem [shape: f32[1,128], index: 8, kind: input, shape index: {}]   ;;  %s7957_s9 = inlined_call_operand.hbm [shape: f32[128,256], index: 9, kind: input, shape index: {}]   ;;  %s7958_s10 = inlined_call_operand.vmem [shape: f32[1,256], index: 10, kind: input, shape index: {}]   ;;  %s7959_s11 = inlined_call_operand.hbm [shape: f32[256,128], index: 11, kind: input, shape index: {}]   ;;  %s7960_s12 = inlined_call_operand.vmem [shape: f32[1,128], index: 12, kind: input, shape index: {}]   ;;  %s7961_s13 = inlined_call_operand.hbm [shape: f32[4,16,128], index: 13, kind: output, shape index: {}]  }
   0x1   :  { %19 = vsyncpa [#allocation7], 0 }
   0x2   :  { %20 = vsyncpa [#allocation5], 0 }
   0x3   :  { %22 = vsyncpa [#allocation5 + $0x1], 0  ;;  %s6229_s25 = smov 0   ;;  %s6231_s26 = smov 0  }
   0x4   :  { %s6233_s27 = smov 0   ;;  %s6235_s28 = smov 0  }
   0x5 LB: > { %8209 = sst [smem:[#allocation12_spill]] %s6134_s25  ;;  %s6250_s29 = sadd.s32 4294967295, %s6146_s28   ;;  %s6146_s28 = sphi %s6235_s28, %s8496_s28   ;;  %s6142_s27 = sphi %s6233_s27, %s8498_s27   ;;  %s6138_s26 = sphi %s6231_s26, %s8500_s26   ;;  %s6134_s25 = sphi %s6229_s25, %s8499_s25  }
   0x6   : > { %8210 = sst [smem:[#allocation13_spill]] %s6142_s27  ;;  %s5220_s30 = sadd.s32 4294967294, %s6146_s28  }
   0x7   : > { %s6254_s14 = sadd.s32 1, %s6146_s28   ;;  %s313_s15 = sadd.s32 1, %s6142_s27 }
   0x8   : > { %8211 = sst [smem:[#allocation14_spill]] %s6254_s14  ;;  %s310_s16 = ssub.s32 %s6146_s28, %s6254_s14 }
   0x9   : > { %p323_p0 = scmp.ne.s32.totalorder %s6142_s27, %s6138_s26  ;;  %p311_p1 = scmp.eq.s32.totalorder %s310_s16, 0 }
   0xa   : > { %p324_p2 = scmp.eq.s32.totalorder %s6250_s29, 1  ;;  %p329_p3 = scmp.ne.s32.totalorder %s6138_s26, %s6134_s25 }
   0xb   : > { %p330_p4 = scmp.eq.s32.totalorder %s5220_s30, 1  ;;  %p5221_p7 = scmp.ge.s32.totalorder %s6146_s28, 1 }
   0xc   : > { %s6265_s17 = scalar_select %p311_p1, %s6142_s27, %s313_s15  }
   0xd   : > { %p6267_p5 = por %p324_p2, %p323_p0  ;;  %p6271_p6 = por %p330_p4, %p329_p3 }
   0xe   : > { %8212 = sst [smem:[#allocation15_spill]] %s6265_s17  ;;  %p337_p8 = scmp.lt.s32.totalorder %s6146_s28, 3 }
   0xf   : > { %s8214_s19 = scalar_select %p6271_p6, 1, 0 }
  0x10   : > { %p7963_p9 = scmp.eq.s32.totalorder %s6250_s29, 0  ;;  %p6278_p10 = pnand %p5221_p7, %p337_p8 }
  0x11   : > { %8215 = sst [smem:[#allocation16_spill]] %s8214_s19  ;;  %s6148_s21 = smov [#allocation3]  }
  0x12   : > { %s373_s22 = sshll.u32 %s6148_s21, 4  ;;  %p5916_p11 = pneg %p6278_p10  ;;  %s374_s22 = int_to_ptr.vmem [resolvable:$true] %s373_s22 }
  0x13   : > { %s6149_s24 = smov [#allocation6]   ;;  %s6037_s15 = scalar_lea.vmem %s374_s22, 4096 }
  0x14   : > { %p6286_p12 = pnand %p7963_p9, %p5916_p11  ;;  %s389_s30 = sshll.u32 %s6149_s24, 4  ;;  %s390_s30 = int_to_ptr.vmem [resolvable:$true] %s389_s30 }
  0x15   : > { %p6038_p0 = scmp.ne.s32.totalorder %s374_s22, %s6037_s15  ;;  %p6045_p3 = scmp.lt.s32.totalorder %s374_s22, %s374_s22 }
  0x16   : > { %p6028_p13 = pneg %p6286_p12  ;;  %p6046_p4 = scmp.lt.s32.totalorder %s6037_s15, %s6037_s15 }
  0x18   : > { %p6040_p1 = pnand %p6038_p0, %p6028_p13  ;;  %p6047_p7 = por %p6046_p4, %p6045_p3 }
  0x1a   : > { %p6041_p2 = pneg %p6040_p1 }
  0x1c   : > { %p6048_p8 = pnand %p6047_p7, %p6041_p2 }
  0x1e   : > { %6051 = shalt.err (!%p6048_p8)
}
  0x1f   : > { %s6150_s16 = smov 256   ;;  %s6151_s21 = smov 16  }
  0x20   : > { %5919 = dma.hbm_to_vmem [thread:$0]  (!%p6286_p12), %s7957_s9, 4096, %s374_s22, [#allocation4], %s6150_s16, %s6150_s16, %s6151_s21  }
  0x21   : > { %s6063_s27 = scalar_lea.vmem %s390_s30, 4096  ;;  %p6071_p9 = scmp.lt.s32.totalorder %s390_s30, %s390_s30 }
  0x22   : > { %p6064_p11 = scmp.ne.s32.totalorder %s390_s30, %s6063_s27  ;;  %p6072_p6 = scmp.lt.s32.totalorder %s6063_s27, %s6063_s27 }
  0x24   : > { %p6066_p0 = pnand %p6064_p11, %p6028_p13  ;;  %p6073_p3 = por %p6072_p6, %p6071_p9 }
  0x26   : > { %p6067_p1 = pneg %p6066_p0 }
  0x28   : > { %p6074_p2 = pnand %p6073_p3, %p6067_p1 }
  0x2a   : > { %6077 = shalt.err (!%p6074_p2)
}
  0x2b   : > { %s6152_s15 = smov 128   ;;  %s6153_s14 = smov 8  }
  0x2c   : > { %5922 = dma.hbm_to_vmem [thread:$0]  (!%p6286_p12), %s7959_s11, 4096, %s390_s30, [#allocation7], %s6152_s15, %s6152_s15, %s6153_s14  }
  0x2d   : > { %418 = sbr.rel (%p6278_p10) target bundleno = 2036 (0x7f4), region = 72 }
  0x32   : > { %p8218_p4 = scmp.eq.s32.totalorder %s6250_s29, 0 }
  0x34   : > { %6121 = dma.done.wait (%p8218_p4), [#allocation4], 4096   ;;  %p8219_p13 = pmov %p8218_p4 }
  0x35   : > { %p8220_p6 = pmov %p8218_p4 }
  0x36   : > { %6123 = vsyncadd (%p8219_p13), [#allocation4], 4294963200 }
  0x37   : > { %6125 = dma.done.wait (%p8220_p6), [#allocation7], 4096   ;;  %p8221_p9 = pmov %p8218_p4 }
  0x38   : > { %s5229_s27 = sshll.u32 %s6250_s29, 1  ;;  %v6154_v3 = vmov 0   ;;  %v484_v4 = vld [vmem:[%s7952_s4 + $0x18] sm:$0xff]  ;;  %v483_v14 = vld [vmem:[%s7952_s4 + $0x10] sm:$0xff]  ;;  %v482_v15 = vld [vmem:[%s7952_s4 + $0x8] sm:$0xff]  ;;  %vm588_vm0 = vcmask 130048  }
  0x39   : > { %6127 = vsyncadd (%p8221_p9), [#allocation7], 4294963200  ;;  %p468_p7 = scmp.lt.s32.totalorder %s5229_s27, 3  ;;  %5975 = vset.pattern.permute.xlu1 %v6154_v3  ;;  %5974 = vset.pattern.permute.xlu0 %v6154_v3  ;;  %v475_v16 = vld [vmem:[%s7951_s3] sm:$0xff]  ;;  %v476_v35 = vld [vmem:[%s7951_s3 + $0x8] sm:$0xff]  ;;  %vm1209_vm1 = vcmask 261120  }
  0x3a   : > { %v481_v17 = vld [vmem:[%s7952_s4] sm:$0xff]  ;;  %v590_v18 = vsel %vm588_vm0, %v475_v16, 0  ;;  %v477_v37 = vld [vmem:[%s7951_s3 + $0x10] sm:$0xff]  ;;  %v593_v39 = vsel %vm588_vm0, %v476_v35, 0  ;;  %v478_v42 = vld [vmem:[%s7951_s3 + $0x18] sm:$0xff]  ;;  %s464_s17 = sand.u32 1, %s6138_s26  }
  0x3b   : > { %s8502_s27 = smov (!%p468_p7, %s5229_s27), 3  ;;  %v6356_v19 = vand.u32 4294901760, %v590_v18  ;;  %v505_v28 = vld [vmem:[%s7954_s6] sm:$0xff]  ;;  %v596_v41 = vsel %vm588_vm0, %v477_v37, 0  ;;  %v6392_v44 = vand.u32 4294901760, %v593_v39  ;;  %v599_v46 = vsel %vm588_vm0, %v478_v42, 0 }
  0x3c   : > { %s5243_s25 = sshll.u32 %s8502_s27, 4  ;;  %v6394_v45 = vand.u32 4294901760, %v596_v41  ;;  %v6400_v48 = vand.u32 4294901760, %v599_v46  ;;  %v6405_v50 = vld [vmem:[%s7949_s1] ss:$0 sm:$0xff]  ;;  %s5228_s20 = sshll.u32 %s464_s17, 5 }
  0x3d   : > { %s6322_s19 = scalar_lea.vmem %s7948_s0, %s5243_s25  ;;  %v6359_v20 = vsub.f32 %v590_v18, %v6356_v19  ;;  %5668 = vmatprep.mubr.f32.mxu1 %v6356_v19  ;;  %v6398_v47 = vsub.f32 %v593_v39, %v6392_v44  ;;  %v6413_v53 = vld [vmem:[%s7950_s2] ss:$0 sm:$0xff]  ;;  %s466_s22 = scalar_lea.vmem [#allocation8], %s5228_s20 }
  0x3e   : > { %v6325_v0 = vld [vmem:[%s6322_s19 + $0x8] sm:$0xff]  ;;  %v6329_v1 = vld [vmem:[%s6322_s19] sm:$0xff]  ;;  %v520_v2 = vld [vmem:[%s6322_s19 + $0x18] sm:$0xff]  ;;  %v6408_v51 = vsub.f32 %v596_v41, %v6394_v45  ;;  %v6420_v56 = vsub.f32 %v599_v46, %v6400_v48  ;;  %s5136_s23 = sshll.u32 %s466_s22, 4  ;;  %s5245_s30 = sshll.u32 %s6250_s29, 9  ;;  %s7898_s23 = int_to_ptr.vmem [resolvable:$true] %s5136_s23 }
  0x3f   : > { %525 = vadd.xlane.f32.xlu0 %v6325_v0  ;;  %v519_v13 = vld [vmem:[%s6322_s19 + $0x10] sm:$0xff]  ;;  %v6363_v21 = vand.u32 4294901760, %v6359_v20  ;;  %v6417_v55 = vand.u32 4294901760, %v6398_v47  ;;  %s7904_s21 = scalar_lea.hbm %s7961_s13, %s5245_s30  ;;  %s7908_s24 = scalar_lea.sflag [#allocation5], %s464_s17 }
  0x40   : > { %v6423_v58 = vand.u32 4294901760, %v6408_v51  ;;  %s6078_s15 = scalar_lea.vmem %s7898_s23, 512  ;;  %s6156_s29 = smov [#allocation8]  }
  0x41   : > { %v671_v22 = vsub.f32 %v6359_v20, %v6363_v21  ;;  %v681_v63 = vsub.f32 %v6398_v47, %v6417_v55  ;;  %p6079_p10 = scmp.ne.s32.totalorder %s7898_s23, %s6078_s15  ;;  %s6082_s27 = sshll.u32 %s6156_s29, 4  ;;  %s6083_s27 = int_to_ptr.vmem [resolvable:$false] %s6082_s27 }
  0x42   : > { %v691_v3 = vsub.f32 %v6408_v51, %v6423_v58  ;;  %s6084_s25 = scalar_lea.vmem %s6083_s27, 1024  ;;  %p6085_p11 = scmp.lt.s32.totalorder %s7898_s23, %s6083_s27 }
  0x43   : > { %523 = vadd.xlane.f32.xlu0 %v6329_v1  ;;  %v6367_v23 = vand.u32 4294901760, %v671_v22  ;;  %v479_v22 = vld [vmem:[%s7953_s5] sm:$0xff]  ;;  %p6080_p12 = pnand %p6079_p10, %p6267_p5  ;;  %p6086_p0 = scmp.lt.s32.totalorder %s6084_s25, %s6078_s15 }
  0x45   : > { %5658 = vmatprep.mubr.f32.mxu0 %v6367_v23  ;;  %p6081_p8 = pneg %p6080_p12  ;;  %p6087_p1 = por %p6086_p0, %p6085_p11 }
  0x47   : > { %529 = vadd.xlane.f32.xlu0 %v520_v2  ;;  %p6088_p3 = pnand %p6087_p1, %p6081_p8 }
  0x5d   : > { %502 = vperm.xlu0 %5974, %v484_v4  }
  0xc8   : > { %v526_v5 = vpop.xlane.xlu0 %525 }
  0xc9   : > { %v533_v6 = vmul.f32 0.0078125, %v526_v5 }
  0xcb   : > { %v537_v7 = vsub.f32 %v6325_v0, %v533_v6 }
  0xcc   : > { %v524_v8 = vpop.xlane.xlu0 %523 }
  0xcd   : > { %v532_v9 = vmul.f32 0.0078125, %v524_v8  ;;  %v541_v10 = vmul.f32 %v537_v7, %v537_v7 }
  0xcf   : > { %v6338_v11 = vsub.f32 %v6329_v1, %v532_v9  ;;  %546 = vadd.xlane.f32.xlu1 %v541_v10  ;;  %v6440_v10 = vand.u32 4294901760, %v691_v3 }
  0xd0   : > { %v530_v24 = vpop.xlane.xlu0 %529 }
  0xd1   : > { %v540_v12 = vmul.f32 %v6338_v11, %v6338_v11  ;;  %v535_v25 = vmul.f32 0.0078125, %v530_v24  ;;  %v1211_v24 = vsel %vm1209_vm1, %v479_v22, 0 }
  0xd3   : > { %544 = vadd.xlane.f32.xlu1 %v540_v12  ;;  %v6370_v26 = vsub.f32 %v520_v2, %v535_v25  ;;  %v6431_v2 = vand.u32 4294901760, %v6420_v56  ;;  %v6473_v25 = vand.u32 4294901760, %v1211_v24 }
  0xd5   : > { %v543_v27 = vmul.f32 %v6370_v26, %v6370_v26  ;;  %v701_v9 = vsub.f32 %v6420_v56, %v6431_v2 }
  0xd7   : > { %527 = vadd.xlane.f32.xlu1 %v519_v13 }
  0xe8   : > { %497 = vperm.xlu1 %5975, %v483_v14   ;;  %v6443_v14 = vand.u32 4294901760, %v701_v9 }
  0xec   : > { %492 = vperm.xlu1 %5975, %v482_v15  }
  0xf0   : > { %487 = vperm.xlu1 %5975, %v481_v17   ;;  %v506_v17 = vld [vmem:[%s7954_s6 + $0x8] sm:$0xff] }
 0x114   : > { %550 = vadd.xlane.f32.xlu1 %v543_v27  ;;  %v6476_v27 = vsub.f32 %v1211_v24, %v6473_v25 }
 0x125   : > { %509 = vperm.xlu1 %5975, %v505_v28   ;;  %v6480_v28 = vand.u32 4294901760, %v6476_v27 }
 0x158   : > { %v547_v29 = vpop.xlane.xlu1 %546 }
 0x159   : > { %v553_v30 = vmul.f32 0.0078125, %v547_v29  ;;  %v1288_v29 = vsub.f32 %v6476_v27, %v6480_v28 }
 0x15b   : > { %v557_v31 = vadd.f32 1e-06, %v553_v30  ;;  %v6484_v30 = vand.u32 4294901760, %v1288_v29 }
 0x15c   : > { %v545_v32 = vpop.xlane.xlu1 %544 }
 0x15d   : > { %5976 = vrsqrt.f32 %v557_v31  ;;  %v552_v33 = vmul.f32 0.0078125, %v545_v32 }
 0x15f   : > { %v556_v34 = vadd.f32 1e-06, %v552_v33 }
 0x160   : > { %v528_v36 = vpop.xlane.xlu1 %527 }
 0x161   : > { %5978 = vrsqrt.f32 %v556_v34  ;;  %v534_v38 = vmul.f32 0.0078125, %v528_v36 }
 0x163   : > { %v6384_v40 = vsub.f32 %v519_v13, %v534_v38 }
 0x164   : > { %v6487_v32 = vpop.permute.xlu1 %497 }
 0x165   : > { %v542_v43 = vmul.f32 %v6384_v40, %v6384_v40 }
 0x167   : > { %548 = vadd.xlane.f32.xlu0 %v542_v43 }
 0x168   : > { %v6489_v36 = vpop.permute.xlu1 %492 }
 0x16a   : > { %v5977_v49 = vpop.eup %5976 }
 0x16b   : > { %v565_v52 = vmul.f32 %v5977_v49, %v537_v7  ;;  %v6436_v7 = vand.u32 4294901760, %v681_v63  ;;  %v6494_v49 = vpop.permute.xlu0 %502 }
 0x16c   : > { %v6492_v43 = vpop.permute.xlu1 %487 }
 0x16d   : > { %v575_v54 = vmul.f32 %v6405_v50, %v565_v52 }
 0x16e   : > { %v5979_v57 = vpop.eup %5978 }
 0x16f   : > { %v585_v59 = vadd.f32 %v6413_v53, %v575_v54  ;;  %v564_v60 = vmul.f32 %v5979_v57, %v6338_v11 }
 0x171   : > { %v630_v61 = vand.u32 4294901760, %v585_v59  ;;  %v574_v62 = vmul.f32 %v6405_v50, %v564_v60 }
 0x173   : > { %v584_v4 = vadd.f32 %v6413_v53, %v574_v62  ;;  %5654 = vmatprep.subr.mxu0 %v630_v61  ;;  %v738_v5 = vsub.f32 %v585_v59, %v630_v61 }
 0x174   : > { %5655 = vmatpush3.msra.mxu0 %v630_v61 }
 0x175   : > { %v633_v6 = vand.u32 4294901760, %v584_v4  ;;  %v739_v8 = vand.u32 4294901760, %v738_v5 }
 0x177   : > { %5656 = vmatprep.subr.mxu0 %v633_v6  ;;  %v740_v11 = vsub.f32 %v738_v5, %v739_v8  ;;  %v745_v12 = vsub.f32 %v584_v4, %v633_v6 }
 0x178   : > { %5657 = vmatpush3.msra.mxu0 %v633_v6 }
 0x179   : > { %5659 = vmatmul.mubr.f32.vlgmr.msra.gmra.mxu0 %v6436_v7  ;;  %5674 = vmatprep.subr.mxu0 %v738_v5  ;;  %v741_v13 = vand.u32 4294901760, %v740_v11  ;;  %v746_v15 = vand.u32 4294901760, %v745_v12 }
 0x17a   : > { %5675 = vmatpush3.msra.mxu0 %v738_v5  ;;  %5661 = vmatprep.mubr.f32.mxu0 %v6440_v10 }
 0x17b   : > { %5664 = vmatprep.subr.mxu1 %v741_v13  ;;  %5676 = vmatprep.subr.mxu0 %v745_v12  ;;  %v747_v16 = vsub.f32 %v745_v12, %v746_v15 }
 0x17c   : > { %5665 = vmatpush3.msra.mxu1 %v741_v13  ;;  %5677 = vmatpush3.msra.mxu0 %v745_v12 }
 0x17d   : > { %5662 = vmatmul.mubr.f32.gmra.mxu0 %v6443_v14  ;;  %5694 = vmatprep.subr.mxu0 %v739_v8  ;;  %v748_v18 = vand.u32 4294901760, %v747_v16 }
 0x17e   : > { %5678 = vmatprep.mubr.f32.mxu0 %v6359_v20  ;;  %514 = vperm.xlu0 %5974, %v506_v17  }
 0x17f   : > { %5666 = vmatprep.subr.mxu1 %v748_v18 }
 0x180   : > { %5667 = vmatpush3.msra.mxu1 %v748_v18 }
 0x181   : > { %5669 = vmatmul.mubr.f32.vlgmr.msra.gmra.mxu1 %v6392_v44  ;;  %5679 = vmatmul.mubr.f32.vlgmr.msra.gmra.mxu0 %v6398_v47 }
 0x182   : > { %5684 = vmatprep.subr.mxu1 %v630_v61  ;;  %5695 = vmatpush3.msra.mxu0 %v739_v8 }
 0x183   : > { %5685 = vmatpush3.msra.mxu1 %v630_v61  ;;  %5696 = vmatprep.subr.mxu0 %v746_v15 }
 0x184   : > { %5686 = vmatprep.subr.mxu1 %v633_v6  ;;  %5697 = vmatpush3.msra.mxu0 %v746_v15 }
 0x185   : > { %5671 = vmatprep.mubr.f32.mxu1 %v6394_v45  ;;  %5687 = vmatpush3.msra.mxu1 %v633_v6 }
 0x186   : > { %5672 = vmatmul.mubr.f32.gmra.mxu1 %v6400_v48  ;;  %5704 = vmatprep.subr.mxu1 %v630_v61 }
 0x187   : > { %5681 = vmatprep.mubr.f32.mxu0 %v6408_v51  ;;  %5688 = vmatprep.mubr.f32.mxu1 %v6363_v21 }
 0x188   : > { %5682 = vmatmul.mubr.f32.gmra.mxu0 %v6420_v56 }
 0x189   : > { %5698 = vmatprep.mubr.f32.mxu0 %v6356_v19 }
 0x18a   : > { %5689 = vmatmul.mubr.f32.vlgmr.msra.gmra.mxu1 %v6417_v55 }
 0x18b   : > { %5705 = vmatpush3.msra.mxu1 %v630_v61  ;;  %5691 = vmatprep.mubr.f32.mxu1 %v6423_v58 }
 0x18c   : > { %5706 = vmatprep.subr.mxu1 %v633_v6  ;;  %5699 = vmatmul.mubr.f32.vlgmr.msra.gmra.mxu0 %v6392_v44 }
 0x18d   : > { %5707 = vmatpush3.msra.mxu1 %v633_v6  ;;  %5701 = vmatprep.mubr.f32.mxu0 %v6394_v45 }
 0x18e   : > { %5692 = vmatmul.mubr.f32.gmra.mxu1 %v6431_v2 }
 0x18f   : > { %5708 = vmatprep.mubr.f32.mxu1 %v6356_v19 }
 0x190   : > { %5702 = vmatmul.mubr.f32.gmra.mxu0 %v6400_v48 }
 0x191   : > { %5722 = vmatprep.mubr.f32.mxu0 %v6484_v30 }
 0x192   : > { %5709 = vmatmul.mubr.f32.vlgmr.msra.gmra.mxu1 %v6392_v44 }
 0x193   : > { %5711 = vmatprep.mubr.f32.mxu1 %v6394_v45 }
 0x196   : > { %5712 = vmatmul.mubr.f32.gmra.mxu1 %v6400_v48 }
 0x197   : > { %5733 = vmatprep.mubr.f32.mxu1 %v6473_v25 }
 0x239   : > { %v5660_v31 = vpop.f32.mrf.mxu0 }
 0x23a   : > { %v685_v42 = vadd.f32 %v5660_v31, %v6489_v36 }
 0x23b   : > { %v674_v33 = vpop.f32.mrf.mxu0 }
 0x23c   : > { %v675_v52 = vadd.f32 %v674_v33, %v6492_v43 }
 0x23d   : > { %v5663_v34 = vpop.f32.mrf.mxu0 }
 0x23e   : > { %v705_v60 = vadd.f32 %v5663_v34, %v6494_v49 }
 0x23f   : > { %v694_v35 = vpop.f32.mrf.mxu0 }
 0x240   : > { %v695_v3 = vadd.f32 %v694_v35, %v6487_v32 }
 0x241   : > { %v5670_v37 = vpop.f32.mrf.mxu1  ;;  %v5680_v38 = vpop.f32.mrf.mxu0 }
 0x242   : > { %v792_v54 = vadd.f32 %v5670_v37, %v685_v42 }
 0x243   : > { %v785_v39 = vpop.f32.mrf.mxu1  ;;  %v879_v41 = vpop.f32.mrf.mxu0 }
 0x244   : > { %v786_v61 = vadd.f32 %v785_v39, %v675_v52  ;;  %v887_v4 = vadd.f32 %v5680_v38, %v792_v54 }
 0x246   : > { %v5673_v46 = vpop.f32.mrf.mxu1  ;;  %v880_v9 = vadd.f32 %v879_v41, %v786_v61 }
 0x247   : > { %v804_v5 = vadd.f32 %v5673_v46, %v705_v60 }
 0x248   : > { %v797_v57 = vpop.f32.mrf.mxu1  ;;  %v5683_v59 = vpop.f32.mrf.mxu0 }
 0x249   : > { %v798_v11 = vadd.f32 %v797_v57, %v695_v3  ;;  %v901_v16 = vadd.f32 %v5683_v59, %v804_v5  ;;  %v480_v3 = vld [vmem:[%s7953_s5 + $0x8] sm:$0xff]  ;;  %v549_v5 = vpop.xlane.xlu0 %548 }
 0x24a   : > { %v893_v62 = vpop.f32.mrf.mxu0  ;;  %v5690_v63 = vpop.f32.mrf.mxu1 }
 0x24b   : > { %v984_v12 = vadd.f32 %v5690_v63, %v887_v4  ;;  %v894_v24 = vadd.f32 %v893_v62, %v798_v11  ;;  %v551_v4 = vpop.xlane.xlu1 %550 }
 0x24c   : > { %v975_v6 = vpop.f32.mrf.mxu1  ;;  %v5700_v8 = vpop.f32.mrf.mxu0 }
 0x24d   : > { %v976_v17 = vadd.f32 %v975_v6, %v880_v9  ;;  %v1083_v29 = vadd.f32 %v5700_v8, %v984_v12  ;;  %v1214_v6 = vsel %vm1209_vm1, %v480_v3, 0  ;;  %v555_v8 = vmul.f32 0.0078125, %v551_v4 }
 0x24e   : > { %v5693_v13 = vpop.f32.mrf.mxu1  ;;  %v1076_v15 = vpop.f32.mrf.mxu0  ;;  %v554_v9 = vmul.f32 0.0078125, %v549_v5  ;;  %v6503_v11 = vand.u32 4294901760, %v1214_v6 }
 0x24f   : > { %v1000_v31 = vadd.f32 %v5693_v13, %v901_v16  ;;  %v1077_v34 = vadd.f32 %v1076_v15, %v976_v17  ;;  %v559_v13 = vadd.f32 1e-06, %v555_v8 }
 0x250   : > { %v991_v18 = vpop.f32.mrf.mxu1  ;;  %v5703_v22 = vpop.f32.mrf.mxu0 }
 0x251   : > { %v992_v37 = vadd.f32 %v991_v18, %v894_v24  ;;  %v1095_v42 = vadd.f32 %v5703_v22, %v1000_v31  ;;  %v558_v18 = vadd.f32 1e-06, %v554_v9  ;;  %v6506_v22 = vsub.f32 %v1214_v6, %v6503_v11 }
 0x252   : > { %v5710_v33 = vpop.f32.mrf.mxu1  ;;  %v1088_v38 = vpop.f32.mrf.mxu0 }
 0x253   : > { %v1174_v35 = vadd.f32 %v5710_v33, %v1083_v29  ;;  %v1089_v54 = vadd.f32 %v1088_v38, %v992_v37 }
 0x254   : > { %v1167_v39 = vpop.f32.mrf.mxu1 }
 0x255   : > { %v1194_v46 = vmul.f32 0.70710677, %v1174_v35  ;;  %v1168_v41 = vadd.f32 %v1167_v39, %v1077_v34  ;;  %v1190_v15 = vmul.f32 0.5, %v1174_v35  ;;  %v6511_v35 = vand.u32 4294901760, %v6506_v22 }
 0x256   : > { %v5713_v52 = vpop.f32.mrf.mxu1 }
 0x257   : > { %5980 = verf.f32 %v1194_v46  ;;  %v1193_v57 = vmul.f32 0.70710677, %v1168_v41  ;;  %v1186_v59 = vadd.f32 %v5713_v52, %v1095_v42  ;;  %v1189_v29 = vmul.f32 0.5, %v1168_v41 }
 0x258   : > { %v1179_v60 = vpop.f32.mrf.mxu1  ;;  %v1298_v4 = vsub.f32 %v6506_v22, %v6511_v35 }
 0x259   : > { %5982 = verf.f32 %v1193_v57  ;;  %v1196_v61 = vmul.f32 0.70710677, %v1186_v59  ;;  %v1180_v62 = vadd.f32 %v1179_v60, %v1089_v54  ;;  %v1192_v38 = vmul.f32 0.5, %v1186_v59 }
 0x25a   : > { %v6530_v8 = vand.u32 4294901760, %v1298_v4 }
 0x25b   : > { %5984 = verf.f32 %v1196_v61  ;;  %v1195_v63 = vmul.f32 0.70710677, %v1180_v62  ;;  %v1191_v54 = vmul.f32 0.5, %v1180_v62 }
 0x25d   : > { %5986 = verf.f32 %v1195_v63 }
 0x25e   : > { %5988 = vrsqrt.f32 %v559_v13 }
 0x25f   : > { %5990 = vrsqrt.f32 %v558_v18 }
 0x264   : > { %v5981_v12 = vpop.eup %5980 }
 0x265   : > { %v1202_v16 = vadd.f32 1.0, %v5981_v12 }
 0x266   : > { %v5983_v17 = vpop.eup %5982 }
 0x267   : > { %v1206_v24 = vmul.f32 %v1202_v16, %v1190_v15  ;;  %v1201_v31 = vadd.f32 1.0, %v5983_v17 }
 0x268   : > { %v5985_v33 = vpop.eup %5984 }
 0x269   : > { %v6508_v34 = vand.u32 4294901760, %v1206_v24  ;;  %v1205_v37 = vmul.f32 %v1201_v31, %v1189_v29  ;;  %v1204_v39 = vadd.f32 1.0, %v5985_v33 }
 0x26a   : > { %v5987_v42 = vpop.eup %5986 }
 0x26b   : > { %v6513_v46 = vand.u32 4294901760, %v1205_v37  ;;  %v1208_v52 = vmul.f32 %v1204_v39, %v1192_v38  ;;  %v1203_v57 = vadd.f32 1.0, %v5987_v42  ;;  %v1345_v41 = vsub.f32 %v1206_v24, %v6508_v34  ;;  %v5989_v15 = vpop.eup %5988 }
 0x26c   : > { %v5991_v24 = vpop.eup %5990  ;;  %v567_v33 = vmul.f32 %v5989_v15, %v6370_v26 }
 0x26d   : > { %v6516_v60 = vand.u32 4294901760, %v1208_v52  ;;  %v1207_v61 = vmul.f32 %v1203_v57, %v1191_v54  ;;  %v1352_v63 = vsub.f32 %v1205_v37, %v6513_v46  ;;  %v1346_v6 = vand.u32 4294901760, %v1345_v41 }
 0x26e   : > { %v566_v38 = vmul.f32 %v5991_v24, %v6384_v40  ;;  %v577_v42 = vmul.f32 %v6405_v50, %v567_v33 }
 0x26f   : > { %v1331_v59 = vsub.f32 %v1208_v52, %v6516_v60  ;;  %v6520_v3 = vand.u32 4294901760, %v1207_v61  ;;  %5714 = vmatprep.subr.mxu0 %v6516_v60  ;;  %v1353_v13 = vand.u32 4294901760, %v1352_v63  ;;  %v1347_v18 = vsub.f32 %v1345_v41, %v1346_v6 }
 0x270   : > { %5715 = vmatpush3.msra.mxu0 %v6516_v60  ;;  %v576_v26 = vmul.f32 %v6405_v50, %v566_v38  ;;  %v587_v40 = vadd.f32 %v6413_v53, %v577_v42 }
 0x271   : > { %v1338_v62 = vsub.f32 %v1207_v61, %v6520_v3  ;;  %5716 = vmatprep.subr.mxu0 %v6520_v3  ;;  %v1332_v5 = vand.u32 4294901760, %v1331_v59  ;;  %v1354_v31 = vsub.f32 %v1352_v63, %v1353_v13  ;;  %v1348_v37 = vand.u32 4294901760, %v1347_v18 }
 0x272   : > { %5717 = vmatpush3.msra.mxu0 %v6520_v3  ;;  %v586_v52 = vadd.f32 %v6413_v53, %v576_v26  ;;  %v6548_v50 = vand.u32 4294901760, %v587_v40 }
 0x273   : > { %5718 = vmatprep.subr.mxu0 %v6508_v34  ;;  %v1333_v9 = vsub.f32 %v1331_v59, %v1332_v5  ;;  %v1339_v12 = vand.u32 4294901760, %v1338_v62  ;;  %v1355_v39 = vand.u32 4294901760, %v1354_v31 }
 0x274   : > { %5719 = vmatpush3.msra.mxu0 %v6508_v34  ;;  %v6552_v54 = vand.u32 4294901760, %v586_v52  ;;  %v1885_v53 = vsub.f32 %v587_v40, %v6548_v50 }
 0x275   : > { %5720 = vmatprep.subr.mxu0 %v6513_v46  ;;  %v1334_v16 = vand.u32 4294901760, %v1333_v9  ;;  %v1340_v17 = vsub.f32 %v1338_v62, %v1339_v12 }
 0x276   : > { %5721 = vmatpush3.msra.mxu0 %v6513_v46  ;;  %v1892_v57 = vsub.f32 %v586_v52, %v6552_v54 }
 0x277   : > { %5723 = vmatmul.mubr.f32.vlgmr.msra.gmra.mxu0 %v6530_v8  ;;  %5725 = vmatprep.subr.mxu1 %v1334_v16  ;;  %v1341_v29 = vand.u32 4294901760, %v1340_v17 }
 0x278   : > { %5736 = vmatprep.subr.mxu0 %v1331_v59  ;;  %5726 = vmatpush3.msra.mxu1 %v1334_v16  ;;  %v1893_v61 = vand.u32 4294901760, %v1892_v57 }
 0x279   : > { %5737 = vmatpush3.msra.mxu0 %v1331_v59  ;;  %5727 = vmatprep.subr.mxu1 %v1341_v29 }
 0x27a   : > { %5738 = vmatprep.subr.mxu0 %v1338_v62  ;;  %5728 = vmatpush3.msra.mxu1 %v1341_v29 }
 0x27b   : > { %5739 = vmatpush3.msra.mxu0 %v1338_v62  ;;  %5729 = vmatprep.subr.mxu1 %v1348_v37 }
 0x27c   : > { %5740 = vmatprep.subr.mxu0 %v1345_v41  ;;  %5730 = vmatpush3.msra.mxu1 %v1348_v37 }
 0x27d   : > { %5741 = vmatpush3.msra.mxu0 %v1345_v41  ;;  %5731 = vmatprep.subr.mxu1 %v1355_v39  ;;  %v1886_v41 = vand.u32 4294901760, %v1885_v53 }
 0x27e   : > { %5742 = vmatprep.subr.mxu0 %v1352_v63  ;;  %5732 = vmatpush3.msra.mxu1 %v1355_v39 }
 0x27f   : > { %5743 = vmatpush3.msra.mxu0 %v1352_v63  ;;  %5734 = vmatmul.mubr.f32.vlgmr.msra.gmra.mxu1 %v6503_v11  ;;  %v1894_v63 = vsub.f32 %v1892_v57, %v1893_v61 }
 0x280   : > { %5744 = vmatprep.mubr.f32.mxu0 %v6476_v27  ;;  %5747 = vmatprep.subr.mxu1 %v6516_v60 }
 0x281   : > { %5758 = vmatprep.subr.mxu0 %v1332_v5  ;;  %5745 = vmatmul.mubr.f32.vlgmr.msra.gmra.mxu0 %v6506_v22 }
 0x282   : > { %5748 = vmatpush3.msra.mxu1 %v6516_v60  ;;  %5759 = vmatpush3.msra.mxu0 %v1332_v5 }
 0x283   : > { %5749 = vmatprep.subr.mxu1 %v6520_v3  ;;  %5760 = vmatprep.subr.mxu0 %v1339_v12 }
 0x284   : > { %5750 = vmatpush3.msra.mxu1 %v6520_v3  ;;  %5761 = vmatpush3.msra.mxu0 %v1339_v12 }
 0x285   : > { %5751 = vmatprep.subr.mxu1 %v6508_v34  ;;  %5762 = vmatprep.subr.mxu0 %v1346_v6 }
 0x286   : > { %5752 = vmatpush3.msra.mxu1 %v6508_v34  ;;  %5763 = vmatpush3.msra.mxu0 %v1346_v6 }
 0x287   : > { %5753 = vmatprep.subr.mxu1 %v6513_v46  ;;  %5764 = vmatprep.subr.mxu0 %v1353_v13 }
 0x288   : > { %5754 = vmatpush3.msra.mxu1 %v6513_v46  ;;  %5755 = vmatprep.mubr.f32.mxu1 %v6480_v28 }
 0x289   : > { %5765 = vmatpush3.msra.mxu0 %v1353_v13  ;;  %5766 = vmatprep.mubr.f32.mxu0 %v6473_v25 }
 0x28a   : > { %5756 = vmatmul.mubr.f32.vlgmr.msra.gmra.mxu1 %v6511_v35  ;;  %5767 = vmatmul.mubr.f32.vlgmr.msra.gmra.mxu0 %v6503_v11 }
 0x28b   : > { %5769 = vmatprep.subr.mxu1 %v6516_v60  ;;  %5780 = vmatprep.subr.mxu0 %v6548_v50 }
 0x28c   : > { %5770 = vmatpush3.msra.mxu1 %v6516_v60  ;;  %5781 = vmatpush3.msra.mxu0 %v6548_v50  ;;  %v1887_v60 = vsub.f32 %v1885_v53, %v1886_v41 }
 0x28d   : > { %5771 = vmatprep.subr.mxu1 %v6520_v3  ;;  %5782 = vmatprep.subr.mxu0 %v6552_v54 }
 0x28e   : > { %5772 = vmatpush3.msra.mxu1 %v6520_v3  ;;  %5783 = vmatpush3.msra.mxu0 %v6552_v54 }
 0x28f   : > { %5784 = vmatprep.mubr.f32.mxu0 %v6367_v23  ;;  %5773 = vmatprep.subr.mxu1 %v6508_v34  ;;  %v1888_v23 = vand.u32 4294901760, %v1887_v60 }
 0x290   : > { %5785 = vmatmul.mubr.f32.vlgmr.msra.gmra.mxu0 %v6436_v7  ;;  %5800 = vmatprep.subr.mxu0 %v1885_v53  ;;  %v1895_v7 = vand.u32 4294901760, %v1894_v63 }
 0x291   : > { %5774 = vmatpush3.msra.mxu1 %v6508_v34  ;;  %5801 = vmatpush3.msra.mxu0 %v1885_v53 }
 0x292   : > { %5775 = vmatprep.subr.mxu1 %v6513_v46  ;;  %5802 = vmatprep.subr.mxu0 %v1892_v57 }
 0x293   : > { %5776 = vmatpush3.msra.mxu1 %v6513_v46  ;;  %5777 = vmatprep.mubr.f32.mxu1 %v6473_v25 }
 0x294   : > { %5787 = vmatprep.mubr.f32.mxu0 %v6440_v10  ;;  %5803 = vmatpush3.msra.mxu0 %v1892_v57 }
 0x295   : > { %5778 = vmatmul.mubr.f32.vlgmr.msra.gmra.mxu1 %v6503_v11  ;;  %5788 = vmatmul.mubr.f32.gmra.mxu0 %v6443_v14 }
 0x296   : > { %5790 = vmatprep.subr.mxu1 %v1888_v23  ;;  %5820 = vmatprep.subr.mxu0 %v1886_v41 }
 0x297   : > { %5791 = vmatpush3.msra.mxu1 %v1888_v23  ;;  %5794 = vmatprep.mubr.f32.mxu1 %v6356_v19 }
 0x298   : > { %5792 = vmatprep.subr.mxu1 %v1895_v7  ;;  %5804 = vmatprep.mubr.f32.mxu0 %v6359_v20 }
 0x299   : > { %5793 = vmatpush3.msra.mxu1 %v1895_v7  ;;  %5805 = vmatmul.mubr.f32.vlgmr.msra.gmra.mxu0 %v6398_v47 }
 0x29a   : > { %5795 = vmatmul.mubr.f32.vlgmr.msra.gmra.mxu1 %v6392_v44  ;;  %5810 = vmatprep.subr.mxu1 %v6548_v50 }
 0x29b   : > { %5821 = vmatpush3.msra.mxu0 %v1886_v41  ;;  %5811 = vmatpush3.msra.mxu1 %v6548_v50 }
 0x29c   : > { %5822 = vmatprep.subr.mxu0 %v1893_v61  ;;  %5812 = vmatprep.subr.mxu1 %v6552_v54 }
 0x29d   : > { %5823 = vmatpush3.msra.mxu0 %v1893_v61  ;;  %5797 = vmatprep.mubr.f32.mxu1 %v6394_v45 }
 0x29e   : > { %5813 = vmatpush3.msra.mxu1 %v6552_v54  ;;  %5807 = vmatprep.mubr.f32.mxu0 %v6408_v51 }
 0x29f   : > { %5798 = vmatmul.mubr.f32.gmra.mxu1 %v6400_v48  ;;  %5830 = vmatprep.subr.mxu1 %v6548_v50 }
 0x2a0   : > { %5808 = vmatmul.mubr.f32.gmra.mxu0 %v6420_v56  ;;  %5814 = vmatprep.mubr.f32.mxu1 %v6363_v21 }
 0x2a1   : > { %5824 = vmatprep.mubr.f32.mxu0 %v6356_v19 }
 0x2a3   : > { %5815 = vmatmul.mubr.f32.vlgmr.msra.gmra.mxu1 %v6417_v55  ;;  %v6611_v55 = vpop.permute.xlu0 %514 }
 0x2a4   : > { %5831 = vmatpush3.msra.mxu1 %v6548_v50  ;;  %5825 = vmatmul.mubr.f32.vlgmr.msra.gmra.mxu0 %v6392_v44 }
 0x2a5   : > { %5832 = vmatprep.subr.mxu1 %v6552_v54  ;;  %5817 = vmatprep.mubr.f32.mxu1 %v6423_v58 }
 0x2a6   : > { %5833 = vmatpush3.msra.mxu1 %v6552_v54  ;;  %5827 = vmatprep.mubr.f32.mxu0 %v6394_v45 }
 0x2a7   : > { %5818 = vmatmul.mubr.f32.gmra.mxu1 %v6431_v2 }
 0x2a8   : > { %5828 = vmatmul.mubr.f32.gmra.mxu0 %v6400_v48  ;;  %5834 = vmatprep.mubr.f32.mxu1 %v6356_v19  ;;  %v6614_v19 = vpop.permute.xlu1 %509 }
 0x2a9   : > { %5848 = vmatprep.mubr.f32.mxu0 %v6484_v30 }
 0x2ab   : > { %5835 = vmatmul.mubr.f32.vlgmr.msra.gmra.mxu1 %v6392_v44 }
 0x2ac   : > { %5837 = vmatprep.mubr.f32.mxu1 %v6394_v45 }
 0x2af   : > { %5838 = vmatmul.mubr.f32.gmra.mxu1 %v6400_v48 }
 0x2b0   : > { %5859 = vmatprep.mubr.f32.mxu1 %v6473_v25 }
 0x337   : > { %v5724_v20 = vpop.f32.mrf.mxu0 }
 0x338   : > { %v1302_v56 = vadd.f32 %v5724_v20, %v6611_v55 }
 0x339   : > { %v1291_v21 = vpop.f32.mrf.mxu0 }
 0x33a   : > { %v1292_v44 = vadd.f32 %v1291_v21, %v6614_v19 }
 0x33f   : > { %v5735_v51 = vpop.f32.mrf.mxu1 }
 0x340   : > { %v1399_v10 = vadd.f32 %v5735_v51, %v1302_v56 }
 0x341   : > { %v5746_v47 = vpop.f32.mrf.mxu0  ;;  %v1392_v2 = vpop.f32.mrf.mxu1 }
 0x342   : > { %v1393_v48 = vadd.f32 %v1392_v2, %v1292_v44  ;;  %v1486_v34 = vadd.f32 %v5746_v47, %v1399_v10 }
 0x343   : > { %v1478_v58 = vpop.f32.mrf.mxu0 }
 0x344   : > { %v1479_v59 = vadd.f32 %v1478_v58, %v1393_v48 }
 0x34a   : > { %v5768_v45 = vpop.f32.mrf.mxu0  ;;  %v5757_v14 = vpop.f32.mrf.mxu1 }
 0x34b   : > { %v1571_v3 = vadd.f32 %v5757_v14, %v1486_v34 }
 0x34c   : > { %v1653_v30 = vpop.f32.mrf.mxu0  ;;  %v1562_v46 = vpop.f32.mrf.mxu1 }
 0x34d   : > { %v1563_v62 = vadd.f32 %v1562_v46, %v1479_v59  ;;  %v1660_v6 = vadd.f32 %v5768_v45, %v1571_v3 }
 0x34f   : > { %v1654_v13 = vadd.f32 %v1653_v30, %v1563_v62 }
 0x350   : > { %v5786_v4 = vpop.f32.mrf.mxu0 }
 0x351   : > { %v1832_v39 = vadd.f32 %v5786_v4, %v6489_v36 }
 0x352   : > { %v1821_v5 = vpop.f32.mrf.mxu0 }
 0x353   : > { %v1822_v26 = vadd.f32 %v1821_v5, %v6492_v43 }
 0x355   : > { %v5779_v9 = vpop.f32.mrf.mxu1  ;;  %v5789_v12 = vpop.f32.mrf.mxu0 }
 0x356   : > { %v1741_v15 = vadd.f32 %v5779_v9, %v1660_v6  ;;  %v1852_v50 = vadd.f32 %v5789_v12, %v6494_v49 }
 0x357   : > { %v1734_v16 = vpop.f32.mrf.mxu1  ;;  %v1841_v17 = vpop.f32.mrf.mxu0 }
 0x358   : > { %v6618_v18 = vadd.f32 %v1741_v15, %v6325_v0  ;;  %v1735_v24 = vadd.f32 %v1734_v16, %v1654_v13  ;;  %v1842_v57 = vadd.f32 %v1841_v17, %v6487_v32 }
 0x359   : > { %v5806_v29 = vpop.f32.mrf.mxu0 }
 0x35a   : > { %8222 = vst [vmem:[#allocation17_spill] sm:$0xff] %v6618_v18  ;;  %v6621_v31 = vadd.f32 %v1735_v24, %v6329_v1  ;;  %v5796_v33 = vpop.f32.mrf.mxu1  ;;  %2896 = vadd.xlane.f32.xlu0 %v6618_v18 }
 0x35b   : > { %v2026_v38 = vpop.f32.mrf.mxu0  ;;  %v1939_v40 = vadd.f32 %v5796_v33, %v1832_v39 }
 0x35c   : > { %8223 = vst [vmem:[#allocation18_spill] sm:$0xff] %v6621_v31  ;;  %v1932_v37 = vpop.f32.mrf.mxu1  ;;  %2894 = vadd.xlane.f32.xlu1 %v6621_v31 }
 0x35d   : > { %v1933_v54 = vadd.f32 %v1932_v37, %v1822_v26  ;;  %v2034_v41 = vadd.f32 %v5806_v29, %v1939_v40 }
 0x35f   : > { %v5799_v42 = vpop.f32.mrf.mxu1  ;;  %v2027_v23 = vadd.f32 %v2026_v38, %v1933_v54 }
 0x360   : > { %v5809_v0 = vpop.f32.mrf.mxu0  ;;  %v1951_v61 = vadd.f32 %v5799_v42, %v1852_v50 }
 0x361   : > { %v1944_v52 = vpop.f32.mrf.mxu1 }
 0x362   : > { %v2040_v1 = vpop.f32.mrf.mxu0  ;;  %v1945_v7 = vadd.f32 %v1944_v52, %v1842_v57  ;;  %v2048_v43 = vadd.f32 %v5809_v0, %v1951_v61 }
 0x363   : > { %v5816_v53 = vpop.f32.mrf.mxu1 }
 0x364   : > { %v5826_v60 = vpop.f32.mrf.mxu0  ;;  %v2131_v36 = vadd.f32 %v5816_v53, %v2034_v41  ;;  %v2041_v58 = vadd.f32 %v2040_v1, %v1945_v7 }
 0x365   : > { %v2122_v63 = vpop.f32.mrf.mxu1 }
 0x366   : > { %v2223_v20 = vpop.f32.mrf.mxu0  ;;  %v2123_v47 = vadd.f32 %v2122_v63, %v2027_v23  ;;  %v2230_v49 = vadd.f32 %v5826_v60, %v2131_v36 }
 0x367   : > { %v5819_v21 = vpop.f32.mrf.mxu1 }
 0x368   : > { %v5829_v56 = vpop.f32.mrf.mxu0  ;;  %v2147_v2 = vadd.f32 %v5819_v21, %v2048_v43  ;;  %v2224_v10 = vadd.f32 %v2223_v20, %v2123_v47 }
 0x369   : > { %v2138_v51 = vpop.f32.mrf.mxu1 }
 0x36a   : > { %v2139_v45 = vadd.f32 %v2138_v51, %v2041_v58  ;;  %v2235_v14 = vpop.f32.mrf.mxu0  ;;  %v2242_v30 = vadd.f32 %v5829_v56, %v2147_v2 }
 0x36b   : > { %v5836_v44 = vpop.f32.mrf.mxu1 }
 0x36c   : > { %v2321_v32 = vadd.f32 %v5836_v44, %v2230_v49  ;;  %v2236_v3 = vadd.f32 %v2235_v14, %v2139_v45 }
 0x36d   : > { %v2314_v48 = vpop.f32.mrf.mxu1 }
 0x36e   : > { %v2341_v34 = vmul.f32 0.70710677, %v2321_v32  ;;  %v2315_v46 = vadd.f32 %v2314_v48, %v2224_v10  ;;  %v2337_v15 = vmul.f32 0.5, %v2321_v32 }
 0x36f   : > { %v5839_v59 = vpop.f32.mrf.mxu1 }
 0x370   : > { %5992 = verf.f32 %v2341_v34  ;;  %v2340_v4 = vmul.f32 0.70710677, %v2315_v46  ;;  %v2333_v62 = vadd.f32 %v5839_v59, %v2242_v30  ;;  %v2336_v29 = vmul.f32 0.5, %v2315_v46 }
 0x371   : > { %v2326_v5 = vpop.f32.mrf.mxu1 }
 0x372   : > { %5994 = verf.f32 %v2340_v4  ;;  %v2343_v6 = vmul.f32 0.70710677, %v2333_v62  ;;  %v2327_v9 = vadd.f32 %v2326_v5, %v2236_v3  ;;  %v2339_v42 = vmul.f32 0.5, %v2333_v62 }
 0x374   : > { %5996 = verf.f32 %v2343_v6  ;;  %v2342_v12 = vmul.f32 0.70710677, %v2327_v9  ;;  %v2338_v50 = vmul.f32 0.5, %v2327_v9 }
 0x376   : > { %5998 = verf.f32 %v2342_v12 }
 0x37d   : > { %v5993_v13 = vpop.eup %5992 }
 0x37e   : > { %v2349_v16 = vadd.f32 1.0, %v5993_v13 }
 0x37f   : > { %v5995_v17 = vpop.eup %5994 }
 0x380   : > { %v2353_v24 = vmul.f32 %v2349_v16, %v2337_v15  ;;  %v2348_v33 = vadd.f32 1.0, %v5995_v17  ;;  %v6024_v15 = vld [vmem:[%s6322_s19 + $0x10] sm:$0xff] }
 0x381   : > { %v5997_v37 = vpop.eup %5996 }
 0x382   : > { %v6629_v38 = vand.u32 4294901760, %v2353_v24  ;;  %v2352_v39 = vmul.f32 %v2348_v33, %v2336_v29  ;;  %v2351_v26 = vadd.f32 1.0, %v5997_v37  ;;  %v6025_v33 = vld [vmem:[%s6322_s19 + $0x18] sm:$0xff] }
 0x383   : > { %v5999_v40 = vpop.eup %5998 }
 0x384   : > { %v6631_v0 = vand.u32 4294901760, %v2352_v39  ;;  %v2355_v52 = vmul.f32 %v2351_v26, %v2339_v42  ;;  %v2350_v54 = vadd.f32 1.0, %v5999_v40  ;;  %v2485_v1 = vsub.f32 %v2353_v24, %v6629_v38  ;;  %v2989_v24 = vld [vmem:[#allocation3 + $0xf8] sm:$0xff]  ;;  %v2987_v40 = vld [vmem:[#allocation3 + $0xe8] sm:$0xff] }
 0x386   : > { %v6634_v53 = vand.u32 4294901760, %v2355_v52  ;;  %v2354_v57 = vmul.f32 %v2350_v54, %v2338_v50  ;;  %v2492_v41 = vsub.f32 %v2352_v39, %v6631_v0  ;;  %v2486_v7 = vand.u32 4294901760, %v2485_v1  ;;  %v2988_v39 = vld [vmem:[#allocation3 + $0xf0] sm:$0xff]  ;;  %v2986_v50 = vld [vmem:[#allocation3 + $0xe0] sm:$0xff] }
 0x387   : > { %v6692_v26 = vand.u32 4294901760, %v2988_v39 }
 0x388   : > { %v2471_v61 = vsub.f32 %v2355_v52, %v6634_v53  ;;  %v6638_v60 = vand.u32 4294901760, %v2354_v57  ;;  %5840 = vmatprep.subr.mxu0 %v6634_v53  ;;  %v2493_v21 = vand.u32 4294901760, %v2492_v41  ;;  %v2487_v51 = vsub.f32 %v2485_v1, %v2486_v7 }
 0x389   : > { %5841 = vmatpush3.msra.mxu0 %v6634_v53  ;;  %v6698_v52 = vand.u32 4294901760, %v2987_v40  ;;  %v6702_v54 = vsub.f32 %v2988_v39, %v6692_v26 }
 0x38a   : > { %v2478_v63 = vsub.f32 %v2354_v57, %v6638_v60  ;;  %5842 = vmatprep.subr.mxu0 %v6638_v60  ;;  %v2472_v23 = vand.u32 4294901760, %v2471_v61  ;;  %v2494_v58 = vsub.f32 %v2492_v41, %v2493_v21  ;;  %v2488_v49 = vand.u32 4294901760, %v2487_v51 }
 0x38b   : > { %5843 = vmatpush3.msra.mxu0 %v6638_v60 }
 0x38c   : > { %5844 = vmatprep.subr.mxu0 %v6629_v38  ;;  %v2473_v36 = vsub.f32 %v2471_v61, %v2472_v23  ;;  %v2479_v20 = vand.u32 4294901760, %v2478_v63  ;;  %v2495_v2 = vand.u32 4294901760, %v2494_v58  ;;  %v2982_v58 = vld [vmem:[#allocation3 + $0xc0] sm:$0xff] }
 0x38d   : > { %5845 = vmatpush3.msra.mxu0 %v6629_v38 }
 0x38e   : > { %5846 = vmatprep.subr.mxu0 %v6631_v0  ;;  %v2474_v43 = vand.u32 4294901760, %v2473_v36  ;;  %v2480_v47 = vsub.f32 %v2478_v63, %v2479_v20 }
 0x38f   : > { %5847 = vmatpush3.msra.mxu0 %v6631_v0 }
 0x390   : > { %5849 = vmatmul.mubr.f32.vlgmr.msra.gmra.mxu0 %v6530_v8  ;;  %5851 = vmatprep.subr.mxu1 %v2474_v43  ;;  %v2481_v56 = vand.u32 4294901760, %v2480_v47 }
 0x391   : > { %5862 = vmatprep.subr.mxu0 %v2471_v61  ;;  %5852 = vmatpush3.msra.mxu1 %v2474_v43 }
 0x392   : > { %5863 = vmatpush3.msra.mxu0 %v2471_v61  ;;  %5853 = vmatprep.subr.mxu1 %v2481_v56  ;;  %v6711_v61 = vsub.f32 %v2987_v40, %v6698_v52  ;;  %v2975_v40 = vld [vmem:[#allocation3 + $0x88] sm:$0xff] }
 0x393   : > { %5864 = vmatprep.subr.mxu0 %v2478_v63  ;;  %5854 = vmatpush3.msra.mxu1 %v2481_v56 }
 0x394   : > { %5865 = vmatpush3.msra.mxu0 %v2478_v63  ;;  %5855 = vmatprep.subr.mxu1 %v2488_v49  ;;  %v2984_v63 = vld [vmem:[#allocation3 + $0xd0] sm:$0xff]  ;;  %v7981_v47 = vand.u32 4294901760, %v6711_v61 }
 0x395   : > { %5866 = vmatprep.subr.mxu0 %v2485_v1  ;;  %5856 = vmatpush3.msra.mxu1 %v2488_v49 }
 0x396   : > { %5867 = vmatpush3.msra.mxu0 %v2485_v1  ;;  %5857 = vmatprep.subr.mxu1 %v2495_v2  ;;  %v6704_v1 = vand.u32 4294901760, %v2986_v50 }
 0x397   : > { %5868 = vmatprep.subr.mxu0 %v2492_v41  ;;  %5858 = vmatpush3.msra.mxu1 %v2495_v2 }
 0x398   : > { %5869 = vmatpush3.msra.mxu0 %v2492_v41  ;;  %5860 = vmatmul.mubr.f32.vlgmr.msra.gmra.mxu1 %v6503_v11  ;;  %v6720_v36 = vsub.f32 %v2986_v50, %v6704_v1 }
 0x399   : > { %5870 = vmatprep.mubr.f32.mxu0 %v6476_v27  ;;  %5873 = vmatprep.subr.mxu1 %v6634_v53 }
 0x39a   : > { %5884 = vmatprep.subr.mxu0 %v2472_v23  ;;  %5871 = vmatmul.mubr.f32.vlgmr.msra.gmra.mxu0 %v6506_v22  ;;  %v7980_v2 = vand.u32 4294901760, %v6720_v36 }
 0x39b   : > { %5874 = vmatpush3.msra.mxu1 %v6634_v53  ;;  %5885 = vmatpush3.msra.mxu0 %v2472_v23 }
 0x39c   : > { %5875 = vmatprep.subr.mxu1 %v6638_v60  ;;  %5886 = vmatprep.subr.mxu0 %v2479_v20 }
 0x39d   : > { %5876 = vmatpush3.msra.mxu1 %v6638_v60  ;;  %5887 = vmatpush3.msra.mxu0 %v2479_v20  ;;  %v6722_v20 = vand.u32 4294901760, %v2984_v63 }
 0x39e   : > { %5877 = vmatprep.subr.mxu1 %v6629_v38  ;;  %5888 = vmatprep.subr.mxu0 %v2486_v7 }
 0x39f   : > { %5878 = vmatpush3.msra.mxu1 %v6629_v38  ;;  %5889 = vmatpush3.msra.mxu0 %v2486_v7  ;;  %v7983_v7 = vand.u32 4294901760, %v6702_v54 }
 0x3a0   : > { %5879 = vmatprep.subr.mxu1 %v6631_v0  ;;  %5890 = vmatprep.subr.mxu0 %v2493_v21 }
 0x3a1   : > { %5880 = vmatpush3.msra.mxu1 %v6631_v0  ;;  %5881 = vmatprep.mubr.f32.mxu1 %v6480_v28  ;;  %v3152_v49 = vsub.f32 %v6702_v54, %v7983_v7  ;;  %v2965_v7 = vld [vmem:[#allocation3 + $0x38] sm:$0xff] }
 0x3a2   : > { %5891 = vmatpush3.msra.mxu0 %v2493_v21  ;;  %5882 = vmatmul.mubr.f32.vlgmr.msra.gmra.mxu1 %v6511_v35  ;;  %v2983_v21 = vld [vmem:[#allocation3 + $0xc8] sm:$0xff] }
 0x3a3   : > { %5895 = vmatprep.subr.mxu1 %v6634_v53  ;;  %5892 = vmatprep.mubr.f32.mxu0 %v6473_v25  ;;  %v6732_v56 = vand.u32 4294901760, %v2983_v21 }
 0x3a4   : > { %5896 = vmatpush3.msra.mxu1 %v6634_v53  ;;  %5893 = vmatmul.mubr.f32.vlgmr.msra.gmra.mxu0 %v6503_v11  ;;  %v2985_v53 = vld [vmem:[#allocation3 + $0xd8] sm:$0xff] }
 0x3a5   : > { %5897 = vmatprep.subr.mxu1 %v6638_v60  ;;  %5903 = vmatprep.mubr.f32.mxu1 %v6473_v25 }
 0x3a6   : > { %5898 = vmatpush3.msra.mxu1 %v6638_v60  ;;  %v6713_v60 = vand.u32 4294901760, %v2985_v53 }
 0x3a7   : > { %5899 = vmatprep.subr.mxu1 %v6629_v38 }
 0x3a8   : > { %5900 = vmatpush3.msra.mxu1 %v6629_v38  ;;  %v6687_v38 = vand.u32 4294901760, %v2989_v24  ;;  %v6730_v51 = vsub.f32 %v2985_v53, %v6713_v60 }
 0x3a9   : > { %5901 = vmatprep.subr.mxu1 %v6631_v0 }
 0x3aa   : > { %5902 = vmatpush3.msra.mxu1 %v6631_v0  ;;  %v6696_v0 = vsub.f32 %v2989_v24, %v6687_v38  ;;  %3003 = vmatprep.subr.mxu0 %v6687_v38 }
 0x3ab   : > { %5904 = vmatmul.mubr.f32.vlgmr.msra.gmra.mxu1 %v6503_v11  ;;  %3005 = vmatpush1.msra.mxu0 %v6692_v26 }
 0x3ac   : > { %v7984_v41 = vand.u32 4294901760, %v6696_v0  ;;  %3007 = vmatprep.subr.mxu0 %v6698_v52 }
 0x3ad   : > { %3009 = vmatpush1.msra.mxu0 %v6704_v1 }
 0x3ae   : > { %v3146_v43 = vsub.f32 %v6696_v0, %v7984_v41  ;;  %3011 = vmatprep.subr.mxu0 %v6713_v60 }
 0x3af   : > { %3013 = vmatpush1.msra.mxu0 %v6722_v20 }
 0x3b0   : > { %3015 = vmatprep.subr.mxu0 %v6732_v56 }
 0x3e5   : > { %v2895_v5 = vpop.xlane.xlu1 %2894 }
 0x3e6   : > { %v2902_v12 = vmul.f32 0.0078125, %v2895_v5 }
 0x3e8   : > { %v6682_v29 = vsub.f32 %v6621_v31, %v2902_v12 }
 0x3ea   : > { %v2910_v57 = vmul.f32 %v6682_v29, %v6682_v29 }
 0x450   : > { %v5850_v27 = vpop.f32.mrf.mxu0 }
 0x451   : > { %v2442_v25 = vadd.f32 %v5850_v27, %v6611_v55  ;;  %v6740_v27 = vsub.f32 %v2984_v63, %v6722_v20 }
 0x452   : > { %v2431_v22 = vpop.f32.mrf.mxu0 }
 0x453   : > { %v2432_v44 = vadd.f32 %v2431_v22, %v6614_v19  ;;  %v2897_v19 = vpop.xlane.xlu0 %2896  ;;  %v2981_v22 = vld [vmem:[#allocation3 + $0xb8] sm:$0xff] }
 0x454   : > { %v2903_v17 = vmul.f32 0.0078125, %v2897_v19  ;;  %v2977_v19 = vld [vmem:[#allocation3 + $0x98] sm:$0xff] }
 0x455   : > { %v6795_v63 = vand.u32 4294901760, %v2977_v19 }
 0x456   : > { %v6690_v42 = vsub.f32 %v6618_v18, %v2903_v17 }
 0x458   : > { %v5861_v28 = vpop.f32.mrf.mxu1  ;;  %v2911_v23 = vmul.f32 %v6690_v42, %v6690_v42 }
 0x459   : > { %v2539_v14 = vadd.f32 %v5861_v28, %v2442_v25  ;;  %v6742_v28 = vand.u32 4294901760, %v2982_v58  ;;  %v6750_v25 = vsub.f32 %v2983_v21, %v6732_v56 }
 0x45a   : > { %v2532_v35 = vpop.f32.mrf.mxu1  ;;  %v5872_v8 = vpop.f32.mrf.mxu0 }
 0x45b   : > { %v2533_v10 = vadd.f32 %v2532_v35, %v2432_v44  ;;  %v2626_v46 = vadd.f32 %v5872_v8, %v2539_v14  ;;  %v3147_v35 = vand.u32 4294901760, %v3146_v43  ;;  %v3158_v8 = vsub.f32 %v6711_v61, %v7981_v47  ;;  %3017 = vmatpush1.msra.mxu0 %v6742_v28 }
 0x45c   : > { %v2618_v32 = vpop.f32.mrf.mxu0  ;;  %v7978_v44 = vand.u32 4294901760, %v6730_v51  ;;  %v7977_v14 = vand.u32 4294901760, %v6740_v27 }
 0x45d   : > { %v2619_v34 = vadd.f32 %v2618_v32, %v2533_v10  ;;  %v2980_v10 = vld [vmem:[#allocation3 + $0xb0] sm:$0xff]  ;;  %v3164_v32 = vsub.f32 %v6720_v36, %v7980_v2  ;;  %3148 = vmatprep.subr.mxu1 %v3147_v35 }
 0x462   : > { %v5883_v45 = vpop.f32.mrf.mxu1 }
 0x463   : > { %v2711_v3 = vadd.f32 %v5883_v45, %v2626_v46  ;;  %v3153_v45 = vand.u32 4294901760, %v3152_v49  ;;  %v3170_v46 = vsub.f32 %v6730_v51, %v7978_v44 }
 0x464   : > { %v2702_v48 = vpop.f32.mrf.mxu1  ;;  %v5894_v30 = vpop.f32.mrf.mxu0 }
 0x465   : > { %v2703_v59 = vadd.f32 %v2702_v48, %v2619_v34  ;;  %v2800_v9 = vadd.f32 %v5894_v30, %v2711_v3  ;;  %v6758_v48 = vsub.f32 %v2982_v58, %v6742_v28  ;;  %v2979_v30 = vld [vmem:[#allocation3 + $0xa8] sm:$0xff]  ;;  %v3159_v34 = vand.u32 4294901760, %v3158_v8  ;;  %v2978_v3 = vld [vmem:[#allocation3 + $0xa0] sm:$0xff]  ;;  %3154 = vmatpush1.msra.mxu1 %v3153_v45 }
 0x466   : > { %v2793_v11 = vpop.f32.mrf.mxu0  ;;  %v6788_v39 = vand.u32 4294901760, %v2978_v3  ;;  %v6810_v8 = vsub.f32 %v2977_v19, %v6795_v63 }
 0x467   : > { %v2794_v62 = vadd.f32 %v2793_v11, %v2703_v59  ;;  %v7975_v59 = vand.u32 4294901760, %v6750_v25  ;;  %v6765_v11 = vand.u32 4294901760, %v2981_v22  ;;  %v7973_v5 = vand.u32 4294901760, %v6758_v48  ;;  %3160 = vmatprep.subr.mxu1 %v3159_v34 }
 0x468   : > { %v6800_v58 = vsub.f32 %v2978_v3, %v6788_v39 }
 0x469   : > { %v6777_v12 = vsub.f32 %v2981_v22, %v6765_v11  ;;  %3019 = vmatprep.subr.mxu0 %v6765_v11  ;;  %v3188_v24 = vsub.f32 %v6758_v48, %v7973_v5 }
 0x46b   : > { %v5905_v4 = vpop.f32.mrf.mxu1  ;;  %v7971_v53 = vand.u32 4294901760, %v6777_v12  ;;  %v3189_v21 = vand.u32 4294901760, %v3188_v24 }
 0x46c   : > { %v2881_v13 = vadd.f32 %v5905_v4, %v2800_v9  ;;  %v3165_v4 = vand.u32 4294901760, %v3164_v32  ;;  %v3171_v9 = vand.u32 4294901760, %v3170_v46  ;;  %v7969_v32 = vand.u32 4294901760, %v6800_v58  ;;  %v2973_v46 = vld [vmem:[#allocation3 + $0x78] sm:$0xff] }
 0x46d   : > { %v2874_v6 = vpop.f32.mrf.mxu1  ;;  %v3194_v22 = vsub.f32 %v6777_v12, %v7971_v53 }
 0x46e   : > { %v2875_v55 = vadd.f32 %v2874_v6, %v2794_v62  ;;  %v6685_v37 = vadd.f32 %v6025_v33, %v2881_v13  ;;  %v3176_v62 = vsub.f32 %v6740_v27, %v7977_v14  ;;  %v6771_v6 = vand.u32 4294901760, %v2980_v10  ;;  %3166 = vmatpush1.msra.mxu1 %v3165_v4 }
 0x46f   : > { %v6779_v13 = vand.u32 4294901760, %v2979_v30  ;;  %3172 = vmatprep.subr.mxu1 %v3171_v9  ;;  %v3195_v3 = vand.u32 4294901760, %v3194_v22  ;;  %v2972_v9 = vld [vmem:[#allocation3 + $0x70] sm:$0xff] }
 0x470   : > { %v6678_v16 = vadd.f32 %v6024_v15, %v2875_v55  ;;  %8225 = vst [vmem:[#allocation20_spill] sm:$0xff] %v6685_v37  ;;  %v3182_v55 = vsub.f32 %v6750_v25, %v7975_v59  ;;  %v2976_v15 = vld [vmem:[#allocation3 + $0x90] sm:$0xff]  ;;  %v3177_v17 = vand.u32 4294901760, %v3176_v62  ;;  %v6786_v33 = vsub.f32 %v2980_v10, %v6771_v6  ;;  %3021 = vmatpush1.msra.mxu0 %v6771_v6 }
 0x471   : > { %3023 = vmatprep.subr.mxu0 %v6779_v13  ;;  %v6802_v49 = vand.u32 4294901760, %v2976_v15  ;;  %v6812_v10 = vand.u32 4294901760, %v2975_v40  ;;  %v7972_v62 = vand.u32 4294901760, %v6810_v8  ;;  %v6851_v53 = vand.u32 4294901760, %v2972_v9 }
 0x472   : > { %8224 = vst [vmem:[#allocation19_spill] sm:$0xff] %v6678_v16  ;;  %2898 = vadd.xlane.f32.xlu1 %v6678_v16  ;;  %v3183_v50 = vand.u32 4294901760, %v3182_v55  ;;  %3178 = vmatpush1.msra.mxu1 %v3177_v17  ;;  %v7970_v43 = vand.u32 4294901760, %v6786_v33 }
 0x473   : > { %3025 = vmatpush1.msra.mxu0 %v6788_v39  ;;  %v6830_v19 = vsub.f32 %v2975_v40, %v6812_v10  ;;  %v3218_v40 = vsub.f32 %v6810_v8, %v7972_v62 }
 0x474   : > { %3184 = vmatprep.subr.mxu1 %v3183_v50  ;;  %3027 = vmatprep.subr.mxu0 %v6795_v63  ;;  %v3200_v45 = vsub.f32 %v6786_v33, %v7970_v43  ;;  %v2971_v50 = vld [vmem:[#allocation3 + $0x68] sm:$0xff] }
 0x475   : > { %3190 = vmatpush1.msra.mxu1 %v3189_v21  ;;  %3029 = vmatpush1.msra.mxu0 %v6802_v49  ;;  %v7976_v22 = vand.u32 4294901760, %v6830_v19 }
 0x476   : > { %2900 = vadd.xlane.f32.xlu1 %v6685_v37  ;;  %3031 = vmatprep.subr.mxu0 %v6812_v10  ;;  %v3201_v55 = vand.u32 4294901760, %v3200_v45  ;;  %v6845_v45 = vand.u32 4294901760, %v2973_v46 }
 0x477   : > { %3196 = vmatprep.subr.mxu1 %v3195_v3  ;;  %v2969_v3 = vld [vmem:[#allocation3 + $0x58] sm:$0xff]  ;;  %v3230_v62 = vsub.f32 %v6830_v19, %v7976_v22  ;;  %v2967_v22 = vld [vmem:[#allocation3 + $0x48] sm:$0xff] }
 0x478   : > { %3202 = vmatpush1.msra.mxu1 %v3201_v55  ;;  %v6857_v5 = vsub.f32 %v2973_v46, %v6845_v45  ;;  %v6859_v55 = vand.u32 4294901760, %v2971_v50 }
 0x479   : > { %v3231_v46 = vand.u32 4294901760, %v3230_v62 }
 0x47a   : > { %2914 = vadd.xlane.f32.xlu1 %v2910_v57  ;;  %v6793_v57 = vsub.f32 %v2979_v30, %v6779_v13  ;;  %v6820_v30 = vsub.f32 %v2976_v15, %v6802_v49  ;;  %v3212_v15 = vsub.f32 %v6800_v58, %v7969_v32  ;;  %8227 = vst [vmem:[#allocation22_spill] sm:$0xff] %v6857_v5  ;;  %v7982_v14 = vand.u32 4294901760, %v6857_v5 }
 0x47b   : > { %v6873_v44 = vsub.f32 %v2971_v50, %v6859_v55 }
 0x47c   : > { %v7968_v35 = vand.u32 4294901760, %v6793_v57  ;;  %v7974_v17 = vand.u32 4294901760, %v6820_v30  ;;  %v3213_v32 = vand.u32 4294901760, %v3212_v15  ;;  %v2968_v15 = vld [vmem:[#allocation3 + $0x50] sm:$0xff]  ;;  %v3242_v62 = vsub.f32 %v6857_v5, %v7982_v14  ;;  %v2963_v5 = vld [vmem:[#allocation3 + $0x28] sm:$0xff] }
 0x47d   : > { %8229 = vst [vmem:[#allocation24_spill] sm:$0xff] %v6873_v44  ;;  %v6882_v47 = vand.u32 4294901760, %v2968_v15  ;;  %v7992_v50 = vand.u32 4294901760, %v6873_v44 }
 0x47e   : > { %2916 = vadd.xlane.f32.xlu1 %v2911_v23  ;;  %v2974_v23 = vld [vmem:[#allocation3 + $0x80] sm:$0xff]  ;;  %v3206_v4 = vsub.f32 %v6793_v57, %v7968_v35 }
 0x47f   : > { %v6822_v34 = vand.u32 4294901760, %v2974_v23  ;;  %v2970_v35 = vld [vmem:[#allocation3 + $0x60] sm:$0xff]  ;;  %v3254_v41 = vsub.f32 %v6873_v44, %v7992_v50  ;;  %v6925_v44 = vand.u32 4294901760, %v2965_v7 }
 0x480   : > { %v3207_v21 = vand.u32 4294901760, %v3206_v4  ;;  %v3219_v4 = vand.u32 4294901760, %v3218_v40  ;;  %v6868_v40 = vand.u32 4294901760, %v2970_v35 }
 0x481   : > { %v6838_v24 = vsub.f32 %v2974_v23, %v6822_v34  ;;  %3033 = vmatpush1.msra.mxu0 %v6822_v34  ;;  %v3224_v23 = vsub.f32 %v6820_v30, %v7974_v17  ;;  %v3255_v50 = vand.u32 4294901760, %v3254_v41  ;;  %8236 = vst [vmem:[#allocation31_spill] sm:$0xff] %v6925_v44  ;;  %v2961_v41 = vld [vmem:[#allocation3 + $0x18] sm:$0xff] }
 0x482   : > { %3208 = vmatprep.subr.mxu1 %v3207_v21  ;;  %3035 = vmatprep.subr.mxu0 %v6845_v45  ;;  %v6866_v21 = vsub.f32 %v2972_v9, %v6851_v53  ;;  %v6880_v2 = vsub.f32 %v2970_v35, %v6868_v40 }
 0x483   : > { %8226 = vst [vmem:[#allocation21_spill] sm:$0xff] %v6838_v24  ;;  %v7979_v43 = vand.u32 4294901760, %v6838_v24  ;;  %3214 = vmatpush1.msra.mxu1 %v3213_v32  ;;  %v3225_v17 = vand.u32 4294901760, %v3224_v23  ;;  %3037 = vmatpush1.msra.mxu0 %v6851_v53  ;;  %v6875_v32 = vand.u32 4294901760, %v2969_v3  ;;  %v2966_v23 = vld [vmem:[#allocation3 + $0x40] sm:$0xff] }
 0x484   : > { %8228 = vst [vmem:[#allocation23_spill] sm:$0xff] %v6866_v21  ;;  %3220 = vmatprep.subr.mxu1 %v3219_v4  ;;  %3039 = vmatprep.subr.mxu0 %v6859_v55  ;;  %8230 = vst [vmem:[#allocation25_spill] sm:$0xff] %v6880_v2  ;;  %v6902_v14 = vand.u32 4294901760, %v2966_v23 }
 0x485   : > { %v3236_v59 = vsub.f32 %v6838_v24, %v7979_v43  ;;  %3226 = vmatpush1.msra.mxu1 %v3225_v17  ;;  %v7986_v43 = vand.u32 4294901760, %v6866_v21  ;;  %3041 = vmatpush1.msra.mxu0 %v6868_v40  ;;  %v6890_v4 = vsub.f32 %v2969_v3, %v6875_v32  ;;  %v7997_v17 = vand.u32 4294901760, %v6880_v2  ;;  %v2962_v24 = vld [vmem:[#allocation3 + $0x20] sm:$0xff] }
 0x486   : > { %3232 = vmatprep.subr.mxu1 %v3231_v46  ;;  %3043 = vmatprep.subr.mxu0 %v6875_v32  ;;  %v6900_v46 = vsub.f32 %v2968_v15, %v6882_v47  ;;  %8233 = vst [vmem:[#allocation28_spill] sm:$0xff] %v6902_v14  ;;  %v3243_v3 = vand.u32 4294901760, %v3242_v62  ;;  %v6918_v62 = vsub.f32 %v2966_v23, %v6902_v14 }
 0x487   : > { %v3237_v9 = vand.u32 4294901760, %v3236_v59  ;;  %8231 = vst [vmem:[#allocation26_spill] sm:$0xff] %v6890_v4  ;;  %v6892_v59 = vand.u32 4294901760, %v2967_v22  ;;  %v3248_v35 = vsub.f32 %v6866_v21, %v7986_v43  ;;  %3045 = vmatpush1.msra.mxu0 %v6882_v47  ;;  %v2964_v43 = vld [vmem:[#allocation3 + $0x30] sm:$0xff]  ;;  %v3260_v31 = vsub.f32 %v6880_v2, %v7997_v17 }
 0x488   : > { %8232 = vst [vmem:[#allocation27_spill] sm:$0xff] %v6900_v46  ;;  %v8005_v21 = vand.u32 4294901760, %v6900_v46  ;;  %8235 = vst [vmem:[#allocation30_spill] sm:$0xff] %v6918_v62  ;;  %v8013_v2 = vand.u32 4294901760, %v6918_v62 }
 0x489   : > { %3238 = vmatpush1.msra.mxu1 %v3237_v9  ;;  %v8002_v9 = vand.u32 4294901760, %v6890_v4  ;;  %v6910_v18 = vsub.f32 %v2967_v22, %v6892_v59  ;;  %3047 = vmatprep.subr.mxu0 %v6892_v59  ;;  %v3249_v15 = vand.u32 4294901760, %v3248_v35  ;;  %v3261_v17 = vand.u32 4294901760, %v3260_v31  ;;  %v2960_v31 = vld [vmem:[#allocation3 + $0x10] sm:$0xff] }
 0x48a   : > { %3049 = vmatpush1.msra.mxu0 %v6902_v14  ;;  %3244 = vmatprep.subr.mxu1 %v3243_v3  ;;  %v3272_v23 = vsub.f32 %v6900_v46, %v8005_v21  ;;  %v6931_v14 = vand.u32 4294901760, %v2964_v43  ;;  %v3284_v46 = vsub.f32 %v6918_v62, %v8013_v2 }
 0x48b   : > { %8234 = vst [vmem:[#allocation29_spill] sm:$0xff] %v6910_v18  ;;  %v3266_v22 = vsub.f32 %v6890_v4, %v8002_v9  ;;  %v8008_v35 = vand.u32 4294901760, %v6910_v18  ;;  %3250 = vmatpush1.msra.mxu1 %v3249_v15  ;;  %v6937_v4 = vsub.f32 %v2965_v7, %v6925_v44  ;;  %v6939_v15 = vand.u32 4294901760, %v2963_v5  ;;  %3051 = vmatprep.subr.mxu0 %v6925_v44 }
 0x48c   : > { %8237 = vst [vmem:[#allocation32_spill] sm:$0xff] %v6931_v14  ;;  %3256 = vmatprep.subr.mxu1 %v3255_v50  ;;  %v3273_v21 = vand.u32 4294901760, %v3272_v23  ;;  %v6946_v50 = vsub.f32 %v2964_v43, %v6931_v14  ;;  %3053 = vmatpush1.msra.mxu0 %v6931_v14  ;;  %v2958_v23 = vld [vmem:[#allocation3] sm:$0xff]  ;;  %v3285_v43 = vand.u32 4294901760, %v3284_v46  ;;  %v6962_v14 = vand.u32 4294901760, %v2960_v31 }
 0x48d   : > { %v3267_v3 = vand.u32 4294901760, %v3266_v22  ;;  %v3278_v9 = vsub.f32 %v6910_v18, %v8008_v35  ;;  %8238 = vst [vmem:[#allocation33_spill] sm:$0xff] %v6937_v4  ;;  %3262 = vmatpush1.msra.mxu1 %v3261_v17  ;;  %v6948_v22 = vand.u32 4294901760, %v2962_v24  ;;  %v2959_v35 = vld [vmem:[#allocation3 + $0x8] sm:$0xff]  ;;  %v8018_v18 = vand.u32 4294901760, %v6937_v4  ;;  %3055 = vmatprep.subr.mxu0 %v6939_v15 }
 0x48e   : > { %8239 = vst [vmem:[#allocation34_spill] sm:$0xff] %v6946_v50  ;;  %v6953_v44 = vsub.f32 %v2963_v5, %v6939_v15  ;;  %v6955_v17 = vand.u32 4294901760, %v2961_v41  ;;  %v8023_v2 = vand.u32 4294901760, %v6946_v50 }
 0x48f   : > { %3268 = vmatprep.subr.mxu1 %v3267_v3  ;;  %v3279_v7 = vand.u32 4294901760, %v3278_v9  ;;  %v6960_v62 = vsub.f32 %v2962_v24, %v6948_v22  ;;  %3057 = vmatpush1.msra.mxu0 %v6948_v22  ;;  %v3290_v5 = vsub.f32 %v6937_v4, %v8018_v18  ;;  %v6982_v18 = vand.u32 4294901760, %v2958_v23 }
 0x490   : > { %8240 = vst [vmem:[#allocation35_spill] sm:$0xff] %v6953_v44  ;;  %8241 = vst [vmem:[#allocation36_spill] sm:$0xff] %v6955_v17  ;;  %3274 = vmatpush1.msra.mxu1 %v3273_v21  ;;  %v8026_v9 = vand.u32 4294901760, %v6953_v44  ;;  %v6970_v3 = vsub.f32 %v2961_v41, %v6955_v17  ;;  %v6972_v21 = vand.u32 4294901760, %v2959_v35  ;;  %3059 = vmatprep.subr.mxu0 %v6955_v17 }
 0x491   : > { %8242 = vst [vmem:[#allocation37_spill] sm:$0xff] %v6960_v62  ;;  %3280 = vmatprep.subr.mxu1 %v3279_v7  ;;  %v3296_v24 = vsub.f32 %v6946_v50, %v8023_v2  ;;  %v8029_v46 = vand.u32 4294901760, %v6960_v62  ;;  %v6980_v7 = vsub.f32 %v2960_v31, %v6962_v14  ;;  %8246 = vst [vmem:[#allocation41_spill] sm:$0xff] %v6982_v18  ;;  %3061 = vmatpush1.msra.mxu0 %v6962_v14 }
 0x492   : > { %8243 = vst [vmem:[#allocation38_spill] sm:$0xff] %v6970_v3  ;;  %8244 = vst [vmem:[#allocation39_spill] sm:$0xff] %v6972_v21  ;;  %3286 = vmatpush1.msra.mxu1 %v3285_v43  ;;  %v3291_v41 = vand.u32 4294901760, %v3290_v5  ;;  %v3302_v4 = vsub.f32 %v6953_v44, %v8026_v9  ;;  %v8033_v43 = vand.u32 4294901760, %v6970_v3  ;;  %v6990_v17 = vsub.f32 %v2959_v35, %v6972_v21 }
 0x493   : > { %8245 = vst [vmem:[#allocation40_spill] sm:$0xff] %v6980_v7  ;;  %3063 = vmatprep.subr.mxu0 %v6972_v21  ;;  %v3297_v2 = vand.u32 4294901760, %v3296_v24  ;;  %v3308_v31 = vsub.f32 %v6960_v62, %v8029_v46  ;;  %v8032_v50 = vand.u32 4294901760, %v6980_v7  ;;  %v6998_v5 = vsub.f32 %v2958_v23, %v6982_v18 }
 0x494   : > { %8247 = vst [vmem:[#allocation42_spill] sm:$0xff] %v6990_v17  ;;  %3065 = vmatpush1.msra.mxu0 %v6982_v18  ;;  %3292 = vmatprep.subr.mxu1 %v3291_v41  ;;  %v3303_v9 = vand.u32 4294901760, %v3302_v4  ;;  %v3314_v35 = vsub.f32 %v6970_v3, %v8033_v43  ;;  %v8034_v44 = vand.u32 4294901760, %v6990_v17  ;;  %v8035_v62 = vmov 0.0  }
 0x495   : > { %8248 = vst [vmem:[#allocation43_spill] sm:$0xff] %v6998_v5  ;;  %3398 = vmatprep.subr.mxu0 %v6696_v0  ;;  %3298 = vmatpush1.msra.mxu1 %v3297_v2  ;;  %v3309_v24 = vand.u32 4294901760, %v3308_v31  ;;  %v3320_v46 = vsub.f32 %v6980_v7, %v8032_v50  ;;  %v8037_v23 = vand.u32 4294901760, %v6998_v5 }
 0x496   : > { %3367 = vmatprep.mubr.f32.mxu1 %v8035_v62  ;;  %3304 = vmatprep.subr.mxu1 %v3303_v9  ;;  %v3315_v4 = vand.u32 4294901760, %v3314_v35  ;;  %v3326_v41 = vsub.f32 %v6990_v17, %v8034_v44 }
 0x497   : > { %3098 = vmatprep.mubr.f32.mxu0 %v8035_v62  ;;  %3310 = vmatpush1.msra.mxu1 %v3309_v24  ;;  %v3321_v2 = vand.u32 4294901760, %v3320_v46  ;;  %v3332_v31 = vsub.f32 %v6998_v5, %v8037_v23 }
 0x498   : > { %3316 = vmatprep.subr.mxu1 %v3315_v4  ;;  %v3327_v50 = vand.u32 4294901760, %v3326_v41 }
 0x499   : > { %3322 = vmatpush1.msra.mxu1 %v3321_v2  ;;  %v3333_v43 = vand.u32 4294901760, %v3332_v31 }
 0x49a   : > { %3328 = vmatprep.subr.mxu1 %v3327_v50 }
 0x49b   : > { %3334 = vmatpush1.msra.mxu1 %v3333_v43 }
 0x49c   : > { %3558 = vmatprep.subr.mxu1 %v6687_v38 }
 0x4fb   : > { %v2899_v9 = vpop.xlane.xlu1 %2898 }
 0x4fc   : > { %v2904_v35 = vmul.f32 0.0078125, %v2899_v9 }
 0x4fe   : > { %v7020_v44 = vsub.f32 %v6678_v16, %v2904_v35  ;;  %v7032_v35 = vld [vmem:[%s7955_s7] ss:$0 sm:$0xff] }
 0x4ff   : > { %v2901_v62 = vpop.xlane.xlu1 %2900  ;;  %v8259_v16 = vld [vmem:[#allocation25_spill] sm:$0xff] }
 0x500   : > { %v2905_v24 = vmul.f32 0.0078125, %v2901_v62  ;;  %v2912_v46 = vmul.f32 %v7020_v44, %v7020_v44 }
 0x502   : > { %v7025_v23 = vsub.f32 %v6685_v37, %v2905_v24  ;;  %2918 = vadd.xlane.f32.xlu0 %v2912_v46  ;;  %v7038_v46 = vld [vmem:[%s7956_s8] ss:$0 sm:$0xff]  ;;  %v8258_v37 = vld [vmem:[#allocation24_spill] sm:$0xff] }
 0x503   : > { %v2915_v4 = vpop.xlane.xlu1 %2914 }
 0x504   : > { %v2922_v41 = vmul.f32 0.0078125, %v2915_v4  ;;  %v2913_v50 = vmul.f32 %v7025_v23, %v7025_v23 }
 0x506   : > { %v2926_v43 = vadd.f32 1e-06, %v2922_v41  ;;  %2920 = vadd.xlane.f32.xlu1 %v2913_v50 }
 0x507   : > { %v2917_v2 = vpop.xlane.xlu1 %2916 }
 0x508   : > { %6000 = vrsqrt.f32 %v2926_v43  ;;  %v2923_v31 = vmul.f32 0.0078125, %v2917_v2 }
 0x50a   : > { %v2927_v9 = vadd.f32 1e-06, %v2923_v31 }
 0x50c   : > { %6002 = vrsqrt.f32 %v2927_v9 }
 0x515   : > { %v6001_v62 = vpop.eup %6000 }
 0x516   : > { %v2934_v24 = vmul.f32 %v6001_v62, %v6682_v29  ;;  %v8250_v62 = vmov 0.0  }
 0x518   : > { %v2944_v4 = vmul.f32 %v7032_v35, %v2934_v24 }
 0x519   : > { %v6003_v41 = vpop.eup %6002 }
 0x51a   : > { %v2954_v50 = vadd.f32 %v7038_v46, %v2944_v4  ;;  %v2935_v43 = vmul.f32 %v6003_v41, %v6690_v42 }
 0x51c   : > { %v7043_v2 = vand.u32 4294901760, %v2954_v50  ;;  %v2945_v31 = vmul.f32 %v7032_v35, %v2935_v43 }
 0x51e   : > { %8249 = vst [vmem:[#allocation44_spill] sm:$0xff] %v7043_v2  ;;  %v7047_v9 = vsub.f32 %v2954_v50, %v7043_v2  ;;  %3369 = vmatmul.mubr.f32.vlgmr.msra.gmra.mxu1 %v7043_v2  ;;  %v2955_v29 = vadd.f32 %v7038_v46, %v2945_v31  ;;  %v8261_v2 = vld [vmem:[#allocation36_spill] sm:$0xff] }
 0x51f   : > { %3374 = vmatprep.mubr.f32.mxu1 %v8250_v62  ;;  %3560 = vmatpush1.msra.mxu1 %v6692_v26 }
 0x520   : > { %v7053_v24 = vand.u32 4294901760, %v2955_v29  ;;  %v8039_v4 = vand.u32 4294901760, %v7047_v9  ;;  %3562 = vmatprep.subr.mxu1 %v6698_v52 }
 0x521   : > { %3564 = vmatpush1.msra.mxu1 %v6704_v1 }
 0x522   : > { %8251 = vst [vmem:[#allocation45_spill] sm:$0xff] %v7053_v24  ;;  %3376 = vmatmul.mubr.f32.gmra.mxu1 %v7053_v24  ;;  %v3102_v42 = vsub.f32 %v7047_v9, %v8039_v4  ;;  %v7063_v41 = vsub.f32 %v2955_v29, %v7053_v24  ;;  %3566 = vmatprep.subr.mxu1 %v6713_v60  ;;  %v8257_v4 = vld [vmem:[#allocation32_spill] sm:$0xff]  ;;  %v8260_v24 = vld [vmem:[#allocation26_spill] sm:$0xff] }
 0x523   : > { %3568 = vmatpush1.msra.mxu1 %v6722_v20  ;;  %3381 = vmatprep.mubr.f32.mxu1 %v8250_v62 }
 0x524   : > { %v3103_v50 = vand.u32 4294901760, %v3102_v42  ;;  %v8038_v43 = vand.u32 4294901760, %v7063_v41  ;;  %3570 = vmatprep.subr.mxu1 %v6732_v56  ;;  %v8252_v42 = vld [vmem:[#allocation21_spill] sm:$0xff] }
 0x525   : > { %3572 = vmatpush1.msra.mxu1 %v6742_v28 }
 0x526   : > { %3104 = vmatmul.mubr.f32.vlgmr.msra.gmra.mxu0 %v3103_v50  ;;  %v3113_v31 = vsub.f32 %v7063_v41, %v8038_v43  ;;  %3574 = vmatprep.subr.mxu1 %v6765_v11  ;;  %v8253_v50 = vld [vmem:[#allocation28_spill] sm:$0xff]  ;;  %v8256_v43 = vld [vmem:[#allocation23_spill] sm:$0xff] }
 0x527   : > { %3109 = vmatprep.mubr.f32.mxu0 %v8250_v62  ;;  %3401 = vmatpush1.msra.mxu0 %v6702_v54 }
 0x528   : > { %v3114_v29 = vand.u32 4294901760, %v3113_v31  ;;  %3576 = vmatpush1.msra.mxu1 %v6771_v6  ;;  %3404 = vmatprep.subr.mxu0 %v6711_v61  ;;  %v8254_v31 = vld [vmem:[#allocation22_spill] sm:$0xff] }
 0x529   : > { %3578 = vmatprep.subr.mxu1 %v6779_v13  ;;  %3407 = vmatpush1.msra.mxu0 %v6720_v36 }
 0x52a   : > { %3115 = vmatmul.mubr.f32.gmra.mxu0 %v3114_v29  ;;  %3580 = vmatpush1.msra.mxu1 %v6788_v39  ;;  %v8255_v29 = vld [vmem:[#allocation31_spill] sm:$0xff] }
 0x52b   : > { %3410 = vmatprep.subr.mxu0 %v6730_v51  ;;  %3582 = vmatprep.subr.mxu1 %v6795_v63 }
 0x52c   : > { %3413 = vmatpush1.msra.mxu0 %v6740_v27  ;;  %3584 = vmatpush1.msra.mxu1 %v6802_v49 }
 0x52d   : > { %3416 = vmatprep.subr.mxu0 %v6750_v25  ;;  %3586 = vmatprep.subr.mxu1 %v6812_v10 }
 0x52e   : > { %3419 = vmatpush1.msra.mxu0 %v6758_v48  ;;  %3588 = vmatpush1.msra.mxu1 %v6822_v34 }
 0x52f   : > { %3422 = vmatprep.subr.mxu0 %v6777_v12  ;;  %3590 = vmatprep.subr.mxu1 %v6845_v45 }
 0x530   : > { %3425 = vmatpush1.msra.mxu0 %v6786_v33  ;;  %3592 = vmatpush1.msra.mxu1 %v6851_v53 }
 0x531   : > { %3428 = vmatprep.subr.mxu0 %v6793_v57  ;;  %3594 = vmatprep.subr.mxu1 %v6859_v55 }
 0x532   : > { %3431 = vmatpush1.msra.mxu0 %v6800_v58  ;;  %3596 = vmatpush1.msra.mxu1 %v6868_v40 }
 0x533   : > { %3434 = vmatprep.subr.mxu0 %v6810_v8  ;;  %3598 = vmatprep.subr.mxu1 %v6875_v32 }
 0x534   : > { %3437 = vmatpush1.msra.mxu0 %v6820_v30  ;;  %3600 = vmatpush1.msra.mxu1 %v6882_v47 }
 0x535   : > { %3440 = vmatprep.subr.mxu0 %v6830_v19  ;;  %3602 = vmatprep.subr.mxu1 %v6892_v59 }
 0x536   : > { %3443 = vmatpush1.msra.mxu0 %v8252_v42  ;;  %3604 = vmatpush1.msra.mxu1 %v8253_v50  ;;  %v8262_v50 = vld [vmem:[#allocation27_spill] sm:$0xff] }
 0x537   : > { %3446 = vmatprep.subr.mxu0 %v8254_v31  ;;  %3606 = vmatprep.subr.mxu1 %v8255_v29  ;;  %v8263_v29 = vld [vmem:[#allocation29_spill] sm:$0xff] }
 0x538   : > { %3449 = vmatpush1.msra.mxu0 %v8256_v43  ;;  %3608 = vmatpush1.msra.mxu1 %v8257_v4  ;;  %v8264_v4 = vld [vmem:[#allocation30_spill] sm:$0xff] }
 0x539   : > { %3452 = vmatprep.subr.mxu0 %v8258_v37  ;;  %3610 = vmatprep.subr.mxu1 %v6939_v15 }
 0x53a   : > { %3455 = vmatpush1.msra.mxu0 %v8259_v16  ;;  %3612 = vmatpush1.msra.mxu1 %v6948_v22  ;;  %v8265_v16 = vld [vmem:[#allocation33_spill] sm:$0xff] }
 0x53b   : > { %3458 = vmatprep.subr.mxu0 %v8260_v24  ;;  %3614 = vmatprep.subr.mxu1 %v8261_v2  ;;  %v8266_v24 = vld [vmem:[#allocation34_spill] sm:$0xff]  ;;  %v8267_v2 = vld [vmem:[#allocation35_spill] sm:$0xff] }
 0x53c   : > { %3461 = vmatpush1.msra.mxu0 %v8262_v50  ;;  %3616 = vmatpush1.msra.mxu1 %v6962_v14  ;;  %v8268_v50 = vld [vmem:[#allocation37_spill] sm:$0xff] }
 0x53d   : > { %3464 = vmatprep.subr.mxu0 %v8263_v29  ;;  %3618 = vmatprep.subr.mxu1 %v6972_v21 }
 0x53e   : > { %3467 = vmatpush1.msra.mxu0 %v8264_v4  ;;  %3620 = vmatpush1.msra.mxu1 %v6982_v18  ;;  %v8269_v18 = vand.u32 4294901760, %v6696_v0 }
 0x53f   : > { %3120 = vmatprep.mubr.f32.mxu0 %v8250_v62  ;;  %3470 = vmatprep.subr.mxu0 %v8265_v16 }
 0x540   : > { %3880 = vmatprep.subr.mxu1 %v6687_v38  ;;  %3473 = vmatpush1.msra.mxu0 %v8266_v24 }
 0x541   : > { %3476 = vmatprep.subr.mxu0 %v8267_v2 }
 0x542   : > { %3479 = vmatpush1.msra.mxu0 %v8268_v50 }
 0x543   : > { %3482 = vmatprep.subr.mxu0 %v6970_v3 }
 0x544   : > { %3485 = vmatpush1.msra.mxu0 %v6980_v7 }
 0x545   : > { %3488 = vmatprep.subr.mxu0 %v6990_v17 }
 0x546   : > { %3491 = vmatpush1.msra.mxu0 %v6998_v5 }
 0x547   : > { %3693 = vmatprep.subr.mxu0 %v8269_v18 }
 0x58b   : > { %v2919_v16 = vpop.xlane.xlu0 %2918 }
 0x58c   : > { %v2924_v4 = vmul.f32 0.0078125, %v2919_v16 }
 0x58e   : > { %v2928_v38 = vadd.f32 1e-06, %v2924_v4  ;;  %v8313_v4 = vld [vmem:[#allocation37_spill] sm:$0xff] }
 0x58f   : > { %v2921_v21 = vpop.xlane.xlu1 %2920 }
 0x590   : > { %6004 = vrsqrt.f32 %v2928_v38  ;;  %v2925_v24 = vmul.f32 0.0078125, %v2921_v21  ;;  %v8320_v38 = vld [vmem:[#allocation42_spill] sm:$0xff] }
 0x592   : > { %v2929_v2 = vadd.f32 1e-06, %v2925_v24  ;;  %v8271_v24 = vand.u32 4294901760, %v7063_v41 }
 0x594   : > { %6006 = vrsqrt.f32 %v2929_v2 }
 0x59d   : > { %v6005_v50 = vpop.eup %6004 }
 0x59e   : > { %v2936_v3 = vmul.f32 %v6005_v50, %v7020_v44  ;;  %v8317_v50 = vld [vmem:[#allocation45_spill] sm:$0xff] }
 0x5a0   : > { %v2946_v7 = vmul.f32 %v7032_v35, %v2936_v3 }
 0x5a1   : > { %v6007_v29 = vpop.eup %6006 }
 0x5a2   : > { %v2956_v17 = vadd.f32 %v7038_v46, %v2946_v7  ;;  %v2937_v5 = vmul.f32 %v6007_v29, %v7025_v23 }
 0x5a4   : > { %v7138_v0 = vand.u32 4294901760, %v2956_v17  ;;  %v2947_v18 = vmul.f32 %v7032_v35, %v2937_v5  ;;  %v8270_v35 = vand.u32 4294901760, %v7047_v9 }
 0x5a6   : > { %3383 = vmatmul.mubr.f32.gmra.mxu1 %v7138_v0  ;;  %v2957_v16 = vadd.f32 %v7038_v46, %v2947_v18  ;;  %v3122_v21 = vsub.f32 %v2956_v17, %v7138_v0  ;;  %v8321_v18 = vand.u32 4294901760, %v8320_v38 }
 0x5a7   : > { %3388 = vmatprep.mubr.f32.mxu1 %v8250_v62 }
 0x5a8   : > { %v7145_v44 = vand.u32 4294901760, %v2957_v16  ;;  %v3123_v3 = vand.u32 4294901760, %v3122_v21 }
 0x5aa   : > { %3390 = vmatmul.mubr.f32.gmra.mxu1 %v7145_v44  ;;  %v3124_v7 = vsub.f32 %v3122_v21, %v3123_v3  ;;  %v3133_v23 = vsub.f32 %v2957_v16, %v7145_v44  ;;  %v8322_v16 = vld [vmem:[#allocation43_spill] sm:$0xff] }
 0x5ab   : > { %3653 = vmatprep.mubr.f32.mxu1 %v8250_v62 }
 0x5ac   : > { %v3125_v2 = vand.u32 4294901760, %v3124_v7  ;;  %v3134_v5 = vand.u32 4294901760, %v3133_v23 }
 0x5ae   : > { %3126 = vmatmul.mubr.f32.gmra.mxu0 %v3125_v2  ;;  %3657 = vmatmul.mubr.f32.vlgmr.msra.gmra.mxu1 %v8270_v35  ;;  %v3135_v46 = vsub.f32 %v3133_v23, %v3134_v5 }
 0x5af   : > { %3882 = vmatpush1.msra.mxu1 %v6692_v26  ;;  %3131 = vmatprep.mubr.f32.mxu0 %v8250_v62  ;;  %v8272_v26 = vand.u32 4294901760, %v6702_v54  ;;  %v8276_v54 = vand.u32 4294901760, %v6740_v27  ;;  %v8282_v27 = vand.u32 4294901760, %v6800_v58 }
 0x5b0   : > { %3884 = vmatprep.subr.mxu1 %v6698_v52  ;;  %3662 = vmatprep.mubr.f32.mxu1 %v8250_v62  ;;  %v3136_v17 = vand.u32 4294901760, %v3135_v46  ;;  %v8273_v52 = vand.u32 4294901760, %v6711_v61  ;;  %v8277_v61 = vand.u32 4294901760, %v6750_v25  ;;  %v8284_v25 = vand.u32 4294901760, %v6820_v30  ;;  %v8300_v30 = vld [vmem:[#allocation29_spill] sm:$0xff] }
 0x5b1   : > { %3886 = vmatpush1.msra.mxu1 %v6704_v1  ;;  %v8274_v1 = vand.u32 4294901760, %v6720_v36  ;;  %v8278_v36 = vand.u32 4294901760, %v6758_v48  ;;  %v8285_v48 = vand.u32 4294901760, %v6830_v19  ;;  %v8303_v19 = vld [vmem:[#allocation30_spill] sm:$0xff] }
 0x5b2   : > { %3888 = vmatprep.subr.mxu1 %v6713_v60  ;;  %3137 = vmatmul.mubr.f32.gmra.mxu0 %v3136_v17  ;;  %v8275_v60 = vand.u32 4294901760, %v6730_v51  ;;  %v8280_v51 = vand.u32 4294901760, %v6786_v33  ;;  %v8290_v33 = vand.u32 4294901760, %v8256_v43  ;;  %v8315_v43 = vld [vmem:[#allocation38_spill] sm:$0xff]  ;;  %v4058_v17 = vld [vmem:[#allocation6 + $0x70] sm:$0xff] }
 0x5b3   : > { %3666 = vmatmul.mubr.f32.gmra.mxu1 %v8271_v24  ;;  %3524 = vmatprep.mubr.f32.mxu0 %v8250_v62 }
 0x5b4   : > { %3890 = vmatpush1.msra.mxu1 %v6722_v20  ;;  %3671 = vmatprep.mubr.f32.mxu1 %v8250_v62  ;;  %v8279_v20 = vand.u32 4294901760, %v6777_v12  ;;  %v8288_v12 = vand.u32 4294901760, %v8254_v31  ;;  %v8318_v31 = vld [vmem:[#allocation40_spill] sm:$0xff] }
 0x5b5   : > { %3892 = vmatprep.subr.mxu1 %v6732_v56  ;;  %v8281_v56 = vand.u32 4294901760, %v6793_v57  ;;  %v8319_v29 = vand.u32 4294901760, %v8318_v31  ;;  %v4068_v31 = vld [vmem:[#allocation6 + $0xc0] sm:$0xff] }
 0x5b6   : > { %3894 = vmatpush1.msra.mxu1 %v6742_v28  ;;  %3527 = vmatmul.mubr.f32.vlgmr.msra.gmra.mxu0 %v7047_v9  ;;  %v8283_v28 = vand.u32 4294901760, %v6810_v8  ;;  %v8298_v8 = vld [vmem:[#allocation27_spill] sm:$0xff] }
 0x5b7   : > { %3896 = vmatprep.subr.mxu1 %v6765_v11  ;;  %3675 = vmatmul.mubr.f32.gmra.mxu1 %v3123_v3  ;;  %v8286_v11 = vand.u32 4294901760, %v8252_v42  ;;  %v8316_v42 = vand.u32 4294901760, %v8315_v43  ;;  %v4075_v3 = vld [vmem:[#allocation6 + $0xf8] sm:$0xff] }
 0x5b8   : > { %3697 = vmatpush1.msra.mxu0 %v8272_v26  ;;  %3898 = vmatpush1.msra.mxu1 %v6771_v6  ;;  %v8287_v6 = vld [vmem:[#allocation28_spill] sm:$0xff]  ;;  %v7273_v7 = vand.u32 4294901760, %v4075_v3 }
 0x5b9   : > { %3701 = vmatprep.subr.mxu0 %v8273_v52  ;;  %3900 = vmatprep.subr.mxu1 %v6779_v13  ;;  %v8289_v13 = vld [vmem:[#allocation31_spill] sm:$0xff] }
 0x5ba   : > { %3705 = vmatpush1.msra.mxu0 %v8274_v1  ;;  %3902 = vmatpush1.msra.mxu1 %v6788_v39  ;;  %v8291_v39 = vld [vmem:[#allocation32_spill] sm:$0xff]  ;;  %8324 = vst [vmem:[#allocation21_spill] sm:$0xff] %v7273_v7  ;;  %v7278_v35 = vsub.f32 %v4075_v3, %v7273_v7  ;;  %v4057_v1 = vld [vmem:[#allocation6 + $0x68] sm:$0xff] }
 0x5bb   : > { %3532 = vmatprep.mubr.f32.mxu0 %v8250_v62  ;;  %3680 = vmatprep.mubr.f32.mxu1 %v8250_v62 }
 0x5bc   : > { %3709 = vmatprep.subr.mxu0 %v8275_v60  ;;  %3904 = vmatprep.subr.mxu1 %v6795_v63  ;;  %v8295_v63 = vld [vmem:[#allocation26_spill] sm:$0xff]  ;;  %8325 = vst [vmem:[#allocation22_spill] sm:$0xff] %v7278_v35  ;;  %v8070_v24 = vand.u32 4294901760, %v7278_v35 }
 0x5bd   : > { %3535 = vmatmul.mubr.f32.gmra.mxu0 %v7063_v41  ;;  %3684 = vmatmul.mubr.f32.gmra.mxu1 %v3134_v5  ;;  %v8296_v58 = vand.u32 4294901760, %v8295_v63  ;;  %v8314_v41 = vand.u32 4294901760, %v8313_v4  ;;  %v4074_v5 = vld [vmem:[#allocation6 + $0xf0] sm:$0xff]  ;;  %v4053_v4 = vld [vmem:[#allocation6 + $0x48] sm:$0xff] }
 0x5be   : > { %3713 = vmatpush1.msra.mxu0 %v8276_v54  ;;  %3906 = vmatpush1.msra.mxu1 %v6802_v49  ;;  %v8297_v49 = vld [vmem:[#allocation36_spill] sm:$0xff]  ;;  %v7280_v46 = vand.u32 4294901760, %v4074_v5 }
 0x5bf   : > { %3717 = vmatprep.subr.mxu0 %v8277_v61  ;;  %3908 = vmatprep.subr.mxu1 %v6812_v10  ;;  %v8299_v10 = vand.u32 4294901760, %v8298_v8  ;;  %v7300_v61 = vand.u32 4294901760, %v4057_v1  ;;  %v4070_v8 = vld [vmem:[#allocation6 + $0xd0] sm:$0xff] }
 0x5c0   : > { %3721 = vmatpush1.msra.mxu0 %v8278_v36  ;;  %3910 = vmatpush1.msra.mxu1 %v6822_v34  ;;  %v8302_v34 = vld [vmem:[#allocation39_spill] sm:$0xff]  ;;  %v7291_v26 = vsub.f32 %v4074_v5, %v7280_v46  ;;  %v4072_v36 = vld [vmem:[#allocation6 + $0xe0] sm:$0xff] }
 0x5c1   : > { %3540 = vmatprep.mubr.f32.mxu0 %v8250_v62  ;;  %3725 = vmatprep.subr.mxu0 %v8279_v20  ;;  %v4356_v20 = vsub.f32 %v7278_v35, %v8070_v24  ;;  %v4046_v24 = vld [vmem:[#allocation6 + $0x10] sm:$0xff] }
 0x5c2   : > { %3912 = vmatprep.subr.mxu1 %v6845_v45  ;;  %3543 = vmatmul.mubr.f32.gmra.mxu0 %v3122_v21  ;;  %v8304_v45 = vand.u32 4294901760, %v8303_v19  ;;  %v8323_v21 = vand.u32 4294901760, %v8322_v16  ;;  %v4054_v19 = vld [vmem:[#allocation6 + $0x50] sm:$0xff] }
 0x5c3   : > { %3729 = vmatpush1.msra.mxu0 %v8280_v51  ;;  %3914 = vmatpush1.msra.mxu1 %v6851_v53  ;;  %v8293_v53 = vld [vmem:[#allocation25_spill] sm:$0xff]  ;;  %v8067_v51 = vand.u32 4294901760, %v7291_v26 }
 0x5c4   : > { %3733 = vmatprep.subr.mxu0 %v8281_v56  ;;  %3916 = vmatprep.subr.mxu1 %v6859_v55  ;;  %v8294_v57 = vand.u32 4294901760, %v8293_v53  ;;  %v8305_v55 = vld [vmem:[#allocation41_spill] sm:$0xff]  ;;  %v4055_v53 = vld [vmem:[#allocation6 + $0x58] sm:$0xff] }
 0x5c5   : > { %3737 = vmatpush1.msra.mxu0 %v8282_v27  ;;  %3918 = vmatpush1.msra.mxu1 %v6868_v40  ;;  %v8306_v40 = vld [vmem:[#allocation33_spill] sm:$0xff]  ;;  %v7310_v27 = vand.u32 4294901760, %v4072_v36 }
 0x5c6   : > { %3548 = vmatprep.mubr.f32.mxu0 %v8250_v62  ;;  %3741 = vmatprep.subr.mxu0 %v8283_v28  ;;  %v4056_v28 = vld [vmem:[#allocation6 + $0x60] sm:$0xff] }
 0x5c7   : > { %3920 = vmatprep.subr.mxu1 %v6875_v32  ;;  %3551 = vmatmul.mubr.f32.gmra.mxu0 %v3133_v23  ;;  %v8307_v32 = vand.u32 4294901760, %v8306_v40  ;;  %v4059_v23 = vld [vmem:[#allocation6 + $0x78] sm:$0xff] }
 0x5c8   : > { %3745 = vmatpush1.msra.mxu0 %v8284_v25  ;;  %3922 = vmatpush1.msra.mxu1 %v6882_v47  ;;  %v8292_v47 = vand.u32 4294901760, %v8258_v37  ;;  %v8301_v37 = vand.u32 4294901760, %v8300_v30  ;;  %v7275_v2 = vand.u32 4294901760, %v4059_v23 }
 0x5c9   : > { %3749 = vmatprep.subr.mxu0 %v8285_v48  ;;  %3924 = vmatprep.subr.mxu1 %v6892_v59  ;;  %v8308_v59 = vld [vmem:[#allocation44_spill] sm:$0xff] }
 0x5ca   : > { %3753 = vmatpush1.msra.mxu0 %v8286_v11  ;;  %3926 = vmatpush1.msra.mxu1 %v8287_v6  ;;  %v7318_v11 = vsub.f32 %v4057_v1, %v7300_v61  ;;  %v7320_v6 = vand.u32 4294901760, %v4056_v28 }
 0x5cb   : > { %3757 = vmatprep.subr.mxu0 %v8288_v12  ;;  %3928 = vmatprep.subr.mxu1 %v8289_v13  ;;  %v4071_v12 = vld [vmem:[#allocation6 + $0xd8] sm:$0xff]  ;;  %v4357_v13 = vand.u32 4294901760, %v4356_v20  ;;  %v7390_v20 = vand.u32 4294901760, %v4068_v31 }
 0x5cc   : > { %3761 = vmatpush1.msra.mxu0 %v8290_v33  ;;  %3930 = vmatpush1.msra.mxu1 %v8291_v39  ;;  %8328 = vst [vmem:[#allocation28_spill] sm:$0xff] %v7318_v11  ;;  %v4363_v33 = vsub.f32 %v7291_v26, %v8067_v51  ;;  %v4062_v51 = vld [vmem:[#allocation6 + $0x90] sm:$0xff] }
 0x5cd   : > { %3765 = vmatprep.subr.mxu0 %v8292_v47  ;;  %3932 = vmatprep.subr.mxu1 %v6939_v15  ;;  %v8309_v15 = vld [vmem:[#allocation34_spill] sm:$0xff]  ;;  %v7328_v47 = vsub.f32 %v4072_v36, %v7310_v27  ;;  %8340 = vst [vmem:[#allocation44_spill] sm:$0xff] %v7390_v20 }
 0x5ce   : > { %3769 = vmatpush1.msra.mxu0 %v8294_v57  ;;  %3934 = vmatpush1.msra.mxu1 %v6948_v22  ;;  %v8310_v22 = vand.u32 4294901760, %v8309_v15 }
 0x5cf   : > { %3773 = vmatprep.subr.mxu0 %v8296_v58  ;;  %3936 = vmatprep.subr.mxu1 %v8297_v49  ;;  %8329 = vst [vmem:[#allocation31_spill] sm:$0xff] %v7328_v47  ;;  %v8063_v58 = vand.u32 4294901760, %v7318_v11  ;;  %v7336_v49 = vsub.f32 %v4056_v28, %v7320_v6 }
 0x5d0   : > { %3777 = vmatpush1.msra.mxu0 %v8299_v10  ;;  %3938 = vmatpush1.msra.mxu1 %v6962_v14  ;;  %v8311_v14 = vld [vmem:[#allocation35_spill] sm:$0xff]  ;;  %v4364_v10 = vand.u32 4294901760, %v4363_v33  ;;  %v4067_v33 = vld [vmem:[#allocation6 + $0xb8] sm:$0xff] }
 0x5d1   : > { %3781 = vmatprep.subr.mxu0 %v8301_v37  ;;  %3940 = vmatprep.subr.mxu1 %v8302_v34  ;;  %v8312_v9 = vand.u32 4294901760, %v8311_v14  ;;  %8330 = vst [vmem:[#allocation32_spill] sm:$0xff] %v7336_v49  ;;  %v8062_v37 = vand.u32 4294901760, %v7328_v47  ;;  %v7343_v34 = vand.u32 4294901760, %v4071_v12  ;;  %v8061_v40 = vand.u32 4294901760, %v7336_v49 }
 0x5d2   : > { %3785 = vmatpush1.msra.mxu0 %v8304_v45  ;;  %3942 = vmatpush1.msra.mxu1 %v8305_v55  ;;  %v4258_v55 = vsub.f32 %v7318_v11, %v8063_v58 }
 0x5d3   : > { %3975 = vmatprep.mubr.f32.mxu1 %v8250_v62  ;;  %3789 = vmatprep.subr.mxu0 %v8307_v32  ;;  %v7349_v32 = vand.u32 4294901760, %v4055_v53  ;;  %v7355_v14 = vsub.f32 %v4071_v12, %v7343_v34  ;;  %v4265_v43 = vsub.f32 %v7336_v49, %v8061_v40  ;;  %v4063_v40 = vld [vmem:[#allocation6 + $0x98] sm:$0xff] }
 0x5d4   : > { %3977 = vmatmul.mubr.f32.vlgmr.msra.gmra.mxu1 %v8308_v59  ;;  %3793 = vmatpush1.msra.mxu0 %v8310_v22  ;;  %v4377_v22 = vsub.f32 %v7328_v47, %v8062_v37 }
 0x5d5   : > { %3797 = vmatprep.subr.mxu0 %v8312_v9  ;;  %3982 = vmatprep.mubr.f32.mxu1 %v8250_v62  ;;  %8331 = vst [vmem:[#allocation25_spill] sm:$0xff] %v7355_v14  ;;  %v7357_v9 = vand.u32 4294901760, %v4070_v8  ;;  %v8059_v38 = vand.u32 4294901760, %v7355_v14  ;;  %v4266_v3 = vand.u32 4294901760, %v4265_v43  ;;  %v4050_v43 = vld [vmem:[#allocation6 + $0x30] sm:$0xff] }
 0x5d6   : > { %3801 = vmatpush1.msra.mxu0 %v8314_v41  ;;  %3850 = vmatprep.mubr.f32.mxu0 %v8250_v62  ;;  %v4259_v41 = vand.u32 4294901760, %v4258_v55 }
 0x5d7   : > { %3805 = vmatprep.subr.mxu0 %v8316_v42  ;;  %5434 = vmatprep.subr.mxu1 %v4357_v13  ;;  %8332 = vst [vmem:[#allocation26_spill] sm:$0xff] %v7357_v9  ;;  %v7364_v42 = vsub.f32 %v4055_v53, %v7349_v32 }
 0x5d8   : > { %3984 = vmatmul.mubr.f32.gmra.mxu1 %v8317_v50  ;;  %3809 = vmatpush1.msra.mxu0 %v8319_v29  ;;  %v4378_v29 = vand.u32 4294901760, %v4377_v22 }
 0x5d9   : > { %3813 = vmatprep.subr.mxu0 %v8321_v18  ;;  %3989 = vmatprep.mubr.f32.mxu1 %v8250_v62  ;;  %8333 = vst [vmem:[#allocation36_spill] sm:$0xff] %v7364_v42  ;;  %v7371_v18 = vsub.f32 %v4070_v8, %v7357_v9  ;;  %v7408_v8 = vsub.f32 %v4068_v31, %v7390_v20 }
 0x5da   : > { %3817 = vmatpush1.msra.mxu0 %v8323_v21  ;;  %v4052_v21 = vld [vmem:[#allocation6 + $0x40] sm:$0xff] }
 0x5db   : > { %3852 = vmatmul.mubr.f32.vlgmr.msra.gmra.mxu0 %v8308_v59  ;;  %5390 = vmatprep.subr.mxu0 %v7273_v7  ;;  %v4069_v59 = vld [vmem:[#allocation6 + $0xc8] sm:$0xff]  ;;  %8335 = vst [vmem:[#allocation29_spill] sm:$0xff] %v7371_v18  ;;  %v8056_v1 = vand.u32 4294901760, %v7371_v18  ;;  %v7400_v13 = vand.u32 4294901760, %v4052_v21  ;;  %8343 = vst [vmem:[#allocation37_spill] sm:$0xff] %v7408_v8 }
 0x5dc   : > { %3991 = vmatmul.mubr.f32.gmra.mxu1 %v7138_v0  ;;  %3857 = vmatprep.mubr.f32.mxu0 %v8250_v62  ;;  %v7373_v16 = vand.u32 4294901760, %v4069_v59 }
 0x5dd   : > { %3996 = vmatprep.mubr.f32.mxu1 %v8250_v62  ;;  %5391 = vmatpush3.msra.mxu0 %v7275_v2  ;;  %8342 = vst [vmem:[#allocation35_spill] sm:$0xff] %v7400_v13  ;;  %v7416_v55 = vsub.f32 %v4052_v21, %v7400_v13 }
 0x5de   : > { %5392 = vmatprep.subr.mxu0 %v7280_v46  ;;  %8336 = vst [vmem:[#allocation39_spill] sm:$0xff] %v7373_v16  ;;  %v7388_v36 = vsub.f32 %v4069_v59, %v7373_v16  ;;  %v4066_v59 = vld [vmem:[#allocation6 + $0xb0] sm:$0xff] }
 0x5df   : > { %3859 = vmatmul.mubr.f32.gmra.mxu0 %v8317_v50  ;;  %v7366_v50 = vand.u32 4294901760, %v4054_v19  ;;  %8344 = vst [vmem:[#allocation38_spill] sm:$0xff] %v7416_v55  ;;  %v8057_v21 = vand.u32 4294901760, %v7416_v55 }
 0x5e0   : > { %3998 = vmatmul.mubr.f32.gmra.mxu1 %v7145_v44  ;;  %3864 = vmatprep.mubr.f32.mxu0 %v8250_v62  ;;  %8339 = vst [vmem:[#allocation33_spill] sm:$0xff] %v7388_v36 }
 0x5e1   : > { %8334 = vst [vmem:[#allocation27_spill] sm:$0xff] %v7366_v50  ;;  %v7378_v5 = vsub.f32 %v4054_v19, %v7366_v50 }
 0x5e3   : > { %3866 = vmatmul.mubr.f32.gmra.mxu0 %v7138_v0  ;;  %v7284_v0 = vsub.f32 %v4059_v23, %v7275_v2  ;;  %v8058_v23 = vand.u32 4294901760, %v7364_v42  ;;  %8337 = vst [vmem:[#allocation30_spill] sm:$0xff] %v7378_v5 }
 0x5e4   : > { %3871 = vmatprep.mubr.f32.mxu0 %v8250_v62  ;;  %v7286_v62 = vand.u32 4294901760, %v4058_v17 }
 0x5e5   : > { %v8069_v60 = vand.u32 4294901760, %v7284_v0  ;;  %v4272_v28 = vsub.f32 %v7364_v42, %v8058_v23 }
 0x5e6   : > { %v7298_v54 = vsub.f32 %v4058_v17, %v7286_v62  ;;  %5393 = vmatpush3.msra.mxu0 %v7286_v62  ;;  %v7380_v17 = vand.u32 4294901760, %v4053_v4 }
 0x5e7   : > { %3873 = vmatmul.mubr.f32.gmra.mxu0 %v7145_v44  ;;  %v4073_v44 = vld [vmem:[#allocation6 + $0xe8] sm:$0xff]  ;;  %v4244_v25 = vsub.f32 %v7284_v0, %v8069_v60  ;;  %v7503_v60 = vand.u32 4294901760, %v4063_v40 }
 0x5e8   : > { %v7293_v52 = vand.u32 4294901760, %v4073_v44  ;;  %8326 = vst [vmem:[#allocation23_spill] sm:$0xff] %v7298_v54  ;;  %v8066_v48 = vand.u32 4294901760, %v7298_v54  ;;  %8338 = vst [vmem:[#allocation41_spill] sm:$0xff] %v7380_v17  ;;  %v7398_v12 = vsub.f32 %v4053_v4, %v7380_v17  ;;  %v8054_v4 = vand.u32 4294901760, %v7408_v8 }
 0x5e9   : > { %v4245_v57 = vand.u32 4294901760, %v4244_v25  ;;  %v8055_v25 = vand.u32 4294901760, %v7378_v5  ;;  %8361 = vst [vmem:[#allocation58_spill] sm:$0xff] %v7503_v60 }
 0x5ea   : > { %v7308_v56 = vsub.f32 %v4073_v44, %v7293_v52  ;;  %5394 = vmatprep.subr.mxu0 %v7293_v52  ;;  %v4251_v63 = vsub.f32 %v7298_v54, %v8066_v48  ;;  %v4384_v44 = vsub.f32 %v7355_v14, %v8059_v38  ;;  %8341 = vst [vmem:[#allocation34_spill] sm:$0xff] %v7398_v12 }
 0x5eb   : > { %5395 = vmatpush3.msra.mxu0 %v7300_v61  ;;  %5435 = vmatpush3.msra.mxu1 %v4245_v57  ;;  %v4391_v57 = vsub.f32 %v7371_v18, %v8056_v1  ;;  %v4279_v19 = vsub.f32 %v7378_v5, %v8055_v25 }
 0x5ec   : > { %8327 = vst [vmem:[#allocation24_spill] sm:$0xff] %v7308_v56  ;;  %v8065_v39 = vand.u32 4294901760, %v7308_v56  ;;  %5396 = vmatprep.subr.mxu0 %v7310_v27  ;;  %v4252_v45 = vand.u32 4294901760, %v4251_v63  ;;  %5436 = vmatprep.subr.mxu1 %v4364_v10  ;;  %v4385_v53 = vand.u32 4294901760, %v4384_v44  ;;  %v8053_v63 = vand.u32 4294901760, %v7388_v36  ;;  %v4051_v10 = vld [vmem:[#allocation6 + $0x38] sm:$0xff] }
 0x5ed   : > { %5397 = vmatpush3.msra.mxu0 %v7320_v6  ;;  %v4280_v31 = vand.u32 4294901760, %v4279_v19  ;;  %v4065_v44 = vld [vmem:[#allocation6 + $0xa8] sm:$0xff] }
 0x5ee   : > { %v4370_v30 = vsub.f32 %v7308_v56, %v8065_v39  ;;  %5398 = vmatprep.subr.mxu0 %v7343_v34  ;;  %5437 = vmatpush3.msra.mxu1 %v4252_v45  ;;  %v8052_v45 = vand.u32 4294901760, %v7398_v12  ;;  %v4398_v22 = vsub.f32 %v7388_v36, %v8053_v63  ;;  %v4049_v19 = vld [vmem:[#allocation6 + $0x28] sm:$0xff]  ;;  %v4293_v63 = vsub.f32 %v7416_v55, %v8057_v21  ;;  %v2990_v55 = vld [vmem:[%s7958_s10] sm:$0x3] }
 0x5ef   : > { %5399 = vmatpush3.msra.mxu0 %v7349_v32  ;;  %v7460_v38 = vand.u32 4294901760, %v4049_v19 }
 0x5f0   : > { %v4371_v15 = vand.u32 4294901760, %v4370_v30  ;;  %5400 = vmatprep.subr.mxu0 %v7357_v9  ;;  %v4273_v30 = vand.u32 4294901760, %v4272_v28  ;;  %v4399_v28 = vand.u32 4294901760, %v4398_v22  ;;  %v7446_v22 = vand.u32 4294901760, %v4050_v43 }
 0x5f1   : > { %5401 = vmatpush3.msra.mxu0 %v7366_v50  ;;  %8354 = vst [vmem:[#allocation51_spill] sm:$0xff] %v7460_v38 }
 0x5f2   : > { %5438 = vmatprep.subr.mxu1 %v4371_v15  ;;  %5402 = vmatprep.subr.mxu0 %v7373_v16  ;;  %v4392_v15 = vand.u32 4294901760, %v4391_v57  ;;  %8350 = vst [vmem:[#allocation47_spill] sm:$0xff] %v7446_v22  ;;  %v7458_v23 = vsub.f32 %v4050_v43, %v7446_v22 }
 0x5f3   : > { %5439 = vmatpush3.msra.mxu1 %v4259_v41  ;;  %5403 = vmatpush3.msra.mxu0 %v7380_v17  ;;  %v7423_v41 = vand.u32 4294901760, %v4067_v33 }
 0x5f4   : > { %5440 = vmatprep.subr.mxu1 %v4378_v29  ;;  %5404 = vmatprep.subr.mxu0 %v7390_v20  ;;  %v4286_v29 = vsub.f32 %v7398_v12, %v8052_v45  ;;  %8353 = vst [vmem:[#allocation50_spill] sm:$0xff] %v7458_v23  ;;  %v8071_v43 = vand.u32 4294901760, %v7458_v23 }
 0x5f5   : > { %5441 = vmatpush3.msra.mxu1 %v4266_v3  ;;  %5405 = vmatpush3.msra.mxu0 %v7400_v13  ;;  %8345 = vst [vmem:[#allocation45_spill] sm:$0xff] %v7423_v41  ;;  %v7429_v3 = vand.u32 4294901760, %v4051_v10  ;;  %v7435_v57 = vsub.f32 %v4067_v33, %v7423_v41 }
 0x5f6   : > { %5442 = vmatprep.subr.mxu1 %v4385_v53  ;;  %v4405_v53 = vsub.f32 %v7408_v8, %v8054_v4  ;;  %5406 = vmatprep.subr.mxu0 %v7423_v41  ;;  %v4287_v45 = vand.u32 4294901760, %v4286_v29  ;;  %v4064_v4 = vld [vmem:[#allocation6 + $0xa0] sm:$0xff]  ;;  %v4307_v39 = vsub.f32 %v7458_v23, %v8071_v43 }
 0x5f7   : > { %5443 = vmatpush3.msra.mxu1 %v4273_v30  ;;  %8346 = vst [vmem:[#allocation40_spill] sm:$0xff] %v7429_v3  ;;  %8347 = vst [vmem:[#allocation42_spill] sm:$0xff] %v7435_v57  ;;  %v7437_v30 = vand.u32 4294901760, %v4066_v59  ;;  %5407 = vmatpush3.msra.mxu0 %v7429_v3  ;;  %v8060_v25 = vand.u32 4294901760, %v7435_v57  ;;  %v4048_v29 = vld [vmem:[#allocation6 + $0x20] sm:$0xff] }
 0x5f8   : > { %5444 = vmatprep.subr.mxu1 %v4392_v15  ;;  %v7444_v15 = vsub.f32 %v4051_v10, %v7429_v3  ;;  %v4406_v33 = vand.u32 4294901760, %v4405_v53  ;;  %v4294_v10 = vand.u32 4294901760, %v4293_v63  ;;  %v7470_v63 = vand.u32 4294901760, %v4064_v4 }
 0x5f9   : > { %8348 = vst [vmem:[#allocation43_spill] sm:$0xff] %v7437_v30  ;;  %5445 = vmatpush3.msra.mxu1 %v4280_v31  ;;  %v7451_v1 = vsub.f32 %v4066_v59, %v7437_v30  ;;  %v7453_v31 = vand.u32 4294901760, %v4065_v44  ;;  %5408 = vmatprep.subr.mxu0 %v7437_v30  ;;  %v4412_v59 = vsub.f32 %v7435_v57, %v8060_v25  ;;  %v7480_v25 = vand.u32 4294901760, %v4048_v29 }
 0x5fa   : > { %8349 = vst [vmem:[#allocation46_spill] sm:$0xff] %v7444_v15  ;;  %5446 = vmatprep.subr.mxu1 %v4399_v28  ;;  %v8064_v21 = vand.u32 4294901760, %v7444_v15  ;;  %5409 = vmatpush3.msra.mxu0 %v7446_v22  ;;  %8356 = vst [vmem:[#allocation53_spill] sm:$0xff] %v7470_v63  ;;  %v7488_v58 = vsub.f32 %v4064_v4, %v7470_v63  ;;  %v4308_v43 = vand.u32 4294901760, %v4307_v39  ;;  %v4045_v39 = vld [vmem:[#allocation6 + $0x8] sm:$0xff] }
 0x5fb   : > { %8351 = vst [vmem:[#allocation48_spill] sm:$0xff] %v7451_v1  ;;  %8352 = vst [vmem:[#allocation49_spill] sm:$0xff] %v7453_v31  ;;  %5447 = vmatpush3.msra.mxu1 %v4287_v45  ;;  %v8068_v28 = vand.u32 4294901760, %v7451_v1  ;;  %v7468_v53 = vsub.f32 %v4065_v44, %v7453_v31  ;;  %5410 = vmatprep.subr.mxu0 %v7453_v31  ;;  %v4413_v44 = vand.u32 4294901760, %v4412_v59 }
 0x5fc   : > { %5448 = vmatprep.subr.mxu1 %v4406_v33  ;;  %v4300_v45 = vsub.f32 %v7444_v15, %v8064_v21  ;;  %v7478_v33 = vsub.f32 %v4049_v19, %v7460_v38  ;;  %8358 = vst [vmem:[#allocation55_spill] sm:$0xff] %v7480_v25  ;;  %5411 = vmatpush3.msra.mxu0 %v7460_v38  ;;  %8359 = vst [vmem:[#allocation56_spill] sm:$0xff] %v7488_v58  ;;  %v4047_v21 = vld [vmem:[#allocation6 + $0x18] sm:$0xff] }
 0x5fd   : > { %8355 = vst [vmem:[#allocation52_spill] sm:$0xff] %v7468_v53  ;;  %5449 = vmatpush3.msra.mxu1 %v4294_v10  ;;  %v4419_v37 = vsub.f32 %v7451_v1, %v8068_v28  ;;  %v8076_v10 = vand.u32 4294901760, %v7468_v53  ;;  %5412 = vmatprep.subr.mxu0 %v7470_v63  ;;  %v7496_v59 = vsub.f32 %v4048_v29, %v7480_v25  ;;  %v7509_v1 = vand.u32 4294901760, %v4047_v21 }
 0x5fe   : > { %8357 = vst [vmem:[#allocation54_spill] sm:$0xff] %v7478_v33  ;;  %v4301_v19 = vand.u32 4294901760, %v4300_v45  ;;  %v8079_v48 = vand.u32 4294901760, %v7478_v33  ;;  %5413 = vmatpush3.msra.mxu0 %v7480_v25  ;;  %5450 = vmatprep.subr.mxu1 %v4413_v44  ;;  %v8082_v45 = vand.u32 4294901760, %v7488_v58 }
 0x5ff   : > { %8360 = vst [vmem:[#allocation57_spill] sm:$0xff] %v7496_v59  ;;  %v4420_v28 = vand.u32 4294901760, %v4419_v37  ;;  %v4426_v4 = vsub.f32 %v7468_v53, %v8076_v10  ;;  %v8087_v23 = vand.u32 4294901760, %v7496_v59  ;;  %8362 = vst [vmem:[#allocation59_spill] sm:$0xff] %v7509_v1  ;;  %v4061_v37 = vld [vmem:[#allocation6 + $0x88] sm:$0xff]  ;;  %v7515_v53 = vsub.f32 %v4063_v40, %v7503_v60  ;;  %5414 = vmatprep.subr.mxu0 %v7503_v60 }
 0x600   : > { %5451 = vmatpush3.msra.mxu1 %v4301_v19  ;;  %v4314_v29 = vsub.f32 %v7478_v33, %v8079_v48  ;;  %v4433_v10 = vsub.f32 %v7488_v58, %v8082_v45  ;;  %v7517_v19 = vand.u32 4294901760, %v4062_v51  ;;  %v4060_v45 = vld [vmem:[#allocation6 + $0x80] sm:$0xff]  ;;  %5415 = vmatpush3.msra.mxu0 %v7509_v1 }
 0x601   : > { %5452 = vmatprep.subr.mxu1 %v4420_v28  ;;  %v4427_v44 = vand.u32 4294901760, %v4426_v4  ;;  %8363 = vst [vmem:[#allocation60_spill] sm:$0xff] %v7515_v53  ;;  %v4321_v33 = vsub.f32 %v7496_v59, %v8087_v23  ;;  %v7524_v28 = vsub.f32 %v4047_v21, %v7509_v1  ;;  %v7526_v4 = vand.u32 4294901760, %v4046_v24 }
 0x602   : > { %8364 = vst [vmem:[#allocation61_spill] sm:$0xff] %v7517_v19  ;;  %5453 = vmatpush3.msra.mxu1 %v4308_v43  ;;  %v4315_v48 = vand.u32 4294901760, %v4314_v29  ;;  %v4434_v40 = vand.u32 4294901760, %v4433_v10  ;;  %v8092_v58 = vand.u32 4294901760, %v7515_v53  ;;  %v7531_v15 = vsub.f32 %v4062_v51, %v7517_v19  ;;  %v4044_v29 = vld [vmem:[#allocation6] sm:$0xff]  ;;  %5416 = vmatprep.subr.mxu0 %v7517_v19 }
 0x603   : > { %8365 = vst [vmem:[#allocation62_spill] sm:$0xff] %v7524_v28  ;;  %8366 = vst [vmem:[#allocation63_spill] sm:$0xff] %v7526_v4  ;;  %5454 = vmatprep.subr.mxu1 %v4427_v44  ;;  %v7533_v43 = vand.u32 4294901760, %v4061_v37  ;;  %v4322_v21 = vand.u32 4294901760, %v4321_v33  ;;  %v8097_v23 = vand.u32 4294901760, %v7524_v28  ;;  %v7538_v59 = vsub.f32 %v4046_v24, %v7526_v4  ;;  %5417 = vmatpush3.msra.mxu0 %v7526_v4 }
 0x604   : > { %8367 = vst [vmem:[#allocation64_spill] sm:$0xff] %v7531_v15  ;;  %5455 = vmatpush3.msra.mxu1 %v4315_v48  ;;  %v7540_v1 = vand.u32 4294901760, %v4045_v39  ;;  %v4440_v51 = vsub.f32 %v7515_v53, %v8092_v58  ;;  %v8100_v10 = vand.u32 4294901760, %v7531_v15  ;;  %v7550_v48 = vand.u32 4294901760, %v4060_v45 }
 0x605   : > { %8368 = vst [vmem:[#allocation65_spill] sm:$0xff] %v7533_v43  ;;  %8369 = vst [vmem:[#allocation66_spill] sm:$0xff] %v7538_v59  ;;  %5456 = vmatprep.subr.mxu1 %v4434_v40  ;;  %v7548_v44 = vsub.f32 %v4061_v37, %v7533_v43  ;;  %5418 = vmatprep.subr.mxu0 %v7533_v43  ;;  %v4328_v24 = vsub.f32 %v7524_v28, %v8097_v23  ;;  %v8103_v33 = vand.u32 4294901760, %v7538_v59 }
 0x606   : > { %8370 = vst [vmem:[#allocation67_spill] sm:$0xff] %v7540_v1  ;;  %8372 = vst [vmem:[#allocation69_spill] sm:$0xff] %v7550_v48  ;;  %5457 = vmatpush3.msra.mxu1 %v4322_v21  ;;  %v7558_v40 = vsub.f32 %v4045_v39, %v7540_v1  ;;  %v7560_v58 = vand.u32 4294901760, %v4044_v29  ;;  %5419 = vmatpush3.msra.mxu0 %v7540_v1  ;;  %v4441_v37 = vand.u32 4294901760, %v4440_v51 }
 0x607   : > { %8371 = vst [vmem:[#allocation68_spill] sm:$0xff] %v7548_v44  ;;  %v4447_v53 = vsub.f32 %v7531_v15, %v8100_v10  ;;  %v8106_v21 = vand.u32 4294901760, %v7548_v44  ;;  %v7568_v43 = vsub.f32 %v4060_v45, %v7550_v48  ;;  %5420 = vmatprep.subr.mxu0 %v7550_v48  ;;  %v4329_v23 = vand.u32 4294901760, %v4328_v24 }
 0x608   : > { %8373 = vst [vmem:[#allocation70_spill] sm:$0xff] %v7558_v40  ;;  %8374 = vst [vmem:[#allocation71_spill] sm:$0xff] %v7560_v58  ;;  %v4335_v39 = vsub.f32 %v7538_v59, %v8103_v33  ;;  %v8107_v28 = vand.u32 4294901760, %v7558_v40  ;;  %v7576_v51 = vsub.f32 %v4044_v29, %v7560_v58  ;;  %5421 = vmatpush3.msra.mxu0 %v7560_v58  ;;  %5458 = vmatprep.subr.mxu1 %v4441_v37  ;;  %v2992_v48 = vlaneseq }
 0x609   : > { %8375 = vst [vmem:[#allocation72_spill] sm:$0xff] %v7568_v43  ;;  %v4448_v10 = vand.u32 4294901760, %v4447_v53  ;;  %v4454_v45 = vsub.f32 %v7548_v44, %v8106_v21  ;;  %v8111_v15 = vand.u32 4294901760, %v7568_v43  ;;  %5478 = vmatprep.subr.mxu0 %v7278_v35  ;;  %5459 = vmatpush3.msra.mxu1 %v4329_v23  ;;  %v3105_v35 = vpop.f32.mrf.mxu0 }
 0x60a   : > { %8376 = vst [vmem:[#allocation73_spill] sm:$0xff] %v7576_v51  ;;  %v4336_v24 = vand.u32 4294901760, %v4335_v39  ;;  %v4342_v33 = vsub.f32 %v7558_v40, %v8107_v28  ;;  %v8118_v29 = vand.u32 4294901760, %v7576_v51  ;;  %v2993_v19 = vshrl.u32 %v2992_v48, 7 }
 0x60b   : > { %5460 = vmatprep.subr.mxu1 %v4448_v10  ;;  %v4455_v59 = vand.u32 4294901760, %v4454_v45  ;;  %v4461_v53 = vsub.f32 %v7568_v43, %v8111_v15  ;;  %v3370_v10 = vpop.f32.mrf.mxu1  ;;  %v3107_v15 = vpop.f32.mrf.mxu0 }
 0x60c   : > { %5461 = vmatpush3.msra.mxu1 %v4336_v24  ;;  %v4343_v37 = vand.u32 4294901760, %v4342_v33  ;;  %v4349_v21 = vsub.f32 %v7576_v51, %v8118_v29  ;;  %v2994_v25 = vsub.s32 0, %v2993_v19  ;;  %v2998_v8 = vsub.s32 1, %v2993_v19 }
 0x60d   : > { %5462 = vmatprep.subr.mxu1 %v4455_v59  ;;  %v4462_v23 = vand.u32 4294901760, %v4461_v53  ;;  %v3372_v45 = vpop.f32.mrf.mxu1  ;;  %v3116_v33 = vpop.f32.mrf.mxu0 }
 0x60e   : > { %5463 = vmatpush3.msra.mxu1 %v4343_v37  ;;  %v4350_v39 = vand.u32 4294901760, %v4349_v21  ;;  %v2995_v12 = vrot.slane %v2990_v55, %v2994_v25  ;;  %v2999_v36 = vrot.slane %v2990_v55, %v2998_v8 }
 0x60f   : > { %5464 = vmatprep.subr.mxu1 %v4462_v23  ;;  %v3377_v28 = vpop.f32.mrf.mxu1  ;;  %v3118_v44 = vpop.f32.mrf.mxu0 }
 0x610   : > { %5465 = vmatpush3.msra.mxu1 %v4350_v39  ;;  %v3106_v5 = vadd.f32 %v3105_v35, %v2995_v12  ;;  %v3108_v18 = vadd.f32 %v3107_v15, %v2999_v36  ;;  %v3117_v48 = vadd.f32 %v3116_v33, %v2995_v12  ;;  %v3119_v47 = vadd.f32 %v3118_v44, %v2999_v36 }
 0x611   : > { %5522 = vmatprep.subr.mxu1 %v7273_v7  ;;  %v3379_v40 = vpop.f32.mrf.mxu1 }
 0x612   : > { %v3371_v42 = vadd.f32 %v3370_v10, %v3106_v5  ;;  %v3373_v49 = vadd.f32 %v3372_v45, %v3108_v18  ;;  %v3378_v25 = vadd.f32 %v3377_v28, %v3117_v48  ;;  %v3380_v15 = vadd.f32 %v3379_v40, %v3119_v47 }
 0x666   : > { %v3384_v24 = vpop.f32.mrf.mxu1 }
 0x668   : > { %v3386_v43 = vpop.f32.mrf.mxu1 }
 0x66a   : > { %v3391_v58 = vpop.f32.mrf.mxu1 }
 0x66c   : > { %v7595_v53 = vpop.f32.mrf.mxu1 }
 0x66e   : > { %v3127_v29 = vpop.f32.mrf.mxu0  ;;  %v3658_v37 = vpop.f32.mrf.mxu1 }
 0x66f   : > { %v3128_v19 = vadd.f32 %v3127_v29, %v2995_v12 }
 0x670   : > { %v3129_v59 = vpop.f32.mrf.mxu0  ;;  %v3660_v39 = vpop.f32.mrf.mxu1 }
 0x671   : > { %v3130_v55 = vadd.f32 %v3129_v59, %v2999_v36  ;;  %v3385_v50 = vadd.f32 %v3384_v24, %v3128_v19 }
 0x672   : > { %v3138_v21 = vpop.f32.mrf.mxu0 }
 0x673   : > { %v3667_v7 = vpop.f32.mrf.mxu1  ;;  %v3139_v56 = vadd.f32 %v3138_v21, %v2995_v12 }
 0x674   : > { %v3140_v23 = vpop.f32.mrf.mxu0 }
 0x675   : > { %v3669_v4 = vpop.f32.mrf.mxu1  ;;  %v3392_v28 = vadd.f32 %v3391_v58, %v3139_v56 }
 0x676   : > { %v3528_v51 = vpop.f32.mrf.mxu0 }
 0x677   : > { %v3676_v57 = vpop.f32.mrf.mxu1  ;;  %v3529_v13 = vadd.f32 %v3528_v51, %v3371_v42  ;;  %v3387_v51 = vadd.f32 %v3386_v43, %v3130_v55 }
 0x678   : > { %v3530_v1 = vpop.f32.mrf.mxu0 }
 0x679   : > { %v3678_v38 = vpop.f32.mrf.mxu1  ;;  %v3531_v17 = vadd.f32 %v3530_v1, %v3373_v49  ;;  %v3659_v35 = vadd.f32 %v3658_v37, %v3529_v13  ;;  %v3141_v1 = vadd.f32 %v3140_v23, %v2999_v36 }
 0x67b   : > { %v3661_v10 = vadd.f32 %v3660_v39, %v3531_v17 }
 0x67d   : > { %v3536_v60 = vpop.f32.mrf.mxu0  ;;  %v7600_v22 = vpop.f32.mrf.mxu1 }
 0x67e   : > { %v3537_v16 = vadd.f32 %v3536_v60, %v3378_v25 }
 0x67f   : > { %v3538_v63 = vpop.f32.mrf.mxu0  ;;  %v7602_v3 = vpop.f32.mrf.mxu1 }
 0x680   : > { %v3539_v9 = vadd.f32 %v3538_v63, %v3380_v15  ;;  %v3668_v49 = vadd.f32 %v3667_v7, %v3537_v16 }
 0x682   : > { %v3544_v31 = vpop.f32.mrf.mxu0  ;;  %v3670_v40 = vadd.f32 %v3669_v4, %v3539_v9 }
 0x683   : > { %v3545_v42 = vadd.f32 %v3544_v31, %v3385_v50  ;;  %v3394_v31 = vadd.f32 %v7595_v53, %v3141_v1 }
 0x684   : > { %v3546_v30 = vpop.f32.mrf.mxu0 }
 0x685   : > { %v3547_v59 = vadd.f32 %v3546_v30, %v3387_v51  ;;  %v3677_v21 = vadd.f32 %v3676_v57, %v3545_v42 }
 0x687   : > { %v3552_v14 = vpop.f32.mrf.mxu0  ;;  %v3679_v16 = vadd.f32 %v3678_v38, %v3547_v59 }
 0x689   : > { %v3554_v8 = vpop.f32.mrf.mxu0 }
 0x68a   : > { %v3555_v36 = vadd.f32 %v3554_v8, %v3394_v31 }
 0x68c   : > { %v3688_v39 = vadd.f32 %v7602_v3, %v3555_v36 }
 0x694   : > { %v3978_v41 = vpop.f32.mrf.mxu1 }
 0x696   : > { %v3980_v20 = vpop.f32.mrf.mxu1 }
 0x698   : > { %v3985_v11 = vpop.f32.mrf.mxu1 }
 0x69a   : > { %v3987_v33 = vpop.f32.mrf.mxu1 }
 0x69b   : > { %v3853_v54 = vpop.f32.mrf.mxu0 }
 0x69c   : > { %v3854_v5 = vadd.f32 %v3853_v54, %v3659_v35  ;;  %v3992_v13 = vpop.f32.mrf.mxu1  ;;  %v3553_v54 = vadd.f32 %v3552_v14, %v3392_v28 }
 0x69d   : > { %v3855_v18 = vpop.f32.mrf.mxu0 }
 0x69e   : > { %v3979_v44 = vadd.f32 %v3978_v41, %v3854_v5  ;;  %v3856_v29 = vadd.f32 %v3855_v18, %v3661_v10  ;;  %v3994_v7 = vpop.f32.mrf.mxu1  ;;  %v3686_v14 = vadd.f32 %v7600_v22, %v3553_v54 }
 0x69f   : > { %v3860_v45 = vpop.f32.mrf.mxu0 }
 0x6a0   : > { %v4012_v60 = vmul.f32 0.70710677, %v3979_v44  ;;  %v3981_v12 = vadd.f32 %v3980_v20, %v3856_v29  ;;  %v3861_v47 = vadd.f32 %v3860_v45, %v3668_v49 }
 0x6a1   : > { %v3862_v24 = vpop.f32.mrf.mxu0 }
 0x6a2   : > { %6008 = verf.f32 %v4012_v60  ;;  %v4013_v17 = vmul.f32 0.70710677, %v3981_v12  ;;  %v3986_v50 = vadd.f32 %v3985_v11, %v3861_v47  ;;  %v3863_v41 = vadd.f32 %v3862_v24, %v3670_v40  ;;  %v3999_v11 = vpop.f32.mrf.mxu1 }
 0x6a3   : > { %v3867_v63 = vpop.f32.mrf.mxu0  ;;  %v4005_v18 = vmul.f32 0.5, %v3981_v12 }
 0x6a4   : > { %6010 = verf.f32 %v4013_v17  ;;  %v4014_v56 = vmul.f32 0.70710677, %v3986_v50  ;;  %v3868_v58 = vadd.f32 %v3867_v63, %v3677_v21  ;;  %v3988_v30 = vadd.f32 %v3987_v33, %v3863_v41  ;;  %v4001_v8 = vpop.f32.mrf.mxu1 }
 0x6a5   : > { %v3869_v20 = vpop.f32.mrf.mxu0  ;;  %v4004_v33 = vmul.f32 0.5, %v3979_v44  ;;  %v4006_v1 = vmul.f32 0.5, %v3986_v50 }
 0x6a6   : > { %6012 = verf.f32 %v4014_v56  ;;  %v3993_v9 = vadd.f32 %v3992_v13, %v3868_v58  ;;  %v3870_v4 = vadd.f32 %v3869_v20, %v3679_v16  ;;  %v4015_v57 = vmul.f32 0.70710677, %v3988_v30 }
 0x6a7   : > { %v3874_v43 = vpop.f32.mrf.mxu0  ;;  %v4007_v47 = vmul.f32 0.5, %v3988_v30 }
 0x6a8   : > { %v4016_v37 = vmul.f32 0.70710677, %v3993_v9  ;;  %v3995_v53 = vadd.f32 %v3994_v7, %v3870_v4  ;;  %v3875_v23 = vadd.f32 %v3874_v43, %v3686_v14  ;;  %6014 = verf.f32 %v4015_v57 }
 0x6a9   : > { %v3876_v48 = vpop.f32.mrf.mxu0  ;;  %v4008_v24 = vmul.f32 0.5, %v3993_v9 }
 0x6aa   : > { %6016 = verf.f32 %v4016_v37  ;;  %v4017_v38 = vmul.f32 0.70710677, %v3995_v53  ;;  %v4000_v19 = vadd.f32 %v3999_v11, %v3875_v23  ;;  %v3877_v25 = vadd.f32 %v3876_v48, %v3688_v39 }
 0x6ab   : > { %v4009_v63 = vmul.f32 0.5, %v3995_v53 }
 0x6ac   : > { %6018 = verf.f32 %v4017_v38  ;;  %v4018_v55 = vmul.f32 0.70710677, %v4000_v19  ;;  %v4002_v35 = vadd.f32 %v4001_v8, %v3877_v25  ;;  %v4010_v16 = vmul.f32 0.5, %v4000_v19 }
 0x6ae   : > { %6020 = verf.f32 %v4018_v55  ;;  %v4019_v15 = vmul.f32 0.70710677, %v4002_v35  ;;  %v4011_v48 = vmul.f32 0.5, %v4002_v35 }
 0x6af   : > { %v6009_v22 = vpop.eup %6008 }
 0x6b0   : > { %v4028_v5 = vadd.f32 1.0, %v6009_v22  ;;  %6022 = verf.f32 %v4019_v15 }
 0x6b1   : > { %v6011_v10 = vpop.eup %6010 }
 0x6b2   : > { %v4036_v42 = vmul.f32 %v4028_v5, %v4004_v33  ;;  %v4029_v51 = vadd.f32 1.0, %v6011_v10 }
 0x6b3   : > { %v6013_v3 = vpop.eup %6012 }
 0x6b4   : > { %v7607_v29 = vand.u32 4294901760, %v4036_v42  ;;  %v4037_v49 = vmul.f32 %v4029_v51, %v4005_v18  ;;  %v4030_v28 = vadd.f32 1.0, %v6013_v3  ;;  %v8384_v51 = vld [vmem:[#allocation26_spill] sm:$0xff]  ;;  %v8385_v3 = vld [vmem:[#allocation23_spill] sm:$0xff] }
 0x6b5   : > { %v6015_v45 = vpop.eup %6014 }
 0x6b6   : > { %8377 = vst [vmem:[#allocation74_spill] sm:$0xff] %v7607_v29  ;;  %v7610_v59 = vsub.f32 %v4036_v42, %v7607_v29  ;;  %v4038_v60 = vmul.f32 %v4030_v28, %v4006_v1  ;;  %v7612_v13 = vand.u32 4294901760, %v4037_v49  ;;  %v4031_v40 = vadd.f32 1.0, %v6015_v45  ;;  %v8386_v45 = vld [vmem:[#allocation27_spill] sm:$0xff] }
 0x6b7   : > { %v6017_v44 = vpop.eup %6016 }
 0x6b8   : > { %v8194_v12 = vand.u32 4294901760, %v7610_v59  ;;  %v4032_v21 = vadd.f32 1.0, %v6017_v44  ;;  %4465 = vmatprep.mubr.f32.mxu1 %v7612_v13  ;;  %v7616_v54 = vand.u32 4294901760, %v4038_v60  ;;  %v7619_v17 = vsub.f32 %v4037_v49, %v7612_v13  ;;  %v8387_v44 = vld [vmem:[#allocation24_spill] sm:$0xff] }
 0x6b9   : > { %v6019_v50 = vpop.eup %6018  ;;  %v4039_v31 = vmul.f32 %v4031_v40, %v4007_v47  ;;  %4467 = vmatmul.mubr.f32.vlgmr.msra.gmra.mxu1 %v7607_v29  ;;  %v8388_v40 = vld [vmem:[#allocation39_spill] sm:$0xff]  ;;  %v8428_v29 = vand.u32 4294901760, %v7610_v59 }
 0x6ba   : > { %8378 = vst [vmem:[#allocation75_spill] sm:$0xff] %v7616_v54  ;;  %v4040_v41 = vmul.f32 %v4032_v21, %v4008_v24  ;;  %v4033_v7 = vadd.f32 1.0, %v6019_v50  ;;  %5523 = vmatpush3.msra.mxu1 %v7275_v2  ;;  %v4181_v56 = vand.u32 4294901760, %v7619_v17  ;;  %v7628_v30 = vsub.f32 %v4038_v60, %v7616_v54  ;;  %v8389_v21 = vld [vmem:[#allocation28_spill] sm:$0xff] }
 0x6bb   : > { %v6021_v58 = vpop.eup %6020  ;;  %5524 = vmatprep.subr.mxu1 %v7280_v46  ;;  %v7625_v36 = vand.u32 4294901760, %v4039_v31  ;;  %v4188_v14 = vsub.f32 %v7610_v59, %v8194_v12  ;;  %v8421_v12 = vld [vmem:[#allocation54_spill] sm:$0xff] }
 0x6bc   : > { %v4041_v20 = vmul.f32 %v4033_v7, %v4009_v63  ;;  %v4034_v9 = vadd.f32 1.0, %v6021_v58  ;;  %5525 = vmatpush3.msra.mxu1 %v7286_v62  ;;  %v4182_v4 = vsub.f32 %v7619_v17, %v4181_v56  ;;  %v7639_v57 = vand.u32 4294901760, %v4040_v41  ;;  %v8391_v63 = vld [vmem:[#allocation31_spill] sm:$0xff]  ;;  %v8392_v58 = vld [vmem:[#allocation44_spill] sm:$0xff] }
 0x6bd   : > { %8379 = vst [vmem:[#allocation76_spill] sm:$0xff] %v7625_v36  ;;  %4472 = vmatprep.mubr.f32.mxu1 %v7625_v36  ;;  %5526 = vmatprep.subr.mxu1 %v7293_v52  ;;  %v7642_v43 = vsub.f32 %v4039_v31, %v7625_v36  ;;  %v6023_v11 = vpop.eup %6022  ;;  %v8192_v39 = vand.u32 4294901760, %v7628_v30  ;;  %v4189_v25 = vand.u32 4294901760, %v4188_v14  ;;  %v8427_v36 = vld [vmem:[#allocation60_spill] sm:$0xff] }
 0x6be   : > { %8380 = vst [vmem:[#allocation77_spill] sm:$0xff] %v7639_v57  ;;  %v4042_v37 = vmul.f32 %v4034_v9, %v4010_v16  ;;  %4474 = vmatmul.mubr.f32.gmra.mxu1 %v7616_v54  ;;  %v4183_v53 = vand.u32 4294901760, %v4182_v4  ;;  %v7645_v23 = vand.u32 4294901760, %v4041_v20  ;;  %v4035_v38 = vadd.f32 1.0, %v6023_v11  ;;  %v8393_v16 = vld [vmem:[#allocation32_spill] sm:$0xff]  ;;  %v8395_v4 = vld [vmem:[#allocation25_spill] sm:$0xff] }
 0x6bf   : > { %5527 = vmatpush3.msra.mxu1 %v7300_v61  ;;  %v8193_v19 = vand.u32 4294901760, %v7642_v43  ;;  %v7655_v55 = vsub.f32 %v4040_v41, %v7639_v57  ;;  %v4203_v33 = vsub.f32 %v7628_v30, %v8192_v39  ;;  %v8390_v41 = vld [vmem:[#allocation41_spill] sm:$0xff]  ;;  %v8419_v39 = vld [vmem:[#allocation52_spill] sm:$0xff]  ;;  %v8426_v54 = vld [vmem:[#allocation71_spill] sm:$0xff] }
 0x6c0   : > { %8381 = vst [vmem:[#allocation78_spill] sm:$0xff] %v7645_v23  ;;  %5528 = vmatprep.subr.mxu1 %v7310_v27  ;;  %4184 = vmatprep.mubr.f32.mxu0 %v4183_v53  ;;  %v7652_v8 = vsub.f32 %v4041_v20, %v7645_v23  ;;  %v4043_v22 = vmul.f32 %v4035_v38, %v4011_v48  ;;  %v7662_v15 = vand.u32 4294901760, %v4042_v37  ;;  %v8394_v20 = vld [vmem:[#allocation35_spill] sm:$0xff]  ;;  %v8396_v11 = vld [vmem:[#allocation45_spill] sm:$0xff]  ;;  %v8397_v53 = vld [vmem:[#allocation36_spill] sm:$0xff] }
 0x6c1   : > { %5529 = vmatpush3.msra.mxu1 %v7320_v6  ;;  %4479 = vmatprep.mubr.f32.mxu1 %v7645_v23  ;;  %v4197_v35 = vsub.f32 %v7642_v43, %v8193_v19  ;;  %v8190_v18 = vand.u32 4294901760, %v7655_v55  ;;  %v4204_v60 = vand.u32 4294901760, %v4203_v33  ;;  %v8398_v48 = vld [vmem:[#allocation40_spill] sm:$0xff]  ;;  %v8400_v38 = vld [vmem:[#allocation43_spill] sm:$0xff]  ;;  %v8403_v33 = vld [vmem:[#allocation33_spill] sm:$0xff] }
 0x6c2   : > { %8382 = vst [vmem:[#allocation79_spill] sm:$0xff] %v7662_v15  ;;  %5530 = vmatprep.subr.mxu1 %v7343_v34  ;;  %4190 = vmatmul.mubr.f32.vlgmr.msra.gmra.mxu0 %v4189_v25  ;;  %v8191_v5 = vand.u32 4294901760, %v7652_v8  ;;  %v7671_v42 = vand.u32 4294901760, %v4043_v22  ;;  %v7685_v28 = vsub.f32 %v4042_v37, %v7662_v15  ;;  %v8401_v25 = vld [vmem:[#allocation30_spill] sm:$0xff]  ;;  %v8420_v19 = vld [vmem:[#allocation65_spill] sm:$0xff] }
 0x6c3   : > { %4481 = vmatmul.mubr.f32.gmra.mxu1 %v7639_v57  ;;  %5479 = vmatpush3.msra.mxu0 %v7284_v0  ;;  %v4198_v10 = vand.u32 4294901760, %v4197_v35  ;;  %v4218_v24 = vsub.f32 %v7655_v55, %v8190_v18  ;;  %v8416_v18 = vld [vmem:[#allocation61_spill] sm:$0xff] }
 0x6c4   : > { %8383 = vst [vmem:[#allocation80_spill] sm:$0xff] %v7671_v42  ;;  %5531 = vmatpush3.msra.mxu1 %v7349_v32  ;;  %5480 = vmatprep.subr.mxu0 %v7291_v26  ;;  %v4212_v49 = vsub.f32 %v7652_v8, %v8191_v5  ;;  %v7682_v1 = vsub.f32 %v4043_v22, %v7671_v42  ;;  %v8188_v31 = vand.u32 4294901760, %v7685_v28  ;;  %v8402_v22 = vld [vmem:[#allocation47_spill] sm:$0xff]  ;;  %v8417_v5 = vld [vmem:[#allocation50_spill] sm:$0xff]  ;;  %v8424_v57 = vld [vmem:[#allocation69_spill] sm:$0xff] }
 0x6c5   : > { %5532 = vmatprep.subr.mxu1 %v8384_v51  ;;  %5481 = vmatpush3.msra.mxu0 %v8385_v3  ;;  %v4219_v9 = vand.u32 4294901760, %v4218_v24  ;;  %v8407_v24 = vld [vmem:[#allocation37_spill] sm:$0xff] }
 0x6c6   : > { %5533 = vmatpush3.msra.mxu1 %v8386_v45  ;;  %4199 = vmatprep.mubr.f32.mxu0 %v4198_v10  ;;  %v8189_v47 = vand.u32 4294901760, %v7682_v1  ;;  %v4213_v50 = vand.u32 4294901760, %v4212_v49  ;;  %v4233_v14 = vsub.f32 %v7685_v28, %v8188_v31  ;;  %v8404_v10 = vld [vmem:[#allocation49_spill] sm:$0xff]  ;;  %v8405_v49 = vld [vmem:[#allocation34_spill] sm:$0xff] }
 0x6c7   : > { %4486 = vmatprep.mubr.f32.mxu1 %v7671_v42  ;;  %5482 = vmatprep.subr.mxu0 %v8387_v44  ;;  %v8413_v31 = vld [vmem:[#allocation46_spill] sm:$0xff]  ;;  %v8423_v42 = vld [vmem:[#allocation56_spill] sm:$0xff]  ;;  %v8425_v23 = vld [vmem:[#allocation57_spill] sm:$0xff] }
 0x6c8   : > { %5534 = vmatprep.subr.mxu1 %v8388_v40  ;;  %4205 = vmatmul.mubr.f32.gmra.mxu0 %v4204_v60  ;;  %v4227_v7 = vsub.f32 %v7682_v1, %v8189_v47  ;;  %v4234_v35 = vand.u32 4294901760, %v4233_v14  ;;  %v8406_v60 = vld [vmem:[#allocation51_spill] sm:$0xff]  ;;  %v8411_v14 = vld [vmem:[#allocation42_spill] sm:$0xff]  ;;  %v8415_v47 = vld [vmem:[#allocation48_spill] sm:$0xff] }
 0x6c9   : > { %4488 = vmatmul.mubr.f32.gmra.mxu1 %v7662_v15  ;;  %5483 = vmatpush3.msra.mxu0 %v8389_v21  ;;  %v8422_v15 = vld [vmem:[#allocation67_spill] sm:$0xff] }
 0x6ca   : > { %5535 = vmatpush3.msra.mxu1 %v8390_v41  ;;  %5484 = vmatprep.subr.mxu0 %v8391_v63  ;;  %v4228_v37 = vand.u32 4294901760, %v4227_v7  ;;  %v8409_v7 = vld [vmem:[#allocation38_spill] sm:$0xff] }
 0x6cb   : > { %5536 = vmatprep.subr.mxu1 %v8392_v58  ;;  %4757 = vmatprep.mubr.f32.mxu1 %v4181_v56  ;;  %v8399_v56 = vld [vmem:[#allocation29_spill] sm:$0xff] }
 0x6cc   : > { %5485 = vmatpush3.msra.mxu0 %v8393_v16  ;;  %5537 = vmatpush3.msra.mxu1 %v8394_v20 }
 0x6cd   : > { %4214 = vmatprep.mubr.f32.mxu0 %v4213_v50  ;;  %5486 = vmatprep.subr.mxu0 %v8395_v4  ;;  %v8408_v50 = vld [vmem:[#allocation53_spill] sm:$0xff] }
 0x6ce   : > { %5538 = vmatprep.subr.mxu1 %v8396_v11  ;;  %4220 = vmatmul.mubr.f32.gmra.mxu0 %v4219_v9  ;;  %v8410_v9 = vld [vmem:[#allocation55_spill] sm:$0xff] }
 0x6cf   : > { %5487 = vmatpush3.msra.mxu0 %v8397_v53  ;;  %5539 = vmatpush3.msra.mxu1 %v8398_v48 }
 0x6d0   : > { %5488 = vmatprep.subr.mxu0 %v8399_v56  ;;  %5540 = vmatprep.subr.mxu1 %v8400_v38 }
 0x6d1   : > { %5489 = vmatpush3.msra.mxu0 %v8401_v25  ;;  %5541 = vmatpush3.msra.mxu1 %v8402_v22 }
 0x6d2   : > { %4229 = vmatprep.mubr.f32.mxu0 %v4228_v37  ;;  %5490 = vmatprep.subr.mxu0 %v8403_v33  ;;  %v8412_v37 = vld [vmem:[#allocation58_spill] sm:$0xff] }
 0x6d3   : > { %5542 = vmatprep.subr.mxu1 %v8404_v10  ;;  %4235 = vmatmul.mubr.f32.gmra.mxu0 %v4234_v35  ;;  %v8414_v35 = vld [vmem:[#allocation59_spill] sm:$0xff] }
 0x6d4   : > { %5491 = vmatpush3.msra.mxu0 %v8405_v49  ;;  %5543 = vmatpush3.msra.mxu1 %v8406_v60 }
 0x6d5   : > { %5492 = vmatprep.subr.mxu0 %v8407_v24  ;;  %4623 = vmatprep.mubr.f32.mxu0 %v7619_v17  ;;  %v8418_v17 = vld [vmem:[#allocation63_spill] sm:$0xff] }
 0x6d6   : > { %5544 = vmatprep.subr.mxu1 %v8408_v50  ;;  %5493 = vmatpush3.msra.mxu0 %v8409_v7 }
 0x6d7   : > { %5545 = vmatpush3.msra.mxu1 %v8410_v9  ;;  %5494 = vmatprep.subr.mxu0 %v8411_v14 }
 0x6d8   : > { %5546 = vmatprep.subr.mxu1 %v8412_v37  ;;  %5495 = vmatpush3.msra.mxu0 %v8413_v31 }
 0x6d9   : > { %5547 = vmatpush3.msra.mxu1 %v8414_v35  ;;  %5496 = vmatprep.subr.mxu0 %v8415_v47 }
 0x6da   : > { %5548 = vmatprep.subr.mxu1 %v8416_v18  ;;  %5497 = vmatpush3.msra.mxu0 %v8417_v5 }
 0x6db   : > { %5549 = vmatpush3.msra.mxu1 %v8418_v17  ;;  %5498 = vmatprep.subr.mxu0 %v8419_v39  ;;  %v8429_v39 = vld [vmem:[#allocation21_spill] sm:$0xff] }
 0x6dc   : > { %5550 = vmatprep.subr.mxu1 %v8420_v19  ;;  %5499 = vmatpush3.msra.mxu0 %v8421_v12  ;;  %v8430_v19 = vld [vmem:[#allocation62_spill] sm:$0xff]  ;;  %v8431_v12 = vand.u32 4294901760, %v7642_v43 }
 0x6dd   : > { %5551 = vmatpush3.msra.mxu1 %v8422_v15  ;;  %5500 = vmatprep.subr.mxu0 %v8423_v42  ;;  %v8432_v42 = vld [vmem:[#allocation64_spill] sm:$0xff] }
 0x6de   : > { %5552 = vmatprep.subr.mxu1 %v8424_v57  ;;  %5501 = vmatpush3.msra.mxu0 %v8425_v23  ;;  %v8433_v23 = vld [vmem:[#allocation66_spill] sm:$0xff] }
 0x6df   : > { %5553 = vmatpush3.msra.mxu1 %v8426_v54  ;;  %5502 = vmatprep.subr.mxu0 %v8427_v36  ;;  %v8434_v36 = vld [vmem:[#allocation68_spill] sm:$0xff] }
 0x6e0   : > { %4761 = vmatmul.mubr.f32.vlgmr.msra.gmra.mxu1 %v8428_v29  ;;  %5610 = vmatprep.subr.mxu1 %v8429_v39  ;;  %v8435_v29 = vand.u32 4294901760, %v7628_v30  ;;  %v8436_v39 = vld [vmem:[#allocation70_spill] sm:$0xff] }
 0x6e1   : > { %5503 = vmatpush3.msra.mxu0 %v8430_v19  ;;  %4768 = vmatprep.mubr.f32.mxu1 %v8431_v12  ;;  %v8437_v12 = vand.u32 4294901760, %v7652_v8 }
 0x6e2   : > { %5611 = vmatpush3.msra.mxu1 %v7275_v2  ;;  %5504 = vmatprep.subr.mxu0 %v8432_v42  ;;  %v8438_v2 = vld [vmem:[#allocation72_spill] sm:$0xff] }
 0x6e3   : > { %5612 = vmatprep.subr.mxu1 %v7280_v46  ;;  %5505 = vmatpush3.msra.mxu0 %v8433_v23  ;;  %v8439_v46 = vld [vmem:[#allocation73_spill] sm:$0xff] }
 0x6e4   : > { %5613 = vmatpush3.msra.mxu1 %v7286_v62  ;;  %5506 = vmatprep.subr.mxu0 %v8434_v36  ;;  %v8440_v62 = vand.u32 4294901760, %v7655_v55 }
 0x6e5   : > { %4772 = vmatmul.mubr.f32.gmra.mxu1 %v8435_v29  ;;  %5614 = vmatprep.subr.mxu1 %v7293_v52  ;;  %v8441_v52 = vld [vmem:[#allocation22_spill] sm:$0xff] }
 0x6e6   : > { %5507 = vmatpush3.msra.mxu0 %v8436_v39  ;;  %4779 = vmatprep.mubr.f32.mxu1 %v8437_v12  ;;  %v8442_v29 = vand.u32 4294901760, %v8441_v52 }
 0x6e7   : > { %5615 = vmatpush3.msra.mxu1 %v7300_v61  ;;  %5508 = vmatprep.subr.mxu0 %v8438_v2  ;;  %v8443_v61 = vand.u32 4294901760, %v7682_v1 }
 0x6e8   : > { %5616 = vmatprep.subr.mxu1 %v7310_v27  ;;  %5509 = vmatpush3.msra.mxu0 %v8439_v46  ;;  %v8444_v27 = vand.u32 4294901760, %v7284_v0  ;;  %v8448_v0 = vand.u32 4294901760, %v8387_v44  ;;  %v8459_v44 = vand.u32 4294901760, %v8409_v7 }
 0x6e9   : > { %5617 = vmatpush3.msra.mxu1 %v7320_v6  ;;  %4626 = vmatmul.mubr.f32.vlgmr.msra.gmra.mxu0 %v7610_v59  ;;  %v8445_v6 = vand.u32 4294901760, %v7291_v26  ;;  %v8446_v59 = vand.u32 4294901760, %v8385_v3  ;;  %v8449_v26 = vand.u32 4294901760, %v8389_v21  ;;  %v8455_v3 = vand.u32 4294901760, %v8401_v25 }
 0x6ea   : > { %4783 = vmatmul.mubr.f32.gmra.mxu1 %v8440_v62  ;;  %5566 = vmatprep.subr.mxu0 %v8442_v29  ;;  %v8463_v21 = vand.u32 4294901760, %v8417_v5  ;;  %v8482_v25 = vand.u32 4294901760, %v8436_v39 }
 0x6eb   : > { %5618 = vmatprep.subr.mxu1 %v7343_v34  ;;  %4632 = vmatprep.mubr.f32.mxu0 %v7642_v43  ;;  %v8447_v34 = vand.u32 4294901760, %v7685_v28  ;;  %v8452_v43 = vand.u32 4294901760, %v8395_v4  ;;  %v8473_v4 = vld [vmem:[#allocation60_spill] sm:$0xff] }
 0x6ec   : > { %4790 = vmatprep.mubr.f32.mxu1 %v8443_v61  ;;  %5567 = vmatpush3.msra.mxu0 %v8444_v27 }
 0x6ed   : > { %5619 = vmatpush3.msra.mxu1 %v7349_v32  ;;  %5568 = vmatprep.subr.mxu0 %v8445_v6  ;;  %v8450_v32 = vand.u32 4294901760, %v8391_v63 }
 0x6ee   : > { %5620 = vmatprep.subr.mxu1 %v8384_v51  ;;  %5569 = vmatpush3.msra.mxu0 %v8446_v59  ;;  %v8454_v51 = vand.u32 4294901760, %v8399_v56  ;;  %v8477_v56 = vld [vmem:[#allocation76_spill] sm:$0xff] }
 0x6ef   : > { %5621 = vmatpush3.msra.mxu1 %v8386_v45  ;;  %4635 = vmatmul.mubr.f32.gmra.mxu0 %v7628_v30  ;;  %v8451_v30 = vand.u32 4294901760, %v8393_v16  ;;  %v8458_v45 = vand.u32 4294901760, %v8407_v24  ;;  %v8467_v16 = vld [vmem:[#allocation54_spill] sm:$0xff] }
 0x6f0   : > { %4794 = vmatmul.mubr.f32.gmra.mxu1 %v8447_v34  ;;  %5570 = vmatprep.subr.mxu0 %v8448_v0 }
 0x6f1   : > { %5622 = vmatprep.subr.mxu1 %v8388_v40  ;;  %4641 = vmatprep.mubr.f32.mxu0 %v7652_v8  ;;  %v8453_v8 = vand.u32 4294901760, %v8397_v53  ;;  %v8461_v40 = vand.u32 4294901760, %v8413_v31  ;;  %v8468_v31 = vand.u32 4294901760, %v8467_v16  ;;  %v8475_v53 = vld [vmem:[#allocation74_spill] sm:$0xff] }
 0x6f2   : > { %5571 = vmatpush3.msra.mxu0 %v8449_v26  ;;  %5623 = vmatpush3.msra.mxu1 %v8390_v41  ;;  %v8464_v41 = vld [vmem:[#allocation52_spill] sm:$0xff] }
 0x6f3   : > { %5085 = vmatprep.mubr.f32.mxu1 %v7612_v13  ;;  %5572 = vmatprep.subr.mxu0 %v8450_v32  ;;  %v8465_v63 = vand.u32 4294901760, %v8464_v41 }
 0x6f4   : > { %5624 = vmatprep.subr.mxu1 %v8392_v58  ;;  %5573 = vmatpush3.msra.mxu0 %v8451_v30  ;;  %v8466_v58 = vld [vmem:[#allocation65_spill] sm:$0xff] }
 0x6f5   : > { %5625 = vmatpush3.msra.mxu1 %v8394_v20  ;;  %4644 = vmatmul.mubr.f32.gmra.mxu0 %v7655_v55  ;;  %v8456_v55 = vand.u32 4294901760, %v8403_v33  ;;  %v8469_v20 = vld [vmem:[#allocation56_spill] sm:$0xff]  ;;  %v8485_v33 = vand.u32 4294901760, %v8439_v46 }
 0x6f6   : > { %5574 = vmatprep.subr.mxu0 %v8452_v43  ;;  %5626 = vmatprep.subr.mxu1 %v8396_v11  ;;  %v8474_v11 = vand.u32 4294901760, %v8473_v4 }
 0x6f7   : > { %4650 = vmatprep.mubr.f32.mxu0 %v7682_v1  ;;  %5575 = vmatpush3.msra.mxu0 %v8453_v8  ;;  %v8457_v1 = vand.u32 4294901760, %v8405_v49 }
 0x6f8   : > { %5627 = vmatpush3.msra.mxu1 %v8398_v48  ;;  %5576 = vmatprep.subr.mxu0 %v8454_v51  ;;  %v8476_v48 = vand.u32 4294901760, %v8430_v19  ;;  %v8484_v19 = vand.u32 4294901760, %v8438_v2  ;;  %v5236_v51 = vld [vmem:[%s7960_s12] ss:$0 sm:$0xff] }
 0x6f9   : > { %5628 = vmatprep.subr.mxu1 %v8400_v38  ;;  %5577 = vmatpush3.msra.mxu0 %v8455_v3  ;;  %v8480_v38 = vand.u32 4294901760, %v8434_v36  ;;  %v8487_v36 = vld [vmem:[#allocation80_spill] sm:$0xff] }
 0x6fa   : > { %5629 = vmatpush3.msra.mxu1 %v8402_v22  ;;  %4653 = vmatmul.mubr.f32.gmra.mxu0 %v7685_v28  ;;  %v8460_v28 = vand.u32 4294901760, %v8411_v14  ;;  %v8483_v22 = vld [vmem:[#allocation78_spill] sm:$0xff] }
 0x6fb   : > { %5578 = vmatprep.subr.mxu0 %v8456_v55  ;;  %5630 = vmatprep.subr.mxu1 %v8404_v10 }
 0x6fc   : > { %5579 = vmatpush3.msra.mxu0 %v8457_v1  ;;  %4960 = vmatprep.mubr.f32.mxu0 %v7612_v13  ;;  %v8462_v13 = vand.u32 4294901760, %v8415_v47  ;;  %v8470_v47 = vand.u32 4294901760, %v8469_v20 }
 0x6fd   : > { %5631 = vmatpush3.msra.mxu1 %v8406_v60  ;;  %5580 = vmatprep.subr.mxu0 %v8458_v45 }
 0x6fe   : > { %5632 = vmatprep.subr.mxu1 %v8408_v50  ;;  %5581 = vmatpush3.msra.mxu0 %v8459_v44 }
 0x6ff   : > { %5633 = vmatpush3.msra.mxu1 %v8410_v9  ;;  %5582 = vmatprep.subr.mxu0 %v8460_v28 }
 0x700   : > { %5634 = vmatprep.subr.mxu1 %v8412_v37  ;;  %5583 = vmatpush3.msra.mxu0 %v8461_v40 }
 0x701   : > { %5635 = vmatpush3.msra.mxu1 %v8414_v35  ;;  %5584 = vmatprep.subr.mxu0 %v8462_v13 }
 0x702   : > { %5636 = vmatprep.subr.mxu1 %v8416_v18  ;;  %5585 = vmatpush3.msra.mxu0 %v8463_v21  ;;  %v8471_v18 = vld [vmem:[#allocation57_spill] sm:$0xff] }
 0x703   : > { %5637 = vmatpush3.msra.mxu1 %v8418_v17  ;;  %5586 = vmatprep.subr.mxu0 %v8465_v63  ;;  %v8472_v5 = vand.u32 4294901760, %v8471_v18 }
 0x704   : > { %5638 = vmatprep.subr.mxu1 %v8466_v58  ;;  %5587 = vmatpush3.msra.mxu0 %v8468_v31 }
 0x705   : > { %5639 = vmatpush3.msra.mxu1 %v8422_v15  ;;  %5588 = vmatprep.subr.mxu0 %v8470_v47  ;;  %v8478_v15 = vand.u32 4294901760, %v8432_v42  ;;  %v8488_v42 = vld [vmem:[#allocation79_spill] sm:$0xff] }
 0x706   : > { %5640 = vmatprep.subr.mxu1 %v8424_v57  ;;  %5589 = vmatpush3.msra.mxu0 %v8472_v5  ;;  %v8479_v57 = vand.u32 4294901760, %v8433_v23  ;;  %v8486_v23 = vld [vmem:[#allocation77_spill] sm:$0xff] }
 0x707   : > { %5641 = vmatpush3.msra.mxu1 %v8426_v54  ;;  %5590 = vmatprep.subr.mxu0 %v8474_v11  ;;  %v8481_v54 = vld [vmem:[#allocation75_spill] sm:$0xff] }
 0x708   : > { %5087 = vmatmul.mubr.f32.vlgmr.msra.gmra.mxu1 %v8475_v53  ;;  %5591 = vmatpush3.msra.mxu0 %v8476_v48 }
 0x709   : > { %5092 = vmatprep.mubr.f32.mxu1 %v8477_v56  ;;  %5592 = vmatprep.subr.mxu0 %v8478_v15 }
 0x70a   : > { %5593 = vmatpush3.msra.mxu0 %v8479_v57 }
 0x70b   : > { %5594 = vmatprep.subr.mxu0 %v8480_v38 }
 0x70c   : > { %5094 = vmatmul.mubr.f32.gmra.mxu1 %v8481_v54  ;;  %5595 = vmatpush3.msra.mxu0 %v8482_v25 }
 0x70d   : > { %5099 = vmatprep.mubr.f32.mxu1 %v8483_v22  ;;  %5596 = vmatprep.subr.mxu0 %v8484_v19 }
 0x70e   : > { %5597 = vmatpush3.msra.mxu0 %v8485_v33 }
 0x70f   : > { %4962 = vmatmul.mubr.f32.vlgmr.msra.gmra.mxu0 %v8475_v53 }
 0x710   : > { %5101 = vmatmul.mubr.f32.gmra.mxu1 %v8486_v23  ;;  %4967 = vmatprep.mubr.f32.mxu0 %v8477_v56 }
 0x711   : > { %5106 = vmatprep.mubr.f32.mxu1 %v8487_v36 }
 0x713   : > { %4969 = vmatmul.mubr.f32.gmra.mxu0 %v8481_v54 }
 0x714   : > { %5108 = vmatmul.mubr.f32.gmra.mxu1 %v8488_v42  ;;  %4974 = vmatprep.mubr.f32.mxu0 %v8483_v22 }
 0x717   : > { %4976 = vmatmul.mubr.f32.gmra.mxu0 %v8486_v23 }
 0x718   : > { %4981 = vmatprep.mubr.f32.mxu0 %v8487_v36 }
 0x71b   : > { %4983 = vmatmul.mubr.f32.gmra.mxu0 %v8488_v42 }
 0x779   : > { %v5466_v10 = vpop.f32.mrf.mxu1 }
 0x77b   : > { %v5467_v49 = vpop.f32.mrf.mxu1 }
 0x77c   : > { %v5468_v40 = vadd.f32 %v5467_v49, %v5466_v10 }
 0x77e   : > { %v5469_v24 = vpop.f32.mrf.mxu1 }
 0x780   : > { %v5470_v7 = vpop.f32.mrf.mxu1 }
 0x781   : > { %v5471_v31 = vadd.f32 %v5470_v7, %v5469_v24 }
 0x782   : > { %v5422_v60 = vpop.f32.mrf.mxu0 }
 0x783   : > { %v5472_v14 = vpop.f32.mrf.mxu1 }
 0x784   : > { %v5423_v50 = vpop.f32.mrf.mxu0 }
 0x785   : > { %v5473_v35 = vpop.f32.mrf.mxu1  ;;  %v5424_v8 = vadd.f32 %v5423_v50, %v5422_v60 }
 0x786   : > { %v5474_v54 = vadd.f32 %v5473_v35, %v5472_v14 }
 0x787   : > { %v4192_v45 = vadd.f32 %v5424_v8, %v5236_v51 }
 0x788   : > { %v5425_v9 = vpop.f32.mrf.mxu0 }
 0x789   : > { %v5475_v39 = vpop.f32.mrf.mxu1  ;;  %v4469_v58 = vadd.f32 %v5468_v40, %v4192_v45 }
 0x78a   : > { %v5426_v37 = vpop.f32.mrf.mxu0 }
 0x78b   : > { %v5476_v2 = vpop.f32.mrf.mxu1  ;;  %v5427_v1 = vadd.f32 %v5426_v37, %v5425_v9 }
 0x78c   : > { %v5477_v60 = vadd.f32 %v5476_v2, %v5475_v39 }
 0x78d   : > { %v4207_v41 = vadd.f32 %v5427_v1, %v5236_v51 }
 0x78e   : > { %v5428_v17 = vpop.f32.mrf.mxu0 }
 0x78f   : > { %v4476_v11 = vadd.f32 %v5471_v31, %v4207_v41 }
 0x790   : > { %v5429_v12 = vpop.f32.mrf.mxu0 }
 0x791   : > { %v5430_v63 = vadd.f32 %v5429_v12, %v5428_v17 }
 0x793   : > { %v5431_v62 = vpop.f32.mrf.mxu0  ;;  %v4222_v48 = vadd.f32 %v5430_v63, %v5236_v51 }
 0x795   : > { %v5432_v29 = vpop.f32.mrf.mxu0  ;;  %v4483_v42 = vadd.f32 %v5474_v54, %v4222_v48 }
 0x796   : > { %v5433_v4 = vadd.f32 %v5432_v29, %v5431_v62 }
 0x798   : > { %v4237_v33 = vadd.f32 %v5433_v4, %v5236_v51  ;;  %v8490_v51 = vld [vmem:[#allocation17_spill] sm:$0xff] }
 0x79a   : > { %v4490_v14 = vadd.f32 %v5477_v60, %v4237_v33 }
 0x7a0   : > { %v5554_v46 = vpop.f32.mrf.mxu1 }
 0x7a2   : > { %v5555_v52 = vpop.f32.mrf.mxu1 }
 0x7a3   : > { %v5556_v56 = vadd.f32 %v5555_v52, %v5554_v46  ;;  %v8489_v52 = vld [vmem:[#allocation18_spill] sm:$0xff] }
 0x7a5   : > { %v5557_v27 = vpop.f32.mrf.mxu1 }
 0x7a7   : > { %v5558_v59 = vpop.f32.mrf.mxu1 }
 0x7a8   : > { %v5559_v23 = vadd.f32 %v5558_v59, %v5557_v27 }
 0x7a9   : > { %v5510_v61 = vpop.f32.mrf.mxu0 }
 0x7aa   : > { %v5560_v0 = vpop.f32.mrf.mxu1 }
 0x7ab   : > { %v5511_v6 = vpop.f32.mrf.mxu0 }
 0x7ac   : > { %v5561_v32 = vpop.f32.mrf.mxu1  ;;  %v5512_v13 = vadd.f32 %v5511_v6, %v5510_v61 }
 0x7ad   : > { %v5562_v46 = vadd.f32 %v5561_v32, %v5560_v0 }
 0x7ae   : > { %v4628_v18 = vadd.f32 %v5512_v13, %v4469_v58  ;;  %v8491_v13 = vld [vmem:[#allocation19_spill] sm:$0xff] }
 0x7af   : > { %v5513_v34 = vpop.f32.mrf.mxu0 }
 0x7b0   : > { %v7885_v43 = vpop.f32.mrf.mxu1  ;;  %v4763_v22 = vadd.f32 %v5556_v56, %v4628_v18 }
 0x7b1   : > { %v5514_v26 = vpop.f32.mrf.mxu0 }
 0x7b2   : > { %v5564_v55 = vpop.f32.mrf.mxu1  ;;  %v5515_v20 = vadd.f32 %v5514_v26, %v5513_v34 }
 0x7b4   : > { %v4637_v15 = vadd.f32 %v5515_v20, %v4476_v11 }
 0x7b5   : > { %v5516_v30 = vpop.f32.mrf.mxu0 }
 0x7b6   : > { %v4774_v50 = vadd.f32 %v5559_v23, %v4637_v15 }
 0x7b7   : > { %v5517_v3 = vpop.f32.mrf.mxu0 }
 0x7b8   : > { %v5518_v25 = vadd.f32 %v5517_v3, %v5516_v30  ;;  %v5565_v30 = vadd.f32 %v5564_v55, %v7885_v43  ;;  %v8492_v55 = vld [vmem:[#allocation20_spill] sm:$0xff] }
 0x7ba   : > { %v5519_v28 = vpop.f32.mrf.mxu0  ;;  %v4646_v9 = vadd.f32 %v5518_v25, %v4483_v42 }
 0x7bc   : > { %v5520_v47 = vpop.f32.mrf.mxu0  ;;  %v4785_v2 = vadd.f32 %v5562_v46, %v4646_v9 }
 0x7bd   : > { %v5521_v37 = vadd.f32 %v5520_v47, %v5519_v28 }
 0x7bf   : > { %v4655_v59 = vadd.f32 %v5521_v37, %v4490_v14 }
 0x7c8   : > { %v5642_v44 = vpop.f32.mrf.mxu1 }
 0x7ca   : > { %v5643_v21 = vpop.f32.mrf.mxu1 }
 0x7cb   : > { %v5644_v10 = vadd.f32 %v5643_v21, %v5642_v44  ;;  %v4796_v44 = vadd.f32 %v5565_v30, %v4655_v59 }
 0x7cc   : > { %v5645_v16 = vpop.f32.mrf.mxu1 }
 0x7ce   : > { %v5646_v5 = vpop.f32.mrf.mxu1 }
 0x7cf   : > { %v5598_v53 = vpop.f32.mrf.mxu0  ;;  %v5647_v62 = vadd.f32 %v5646_v5, %v5645_v16 }
 0x7d0   : > { %v5648_v57 = vpop.f32.mrf.mxu1 }
 0x7d1   : > { %v5599_v38 = vpop.f32.mrf.mxu0 }
 0x7d2   : > { %v5600_v19 = vadd.f32 %v5599_v38, %v5598_v53  ;;  %v5649_v24 = vpop.f32.mrf.mxu1 }
 0x7d3   : > { %v5601_v36 = vpop.f32.mrf.mxu0  ;;  %v5650_v8 = vadd.f32 %v5649_v24, %v5648_v57 }
 0x7d4   : > { %v4964_v49 = vadd.f32 %v5600_v19, %v4763_v22  ;;  %v5651_v27 = vpop.f32.mrf.mxu1 }
 0x7d5   : > { %v5602_v7 = vpop.f32.mrf.mxu0 }
 0x7d6   : > { %v5089_v17 = vadd.f32 %v5644_v10, %v4964_v49  ;;  %v5603_v12 = vadd.f32 %v5602_v7, %v5601_v36  ;;  %v5652_v32 = vpop.f32.mrf.mxu1 }
 0x7d7   : > { %v5604_v35 = vpop.f32.mrf.mxu0  ;;  %v5653_v40 = vadd.f32 %v5652_v32, %v5651_v27 }
 0x7d8   : > { %v5113_v29 = vadd.f32 %v5089_v17, %v8489_v52  ;;  %v4971_v61 = vadd.f32 %v5603_v12, %v4774_v50 }
 0x7d9   : > { %v5605_v6 = vpop.f32.mrf.mxu0 }
 0x7da   : > { %5117 = vst [vmem:[%s466_s22] sm:$0xff] %v5113_v29  ;;  %v5096_v39 = vadd.f32 %v5647_v62, %v4971_v61  ;;  %v5606_v34 = vadd.f32 %v5605_v6, %v5604_v35 }
 0x7db   : > { %v5607_v26 = vpop.f32.mrf.mxu0 }
 0x7dc   : > { %v5114_v3 = vadd.f32 %v5096_v39, %v8490_v51  ;;  %v4978_v0 = vadd.f32 %v5606_v34, %v4785_v2 }
 0x7dd   : > { %v5608_v1 = vpop.f32.mrf.mxu0 }
 0x7de   : > { %5118 = vst [vmem:[%s466_s22 + $0x8] sm:$0xff] %v5114_v3  ;;  %v5103_v45 = vadd.f32 %v5650_v8, %v4978_v0  ;;  %v5609_v28 = vadd.f32 %v5608_v1, %v5607_v26 }
 0x7e0   : > { %v5115_v21 = vadd.f32 %v5103_v45, %v8491_v13  ;;  %v4985_v41 = vadd.f32 %v5609_v28, %v4796_v44 }
 0x7e2   : > { %5119 = vst [vmem:[%s466_s22 + $0x10] sm:$0xff] %v5115_v21  ;;  %v5110_v43 = vadd.f32 %v5653_v40, %v4985_v41 }
 0x7e4   : > { %v5116_v63 = vadd.f32 %v5110_v43, %v8492_v55 }
 0x7e6   : > { %5120 = vst [vmem:[%s466_s22 + $0x18] sm:$0xff] %v5116_v63 }
 0x7e7   : > { %6091 = shalt.err (!%p6088_p3)
}
 0x7e8   : > { %s6092_s14 = scalar_lea.hbm %s7904_s21, 512  ;;  %s6096_s22 = scalar_lea.hbm %s7961_s13, 1024 }
 0x7e9   : > { %p6093_p2 = scmp.ne.s32.totalorder %s7904_s21, %s6092_s14  ;;  %p6097_p6 = scmp.lt.s32.totalorder %s7904_s21, %s7961_s13 }
 0x7ea   : > { %p6098_p9 = scmp.lt.s32.totalorder %s6096_s22, %s6092_s14 }
 0x7eb   : > { %p6094_p4 = pnand %p6093_p2, %p6267_p5 }
 0x7ec   : > { %p6099_p7 = por %p6098_p9, %p6097_p6 }
 0x7ed   : > { %p6095_p13 = pneg %p6094_p4 }
 0x7ef   : > { %p6100_p10 = pnand %p6099_p7, %p6095_p13 }
 0x7f1   : > { %6103 = shalt.err (!%p6100_p10)
}
 0x7f2   : > { %s6157_s16 = smov 128   ;;  %s6158_s15 = smov 8  }
 0x7f3   : > { %5914 = dma.vmem_to_hbm [thread:$0]  (%p6267_p5), %s7898_s23, 512, %s7904_s21, %s7908_s24, %s6157_s16, %s6157_s16, %s6158_s15  }
 0x7f4 PF: > { %s8493_s29 = sld [smem:[#allocation12_spill]]  ;;  %p5931_p12 = scmp.ge.s32.totalorder %s6146_s28, 2 }
 0x7f5   : > { %s8494_s27 = sld [smem:[#allocation16_spill]] }
 0x7fa   : > { %s5151_s25 = sand.u32 1, %s8493_s29  }
 0x7fb   : > { %p8495_p8 = scmp.ne.s32.totalorder %s8494_s27, 0  ;;  %s5152_s14 = scalar_lea.sflag [#allocation5], %s5151_s25 }
 0x7fd   : > { %p5924_p11 = pnand %p5931_p12, %p8495_p8 }
 0x7ff   : > { %p5925_p0 = pneg %p5924_p11 }
 0x801   : > { %6129 = dma.done.wait (%p5925_p0), %s5152_s14, 512  }
 0x802   : > { %6131 = vsyncadd (%p5925_p0), %s5152_s14, 4294966784  ;;  %s8496_s28 = sld [smem:[#allocation14_spill]]  ;;  %s8499_s25 = smov %s6138_s26 }
 0x803   : > { %s8497_s17 = sld [smem:[#allocation13_spill]] }
 0x804   : > { %s8498_s27 = sld [smem:[#allocation15_spill]] }
 0x808   : > { %p25_p1 = scmp.ge.s32.totalorder %s8496_s28, 4  }
 0x809   : > { %s8500_s26 = smov %s8497_s17 }
 0x80a   :  { %27 = sbr.rel (!%p25_p1) target bundleno = 5 (0x5), region = 116 }
 0x80f   :  { %5157 = vsyncpa [#allocation4], 1 }
 0x810   :  { %5159 = vsyncpa [#allocation4 + $0x1], 1 }
 0x811   :  { %5160 = vsyncpa [#allocation7], 1 }
 0x812   :  { %5161 = vsyncpa [#allocation5], 1 }
 0x813   :  { %5163 = vsyncpa [#allocation5 + $0x1], 1 }

</bundles_post_ra>
